<compile_context>
chip_gen: v5e
topology: v5e:2x2
jax: 0.10.0
libtpu: 0.0.40
codegen_flags: <defaults>
</compile_context>

<pallas_src>
import functools
import math

import jax
import jax.numpy as jnp
from jax import lax
from jax.experimental import pallas as pl
from jax.experimental.pallas import tpu as pltpu

EPS = 1e-5  # torch.nn.LayerNorm default

# Packed parameter layout (all 2-D arrays):
#   w_qkv_s [D,3D]  self-attn fused Wq|Wk|Wv        b_qkv_s [1,3D]
#   w_o_s   [D,D]   self-attn output proj            (bias -> b_d row 0)
#   w_q_c   [D,D]   cross-attn Wq                    (bias -> b_d row 1)
#   w_kv_c  [D,2D]  cross-attn fused Wk|Wv           b_kv_c  [1,2D]
#   w_o_c   [D,D]   cross-attn output proj           (bias -> b_d row 2)
#   w_gN_y  [D,3D]  gate N fused Wr|Wz|Wg (applied to y)
#   w_gN_x  [D,2D]  gate N fused Ur|Uz    (applied to x)
#   w_gN_u  [D,D]   gate N Ug             (applied to r*x)
#   w_mlp1  [D,Dm]  b_mlp1 [1,Dm];  w_mlp2 [Dm,D]  (bias -> b_d row 7)
#   b_d     [8,D]   rows: 0 b_o_s, 1 b_q_c, 2 b_o_c, 3 bg1, 4 bg2,
#                         5 ln1 gamma, 6 ln1 beta, 7 b_mlp2
_PARAM_ORDER = (
    "w_qkv_s", "w_o_s", "w_q_c", "w_kv_c", "w_o_c",
    "w_g1_y", "w_g1_x", "w_g1_u",
    "w_g2_y", "w_g2_x", "w_g2_u",
    "w_mlp1", "w_mlp2",
    "b_qkv_s", "b_kv_c", "b_mlp1", "b_d",
)
_MATMUL_WEIGHTS = frozenset({
    "w_qkv_s", "w_o_s", "w_q_c", "w_kv_c", "w_o_c",
    "w_g1_y", "w_g1_x", "w_g1_u",
    "w_g2_y", "w_g2_x", "w_g2_u",
    "w_mlp1", "w_mlp2",
})


# ----------------------------------------------------------------------------
# in-kernel math helpers (bf16 matmuls, f32 everything else)
# ----------------------------------------------------------------------------
def _mm(a, w):
    """bf16 x bf16 matmul with f32 accumulation."""
    return jnp.dot(a.astype(jnp.bfloat16), w.astype(jnp.bfloat16),
                   preferred_element_type=jnp.float32)


def _layernorm(v, gamma, beta):
    mu = jnp.mean(v, axis=-1, keepdims=True)
    var = jnp.mean((v - mu) ** 2, axis=-1, keepdims=True)
    return (v - mu) * lax.rsqrt(var + EPS) * gamma + beta


def _softmax_last(s):
    m = jnp.max(s, axis=-1, keepdims=True)
    e = jnp.exp(s - m)
    denom = jnp.sum(e, axis=-1, keepdims=True)
    return e * pl.reciprocal(denom, approx=True)


def _split_heads(t, B, S, H):
    """[B*S, D] -> [B*H, S, dh] using minor-dim transposes + tile-aligned reshapes."""
    D = t.shape[-1]
    dh = D // H
    t = t.reshape(B, S, D)
    t = jnp.swapaxes(t, -1, -2)        # [B, D, S]
    t = t.reshape(B * H, dh, S)        # head split along (former) lane dim
    return jnp.swapaxes(t, -1, -2)     # [B*H, S, dh]


def _merge_heads(t, B, S, H):
    """[B*H, S, dh] -> [B*S, D] (inverse of _split_heads)."""
    dh = t.shape[-1]
    D = H * dh
    t = jnp.swapaxes(t, -1, -2)        # [B*H, dh, S]
    t = t.reshape(B, D, S)
    t = jnp.swapaxes(t, -1, -2)        # [B, S, D]
    return t.reshape(B * S, D)


def _attention_core(q, k, v, *, B, S, H, causal):
    """q,k,v: [B*S, D] f32 -> context [B*S, D] f32 (before output projection)."""
    D = q.shape[-1]
    dh = D // H
    scale = 1.0 / math.sqrt(dh)
    qh = _split_heads(q, B, S, H).astype(jnp.bfloat16)   # [B*H, S, dh]
    kh = _split_heads(k, B, S, H).astype(jnp.bfloat16)
    vh = _split_heads(v, B, S, H).astype(jnp.bfloat16)
    s = jnp.einsum("bqd,bkd->bqk", qh, kh,
                   preferred_element_type=jnp.float32) * scale
    if causal:
        row = lax.broadcasted_iota(jnp.int32, (S, S), 0)
        col = lax.broadcasted_iota(jnp.int32, (S, S), 1)
        s = jnp.where(row >= col, s, -1e30)
    p = _softmax_last(s)
    o = jnp.einsum("bqk,bkd->bqd", p.astype(jnp.bfloat16), vh,
                   preferred_element_type=jnp.float32)
    return _merge_heads(o, B, S, H)


def _gru_gate(x, y, wy_rzg, ux_rz, ug, bg):
    """Fused GTrXL-style GRU gate on flattened rows."""
    D = x.shape[-1]
    yw = _mm(y, wy_rzg)                       # [R, 3D] -> [r | z | g]
    xu = _mm(x, ux_rz)                        # [R, 2D] -> [r | z]
    r = jax.nn.sigmoid(yw[:, :D] + xu[:, :D])
    z = jax.nn.sigmoid(yw[:, D:2 * D] + xu[:, D:2 * D] - bg)
    h = jnp.tanh(yw[:, 2 * D:] + _mm(r * x, ug))
    return (1.0 - z) * x + z * h


def _decoder_compute(x, enc, W, bD, *, B, S, H):
    """Full decoder layer on flattened [B*S, D] activations."""
    D = x.shape[-1]
    gamma, beta = bD[5], bD[6]
    relu = lambda v: jnp.maximum(v, 0.0)

    # --- masked self-attention block -----------------------------------------
    y = _layernorm(x, gamma, beta)
    qkv = _mm(y, W["w_qkv_s"]) + W["b_qkv_s"][0]          # fused QKV projection
    y = _attention_core(qkv[:, :D], qkv[:, D:2 * D], qkv[:, 2 * D:],
                        B=B, S=S, H=H, causal=True)
    y = _mm(y, W["w_o_s"]) + bD[0]
    # dropout(p=0.1) is identity in eval mode
    x = _gru_gate(x, relu(y), W["w_g1_y"], W["w_g1_x"], W["w_g1_u"], bD[3])

    # (reference computes y = ln1(x) here but never uses it -> dead code)

    # --- cross-attention block (query = gated x, kv = ln1(enc)) --------------
    enc_n = _layernorm(enc, gamma, beta)
    q = _mm(x, W["w_q_c"]) + bD[1]
    kv = _mm(enc_n, W["w_kv_c"]) + W["b_kv_c"][0]         # fused KV projection
    y = _attention_core(q, kv[:, :D], kv[:, D:], B=B, S=S, H=H, causal=False)
    y = _mm(y, W["w_o_c"]) + bD[2]
    x = _gru_gate(x, relu(y), W["w_g2_y"], W["w_g2_x"], W["w_g2_u"], bD[4])

    # --- MLP block (reference reuses gate2; gate3 / self.ln are unused) ------
    y = _layernorm(x, gamma, beta)
    y = _mm(relu(_mm(y, W["w_mlp1"]) + W["b_mlp1"][0]), W["w_mlp2"]) + bD[7]
    x = _gru_gate(x, relu(y), W["w_g2_y"], W["w_g2_x"], W["w_g2_u"], bD[4])
    return x


# ----------------------------------------------------------------------------
# Pallas kernel + wrapper
# ----------------------------------------------------------------------------
def decoder_layer_kernel(x_ref, enc_ref, *rest, num_heads):
    p_refs, out_ref = rest[:-1], rest[-1]
    bt, S, D = x_ref.shape
    W = {name: ref[...] for name, ref in zip(_PARAM_ORDER, p_refs)}
    bD = W.pop("b_d")

    x = x_ref[...].reshape(bt * S, D)      # flatten batch into the matmul M dim
    enc = enc_ref[...].reshape(bt * S, D)
    out = _decoder_compute(x, enc, W, bD, B=bt, S=S, H=num_heads)
    out_ref[...] = out.reshape(bt, S, D).astype(out_ref.dtype)


def decoder_layer_forward(x, enc, params, *, num_heads):
    B, S, D = x.shape
    Dm = params["w_mlp1"].shape[1]
    R = B * S
    dh = D // num_heads

    # Operands: activations f32, matmul weights pre-cast to bf16, biases f32.
    ops = [x, enc]
    in_specs = [pl.BlockSpec((B, S, D), lambda b: (b, 0, 0)),
                pl.BlockSpec((B, S, D), lambda b: (b, 0, 0))]
    for name in _PARAM_ORDER:
        arr = params[name]
        if name in _MATMUL_WEIGHTS:
            arr = arr.astype(jnp.bfloat16)
        ops.append(arr)
        in_specs.append(pl.BlockSpec(arr.shape, lambda b: (0, 0)))

    # Advisory cost estimate (matmul flops, transcendentals, bytes moved).
    flops = 0
    flops += 2 * R * D * (3 * D)                       # self-attn fused QKV
    flops += 2 * R * D * D                             # self-attn out proj
    flops += 2 * R * D * D                             # cross-attn Q
    flops += 2 * R * D * (2 * D)                       # cross-attn fused KV
    flops += 2 * R * D * D                             # cross-attn out proj
    flops += 3 * 2 * R * D * (3 * D + 2 * D + D)       # three GRU gates
    flops += 2 * (2 * R * D * Dm)                      # MLP up + down
    flops += 2 * 2 * (2 * B * num_heads * S * S * dh)  # QK^T + PV, self + cross
    transcendentals = (2 * B * num_heads * S * S       # exp in softmax
                       + 3 * R * D * 3                 # sigmoid x2 + tanh per gate
                       + 4 * R)                        # rsqrt in layernorms
    operand_bytes = B * S * D * 4                      # output
    for arr in ops:
        operand_bytes += arr.size * arr.dtype.itemsize

    vmem_limit = int(min(64 << 20, max(16 << 20, 6 * operand_bytes)))

    kernel = functools.partial(decoder_layer_kernel, num_heads=num_heads)
    return pl.pallas_call(
        kernel,
        out_shape=jax.ShapeDtypeStruct((B, S, D), jnp.float32),
        grid_spec=pltpu.PrefetchScalarGridSpec(
            num_scalar_prefetch=0,
            grid=(1,),          # whole [B*S, D] slab per step; tile batch for large B
            in_specs=in_specs,
            out_specs=pl.BlockSpec((B, S, D), lambda b: (b, 0, 0)),
        ),
        compiler_params=pltpu.CompilerParams(
            dimension_semantics=("parallel",),
            vmem_limit_bytes=vmem_limit,
        ),
        cost_estimate=pl.CostEstimate(
            flops=int(flops),
            transcendentals=int(transcendentals),
            bytes_accessed=int(operand_bytes),
        ),
    )(*ops)


# ----------------------------------------------------------------------------
# deterministic parameter init + independent pure-JAX (f32, unfused) reference
# ----------------------------------------------------------------------------
def init_params(key, D, Dm):
    keys = jax.random.split(key, 17)
    w = lambda k, shape: jax.random.normal(k, shape, jnp.float32) * 0.05
    params = {
        "w_qkv_s": w(keys[0], (D, 3 * D)),
        "w_o_s":   w(keys[1], (D, D)),
        "w_q_c":   w(keys[2], (D, D)),
        "w_kv_c":  w(keys[3], (D, 2 * D)),
        "w_o_c":   w(keys[4], (D, D)),
        "w_g1_y":  w(keys[5], (D, 3 * D)),
        "w_g1_x":  w(keys[6], (D, 2 * D)),
        "w_g1_u":  w(keys[7], (D, D)),
        "w_g2_y":  w(keys[8], (D, 3 * D)),
        "w_g2_x":  w(keys[9], (D, 2 * D)),
        "w_g2_u":  w(keys[10], (D, D)),
        "w_mlp1":  w(keys[11], (D, Dm)),
        "w_mlp2":  w(keys[12], (Dm, D)),
        "b_qkv_s": w(keys[13], (1, 3 * D)),
        "b_kv_c":  w(keys[14], (1, 2 * D)),
        "b_mlp1":  w(keys[15], (1, Dm)),
    }
    b_d = w(keys[16], (8, D)).at[5].set(1.0)   # row 5 = ln1 gamma
    params["b_d"] = b_d
    return params


def reference_forward(x, enc, params, *, num_heads):
    D = x.shape[-1]
    H = num_heads
    dh = D // H
    wq_s, wk_s, wv_s = jnp.split(params["w_qkv_s"], 3, axis=1)
    bq_s, bk_s, bv_s = jnp.split(params["b_qkv_s"][0], 3)
    wk_c, wv_c = jnp.split(params["w_kv_c"], 2, axis=1)
    bk_c, bv_c = jnp.split(params["b_kv_c"][0], 2)
    bD = params["b_d"]
    gamma, beta = bD[5], bD[6]
    relu = lambda v: jnp.maximum(v, 0.0)

    def ln(v):
        mu = jnp.mean(v, axis=-1, keepdims=True)
        var = jnp.mean((v - mu) ** 2, axis=-1, keepdims=True)
        return (v - mu) * lax.rsqrt(var + EPS) * gamma + beta

    def gru(xb, yb, wy, ux, ug, bg):
        wr, wz, wg = jnp.split(wy, 3, axis=1)
        ur, uz = jnp.split(ux, 2, axis=1)
        r = jax.nn.sigmoid(yb @ wr + xb @ ur)
        z = jax.nn.sigmoid(yb @ wz + xb @ uz - bg)
        h = jnp.tanh(yb @ wg + (r * xb) @ ug)
        return (1.0 - z) * xb + z * h

    def attn(q_in, kv_in, wq, bq, wk, bk, wv, bv, wo, bo, causal):
        Sq, Sk = q_in.shape[0], kv_in.shape[0]
        q = (q_in @ wq + bq).reshape(Sq, H, dh)
        k = (kv_in @ wk + bk).reshape(Sk, H, dh)
        v = (kv_in @ wv + bv).reshape(Sk, H, dh)
        s = jnp.einsum("qhd,khd->hqk", q, k) / math.sqrt(dh)
        if causal:
            s = jnp.where(jnp.tril(jnp.ones((Sq, Sk), bool)), s, -1e30)
        p = jax.nn.softmax(s, axis=-1)
        o = jnp.einsum("hqk,khd->qhd", p, v).reshape(Sq, D)
        return o @ wo + bo

    def one(xb, eb):
        y = ln(xb)
        y = attn(y, y, wq_s, bq_s, wk_s, bk_s, wv_s, bv_s,
                 params["w_o_s"], bD[0], True)
        xb = gru(xb, relu(y), params["w_g1_y"], params["w_g1_x"],
                 params["w_g1_u"], bD[3])
        en = ln(eb)
        y = attn(xb, en, params["w_q_c"], bD[1], wk_c, bk_c, wv_c, bv_c,
                 params["w_o_c"], bD[2], False)
        xb = gru(xb, relu(y), params["w_g2_y"], params["w_g2_x"],
                 params["w_g2_u"], bD[4])
        y = ln(xb)
        y = relu(y @ params["w_mlp1"] + params["b_mlp1"][0]) @ params["w_mlp2"] + bD[7]
        xb = gru(xb, relu(y), params["w_g2_y"], params["w_g2_x"],
                 params["w_g2_u"], bD[4])
        return xb

    return jax.vmap(one)(x, enc)


if __name__ == "__main__":
    B, S, D, H, Dm = 2, 8, 32, 4, 64   # embed_dim=32, mlp_dim=64, heads=4, seq=8

    key = jax.random.PRNGKey(0)
    kx, ke, kp = jax.random.split(key, 3)
    x = jax.random.normal(kx, (B, S, D), jnp.float32)
    enc = jax.random.normal(ke, (B, S, D), jnp.float32)
    params = init_params(kp, D, Dm)

    out = decoder_layer_forward(x, enc, params, num_heads=H)
    out = jax.block_until_ready(out)

    ref = reference_forward(x, enc, params, num_heads=H)
    assert out.shape == (B, S, D)
    err = float(jnp.max(jnp.abs(out - ref)))
    assert jnp.allclose(out, ref, atol=5e-2, rtol=5e-2), f"max abs err {err}"

    print("KERNEL_OK")
</pallas_src>

<mosaic_0001>
module attributes {stable_mosaic.version = 11 : i64} {
  func.func @decoder_layer_kernel(%arg0: i32, %arg1: memref<2x8x32xf32, #tpu.memory_space<vmem>>, %arg2: memref<2x8x32xf32, #tpu.memory_space<vmem>>, %arg3: memref<32x96xbf16, #tpu.memory_space<vmem>>, %arg4: memref<32x32xbf16, #tpu.memory_space<vmem>>, %arg5: memref<32x32xbf16, #tpu.memory_space<vmem>>, %arg6: memref<32x64xbf16, #tpu.memory_space<vmem>>, %arg7: memref<32x32xbf16, #tpu.memory_space<vmem>>, %arg8: memref<32x96xbf16, #tpu.memory_space<vmem>>, %arg9: memref<32x64xbf16, #tpu.memory_space<vmem>>, %arg10: memref<32x32xbf16, #tpu.memory_space<vmem>>, %arg11: memref<32x96xbf16, #tpu.memory_space<vmem>>, %arg12: memref<32x64xbf16, #tpu.memory_space<vmem>>, %arg13: memref<32x32xbf16, #tpu.memory_space<vmem>>, %arg14: memref<32x64xbf16, #tpu.memory_space<vmem>>, %arg15: memref<64x32xbf16, #tpu.memory_space<vmem>>, %arg16: memref<1x96xf32, #tpu.memory_space<vmem>>, %arg17: memref<1x64xf32, #tpu.memory_space<vmem>>, %arg18: memref<1x64xf32, #tpu.memory_space<vmem>>, %arg19: memref<8x32xf32, #tpu.memory_space<vmem>>, %arg20: memref<2x8x32xf32, #tpu.memory_space<vmem>>) attributes {dimension_semantics = [#tpu.dimension_semantics<parallel>], iteration_bounds = array<i64: 1>, scalar_prefetch = 0 : i64, scratch_operands = 0 : i64, tpu.core_type = #tpu.core_type<tc>, window_params = [{transform_indices = @transform_0, window_bounds = array<i64: 2, 8, 32>}, {transform_indices = @transform_1, window_bounds = array<i64: 2, 8, 32>}, {pipeline_mode = #tpu.pipeline_mode<synchronous>, transform_indices = @transform_2, window_bounds = array<i64: 32, 96>}, {pipeline_mode = #tpu.pipeline_mode<synchronous>, transform_indices = @transform_3, window_bounds = array<i64: 32, 32>}, {pipeline_mode = #tpu.pipeline_mode<synchronous>, transform_indices = @transform_4, window_bounds = array<i64: 32, 32>}, {pipeline_mode = #tpu.pipeline_mode<synchronous>, transform_indices = @transform_5, window_bounds = array<i64: 32, 64>}, {pipeline_mode = #tpu.pipeline_mode<synchronous>, transform_indices = @transform_6, window_bounds = array<i64: 32, 32>}, {pipeline_mode = #tpu.pipeline_mode<synchronous>, transform_indices = @transform_7, window_bounds = array<i64: 32, 96>}, {pipeline_mode = #tpu.pipeline_mode<synchronous>, transform_indices = @transform_8, window_bounds = array<i64: 32, 64>}, {pipeline_mode = #tpu.pipeline_mode<synchronous>, transform_indices = @transform_9, window_bounds = array<i64: 32, 32>}, {pipeline_mode = #tpu.pipeline_mode<synchronous>, transform_indices = @transform_10, window_bounds = array<i64: 32, 96>}, {pipeline_mode = #tpu.pipeline_mode<synchronous>, transform_indices = @transform_11, window_bounds = array<i64: 32, 64>}, {pipeline_mode = #tpu.pipeline_mode<synchronous>, transform_indices = @transform_12, window_bounds = array<i64: 32, 32>}, {pipeline_mode = #tpu.pipeline_mode<synchronous>, transform_indices = @transform_13, window_bounds = array<i64: 32, 64>}, {pipeline_mode = #tpu.pipeline_mode<synchronous>, transform_indices = @transform_14, window_bounds = array<i64: 64, 32>}, {pipeline_mode = #tpu.pipeline_mode<synchronous>, transform_indices = @transform_15, window_bounds = array<i64: 1, 96>}, {pipeline_mode = #tpu.pipeline_mode<synchronous>, transform_indices = @transform_16, window_bounds = array<i64: 1, 64>}, {pipeline_mode = #tpu.pipeline_mode<synchronous>, transform_indices = @transform_17, window_bounds = array<i64: 1, 64>}, {pipeline_mode = #tpu.pipeline_mode<synchronous>, transform_indices = @transform_18, window_bounds = array<i64: 8, 32>}, {transform_indices = @transform_19, window_bounds = array<i64: 2, 8, 32>}]} {
    %c0 = arith.constant 0 : index
    %c0_0 = arith.constant 0 : index
    %0 = vector.load %arg3[%c0, %c0_0] : memref<32x96xbf16, #tpu.memory_space<vmem>>, vector<32x96xbf16>
    %c0_1 = arith.constant 0 : index
    %c0_2 = arith.constant 0 : index
    %1 = vector.load %arg4[%c0_1, %c0_2] : memref<32x32xbf16, #tpu.memory_space<vmem>>, vector<32x32xbf16>
    %c0_3 = arith.constant 0 : index
    %c0_4 = arith.constant 0 : index
    %2 = vector.load %arg5[%c0_3, %c0_4] : memref<32x32xbf16, #tpu.memory_space<vmem>>, vector<32x32xbf16>
    %c0_5 = arith.constant 0 : index
    %c0_6 = arith.constant 0 : index
    %3 = vector.load %arg6[%c0_5, %c0_6] : memref<32x64xbf16, #tpu.memory_space<vmem>>, vector<32x64xbf16>
    %c0_7 = arith.constant 0 : index
    %c0_8 = arith.constant 0 : index
    %4 = vector.load %arg7[%c0_7, %c0_8] : memref<32x32xbf16, #tpu.memory_space<vmem>>, vector<32x32xbf16>
    %c0_9 = arith.constant 0 : index
    %c0_10 = arith.constant 0 : index
    %5 = vector.load %arg8[%c0_9, %c0_10] : memref<32x96xbf16, #tpu.memory_space<vmem>>, vector<32x96xbf16>
    %c0_11 = arith.constant 0 : index
    %c0_12 = arith.constant 0 : index
    %6 = vector.load %arg9[%c0_11, %c0_12] : memref<32x64xbf16, #tpu.memory_space<vmem>>, vector<32x64xbf16>
    %c0_13 = arith.constant 0 : index
    %c0_14 = arith.constant 0 : index
    %7 = vector.load %arg10[%c0_13, %c0_14] : memref<32x32xbf16, #tpu.memory_space<vmem>>, vector<32x32xbf16>
    %c0_15 = arith.constant 0 : index
    %c0_16 = arith.constant 0 : index
    %8 = vector.load %arg11[%c0_15, %c0_16] : memref<32x96xbf16, #tpu.memory_space<vmem>>, vector<32x96xbf16>
    %c0_17 = arith.constant 0 : index
    %c0_18 = arith.constant 0 : index
    %9 = vector.load %arg12[%c0_17, %c0_18] : memref<32x64xbf16, #tpu.memory_space<vmem>>, vector<32x64xbf16>
    %c0_19 = arith.constant 0 : index
    %c0_20 = arith.constant 0 : index
    %10 = vector.load %arg13[%c0_19, %c0_20] : memref<32x32xbf16, #tpu.memory_space<vmem>>, vector<32x32xbf16>
    %c0_21 = arith.constant 0 : index
    %c0_22 = arith.constant 0 : index
    %11 = vector.load %arg14[%c0_21, %c0_22] : memref<32x64xbf16, #tpu.memory_space<vmem>>, vector<32x64xbf16>
    %c0_23 = arith.constant 0 : index
    %c0_24 = arith.constant 0 : index
    %12 = vector.load %arg15[%c0_23, %c0_24] : memref<64x32xbf16, #tpu.memory_space<vmem>>, vector<64x32xbf16>
    %c0_25 = arith.constant 0 : index
    %c0_26 = arith.constant 0 : index
    %13 = vector.load %arg16[%c0_25, %c0_26] : memref<1x96xf32, #tpu.memory_space<vmem>>, vector<1x96xf32>
    %c0_27 = arith.constant 0 : index
    %c0_28 = arith.constant 0 : index
    %14 = vector.load %arg17[%c0_27, %c0_28] : memref<1x64xf32, #tpu.memory_space<vmem>>, vector<1x64xf32>
    %c0_29 = arith.constant 0 : index
    %c0_30 = arith.constant 0 : index
    %15 = vector.load %arg18[%c0_29, %c0_30] : memref<1x64xf32, #tpu.memory_space<vmem>>, vector<1x64xf32>
    %c0_31 = arith.constant 0 : index
    %c0_32 = arith.constant 0 : index
    %16 = vector.load %arg19[%c0_31, %c0_32] : memref<8x32xf32, #tpu.memory_space<vmem>>, vector<8x32xf32>
    %c0_33 = arith.constant 0 : index
    %c0_34 = arith.constant 0 : index
    %c0_35 = arith.constant 0 : index
    %17 = vector.load %arg1[%c0_33, %c0_34, %c0_35] : memref<2x8x32xf32, #tpu.memory_space<vmem>>, vector<2x8x32xf32>
    %18 = vector.shape_cast %17 : vector<2x8x32xf32> to vector<16x32xf32>
    %c0_36 = arith.constant 0 : index
    %c0_37 = arith.constant 0 : index
    %c0_38 = arith.constant 0 : index
    %19 = vector.load %arg2[%c0_36, %c0_37, %c0_38] : memref<2x8x32xf32, #tpu.memory_space<vmem>>, vector<2x8x32xf32>
    %20 = vector.shape_cast %19 : vector<2x8x32xf32> to vector<16x32xf32>
    %21 = vector.extract_strided_slice %16 {offsets = [5, 0], sizes = [1, 32], strides = [1, 1]} : vector<8x32xf32> to vector<1x32xf32>
    %22 = vector.shape_cast %21 : vector<1x32xf32> to vector<32xf32>
    %23 = vector.extract_strided_slice %16 {offsets = [6, 0], sizes = [1, 32], strides = [1, 1]} : vector<8x32xf32> to vector<1x32xf32>
    %24 = vector.shape_cast %23 : vector<1x32xf32> to vector<32xf32>
    %cst = arith.constant dense<0.000000e+00> : vector<16xf32>
    %25 = vector.multi_reduction <add>, %18, %cst [1] : vector<16x32xf32> to vector<16xf32>
    %26 = vector.shape_cast %25 : vector<16xf32> to vector<16x1xf32>
    %cst_39 = arith.constant 3.200000e+01 : f32
    %27 = vector.broadcast %cst_39 : f32 to vector<16x1xf32>
    %28 = arith.divf %26, %27 : vector<16x1xf32>
    %29 = vector.broadcast %28 : vector<16x1xf32> to vector<16x32xf32>
    %30 = arith.subf %18, %29 : vector<16x32xf32>
    %31 = arith.mulf %30, %30 : vector<16x32xf32>
    %cst_40 = arith.constant dense<0.000000e+00> : vector<16xf32>
    %32 = vector.multi_reduction <add>, %31, %cst_40 [1] : vector<16x32xf32> to vector<16xf32>
    %33 = vector.shape_cast %32 : vector<16xf32> to vector<16x1xf32>
    %cst_41 = arith.constant 3.200000e+01 : f32
    %34 = vector.broadcast %cst_41 : f32 to vector<16x1xf32>
    %35 = arith.divf %33, %34 : vector<16x1xf32>
    %36 = vector.broadcast %28 : vector<16x1xf32> to vector<16x32xf32>
    %37 = arith.subf %18, %36 : vector<16x32xf32>
    %cst_42 = arith.constant 9.99999974E-6 : f32
    %38 = vector.broadcast %cst_42 : f32 to vector<16x1xf32>
    %39 = arith.addf %35, %38 : vector<16x1xf32>
    %40 = math.rsqrt %39 : vector<16x1xf32>
    %41 = vector.broadcast %40 : vector<16x1xf32> to vector<16x32xf32>
    %42 = arith.mulf %37, %41 : vector<16x32xf32>
    %43 = vector.shape_cast %22 : vector<32xf32> to vector<1x32xf32>
    %44 = vector.broadcast %43 : vector<1x32xf32> to vector<16x32xf32>
    %45 = arith.mulf %42, %44 : vector<16x32xf32>
    %46 = vector.shape_cast %24 : vector<32xf32> to vector<1x32xf32>
    %47 = vector.broadcast %46 : vector<1x32xf32> to vector<16x32xf32>
    %48 = arith.addf %45, %47 : vector<16x32xf32>
    %49 = arith.truncf %48 : vector<16x32xf32> to vector<16x32xbf16>
    %cst_43 = arith.constant dense<0.000000e+00> : vector<16x96xf32>
    %50 = tpu.matmul %49, %0, %cst_43 {dimension_numbers = #tpu.dot_dimension_numbers<[1], [0], [0], [1], [0, 0, 1, 1], [], []>} : vector<16x32xbf16>, vector<32x96xbf16>, vector<16x96xf32> -> vector<16x96xf32>
    %51 = vector.shape_cast %13 : vector<1x96xf32> to vector<96xf32>
    %52 = vector.shape_cast %51 : vector<96xf32> to vector<1x96xf32>
    %53 = vector.broadcast %52 : vector<1x96xf32> to vector<16x96xf32>
    %54 = arith.addf %50, %53 : vector<16x96xf32>
    %55 = vector.extract_strided_slice %54 {offsets = [0, 0], sizes = [16, 32], strides = [1, 1]} : vector<16x96xf32> to vector<16x32xf32>
    %56 = vector.extract_strided_slice %54 {offsets = [0, 32], sizes = [16, 32], strides = [1, 1]} : vector<16x96xf32> to vector<16x32xf32>
    %57 = vector.extract_strided_slice %54 {offsets = [0, 64], sizes = [16, 32], strides = [1, 1]} : vector<16x96xf32> to vector<16x32xf32>
    %58 = vector.shape_cast %55 : vector<16x32xf32> to vector<2x8x32xf32>
    %59 = tpu.transpose %58, [0, 2, 1] : vector<2x8x32xf32> -> vector<2x32x8xf32>
    %60 = vector.shape_cast %59 : vector<2x32x8xf32> to vector<8x8x8xf32>
    %61 = tpu.transpose %60, [0, 2, 1] : vector<8x8x8xf32> -> vector<8x8x8xf32>
    %62 = arith.truncf %61 : vector<8x8x8xf32> to vector<8x8x8xbf16>
    %63 = vector.shape_cast %56 : vector<16x32xf32> to vector<2x8x32xf32>
    %64 = tpu.transpose %63, [0, 2, 1] : vector<2x8x32xf32> -> vector<2x32x8xf32>
    %65 = vector.shape_cast %64 : vector<2x32x8xf32> to vector<8x8x8xf32>
    %66 = tpu.transpose %65, [0, 2, 1] : vector<8x8x8xf32> -> vector<8x8x8xf32>
    %67 = arith.truncf %66 : vector<8x8x8xf32> to vector<8x8x8xbf16>
    %68 = vector.shape_cast %57 : vector<16x32xf32> to vector<2x8x32xf32>
    %69 = tpu.transpose %68, [0, 2, 1] : vector<2x8x32xf32> -> vector<2x32x8xf32>
    %70 = vector.shape_cast %69 : vector<2x32x8xf32> to vector<8x8x8xf32>
    %71 = tpu.transpose %70, [0, 2, 1] : vector<8x8x8xf32> -> vector<8x8x8xf32>
    %72 = arith.truncf %71 : vector<8x8x8xf32> to vector<8x8x8xbf16>
    "tpu.trace_start"() <{level = 10 : i32, message = "bqd,bkd->bqk"}> : () -> ()
    %cst_44 = arith.constant dense<0.000000e+00> : vector<8x8x8xf32>
    %73 = tpu.matmul %62, %67, %cst_44 {dimension_numbers = #tpu.dot_dimension_numbers<[2], [2], [1], [1], [0, 0, 0, 1, 1, 1], [0], [0]>} : vector<8x8x8xbf16>, vector<8x8x8xbf16>, vector<8x8x8xf32> -> vector<8x8x8xf32>
    "tpu.trace_stop"() : () -> ()
    %cst_45 = arith.constant 0.353553385 : f32
    %74 = vector.broadcast %cst_45 : f32 to vector<8x8x8xf32>
    %75 = arith.mulf %73, %74 : vector<8x8x8xf32>
    %76 = tpu.iota {dimensions = array<i32: 0>} : vector<8x8xi32>
    %77 = tpu.iota {dimensions = array<i32: 1>} : vector<8x8xi32>
    %78 = arith.cmpi sge, %76, %77 : vector<8x8xi32>
    %cst_46 = arith.constant -1.000000e+30 : f32
    %79 = vector.shape_cast %78 : vector<8x8xi1> to vector<1x8x8xi1>
    %80 = vector.broadcast %79 : vector<1x8x8xi1> to vector<8x8x8xi1>
    %81 = vector.broadcast %cst_46 : f32 to vector<8x8x8xf32>
    %82 = arith.select %80, %75, %81 : vector<8x8x8xi1>, vector<8x8x8xf32>
    %cst_47 = arith.constant dense<0xFF800000> : vector<8x8xf32>
    %83 = vector.multi_reduction <maximumf>, %82, %cst_47 [2] : vector<8x8x8xf32> to vector<8x8xf32>
    %84 = vector.shape_cast %83 : vector<8x8xf32> to vector<8x8x1xf32>
    %85 = vector.broadcast %84 : vector<8x8x1xf32> to vector<8x8x8xf32>
    %86 = arith.subf %82, %85 : vector<8x8x8xf32>
    %87 = math.exp %86 : vector<8x8x8xf32>
    %cst_48 = arith.constant dense<0.000000e+00> : vector<8x8xf32>
    %88 = vector.multi_reduction <add>, %87, %cst_48 [2] : vector<8x8x8xf32> to vector<8x8xf32>
    %89 = vector.shape_cast %88 : vector<8x8xf32> to vector<8x8x1xf32>
    %90 = tpu.reciprocal %89 {approx = true} : vector<8x8x1xf32> -> vector<8x8x1xf32>
    %91 = vector.broadcast %90 : vector<8x8x1xf32> to vector<8x8x8xf32>
    %92 = arith.mulf %87, %91 : vector<8x8x8xf32>
    %93 = arith.truncf %92 : vector<8x8x8xf32> to vector<8x8x8xbf16>
    "tpu.trace_start"() <{level = 10 : i32, message = "bqk,bkd->bqd"}> : () -> ()
    %cst_49 = arith.constant dense<0.000000e+00> : vector<8x8x8xf32>
    %94 = tpu.matmul %93, %72, %cst_49 {dimension_numbers = #tpu.dot_dimension_numbers<[2], [1], [1], [2], [0, 0, 0, 1, 1, 2], [0], [0]>} : vector<8x8x8xbf16>, vector<8x8x8xbf16>, vector<8x8x8xf32> -> vector<8x8x8xf32>
    "tpu.trace_stop"() : () -> ()
    %95 = tpu.transpose %94, [0, 2, 1] : vector<8x8x8xf32> -> vector<8x8x8xf32>
    %96 = vector.shape_cast %95 : vector<8x8x8xf32> to vector<2x32x8xf32>
    %97 = tpu.transpose %96, [0, 2, 1] : vector<2x32x8xf32> -> vector<2x8x32xf32>
    %98 = vector.shape_cast %97 : vector<2x8x32xf32> to vector<16x32xf32>
    %99 = arith.truncf %98 : vector<16x32xf32> to vector<16x32xbf16>
    %cst_50 = arith.constant dense<0.000000e+00> : vector<16x32xf32>
    %100 = tpu.matmul %99, %1, %cst_50 {dimension_numbers = #tpu.dot_dimension_numbers<[1], [0], [0], [1], [0, 0, 1, 1], [], []>} : vector<16x32xbf16>, vector<32x32xbf16>, vector<16x32xf32> -> vector<16x32xf32>
    %101 = vector.extract_strided_slice %16 {offsets = [0, 0], sizes = [1, 32], strides = [1, 1]} : vector<8x32xf32> to vector<1x32xf32>
    %102 = vector.shape_cast %101 : vector<1x32xf32> to vector<32xf32>
    %103 = vector.shape_cast %102 : vector<32xf32> to vector<1x32xf32>
    %104 = vector.broadcast %103 : vector<1x32xf32> to vector<16x32xf32>
    %105 = arith.addf %100, %104 : vector<16x32xf32>
    %cst_51 = arith.constant 0.000000e+00 : f32
    %106 = vector.broadcast %cst_51 : f32 to vector<16x32xf32>
    %107 = arith.maximumf %105, %106 : vector<16x32xf32>
    %108 = vector.extract_strided_slice %16 {offsets = [3, 0], sizes = [1, 32], strides = [1, 1]} : vector<8x32xf32> to vector<1x32xf32>
    %109 = vector.shape_cast %108 : vector<1x32xf32> to vector<32xf32>
    %110 = arith.truncf %107 : vector<16x32xf32> to vector<16x32xbf16>
    %cst_52 = arith.constant dense<0.000000e+00> : vector<16x96xf32>
    %111 = tpu.matmul %110, %5, %cst_52 {dimension_numbers = #tpu.dot_dimension_numbers<[1], [0], [0], [1], [0, 0, 1, 1], [], []>} : vector<16x32xbf16>, vector<32x96xbf16>, vector<16x96xf32> -> vector<16x96xf32>
    %112 = arith.truncf %18 : vector<16x32xf32> to vector<16x32xbf16>
    %cst_53 = arith.constant dense<0.000000e+00> : vector<16x64xf32>
    %113 = tpu.matmul %112, %6, %cst_53 {dimension_numbers = #tpu.dot_dimension_numbers<[1], [0], [0], [1], [0, 0, 1, 1], [], []>} : vector<16x32xbf16>, vector<32x64xbf16>, vector<16x64xf32> -> vector<16x64xf32>
    %114 = vector.extract_strided_slice %111 {offsets = [0, 0], sizes = [16, 32], strides = [1, 1]} : vector<16x96xf32> to vector<16x32xf32>
    %115 = vector.extract_strided_slice %113 {offsets = [0, 0], sizes = [16, 32], strides = [1, 1]} : vector<16x64xf32> to vector<16x32xf32>
    %116 = arith.addf %114, %115 : vector<16x32xf32>
    %117 = arith.negf %116 : vector<16x32xf32>
    %118 = math.exp %117 : vector<16x32xf32>
    %cst_54 = arith.constant 1.000000e+00 : f32
    %119 = vector.broadcast %cst_54 : f32 to vector<16x32xf32>
    %120 = arith.addf %119, %118 : vector<16x32xf32>
    %121 = arith.divf %119, %120 : vector<16x32xf32>
    %122 = vector.extract_strided_slice %111 {offsets = [0, 32], sizes = [16, 32], strides = [1, 1]} : vector<16x96xf32> to vector<16x32xf32>
    %123 = vector.extract_strided_slice %113 {offsets = [0, 32], sizes = [16, 32], strides = [1, 1]} : vector<16x64xf32> to vector<16x32xf32>
    %124 = arith.addf %122, %123 : vector<16x32xf32>
    %125 = vector.shape_cast %109 : vector<32xf32> to vector<1x32xf32>
    %126 = vector.broadcast %125 : vector<1x32xf32> to vector<16x32xf32>
    %127 = arith.subf %124, %126 : vector<16x32xf32>
    %128 = arith.negf %127 : vector<16x32xf32>
    %129 = math.exp %128 : vector<16x32xf32>
    %cst_55 = arith.constant 1.000000e+00 : f32
    %130 = vector.broadcast %cst_55 : f32 to vector<16x32xf32>
    %131 = arith.addf %130, %129 : vector<16x32xf32>
    %132 = arith.divf %130, %131 : vector<16x32xf32>
    %133 = vector.extract_strided_slice %111 {offsets = [0, 64], sizes = [16, 32], strides = [1, 1]} : vector<16x96xf32> to vector<16x32xf32>
    %134 = arith.mulf %121, %18 : vector<16x32xf32>
    %135 = arith.truncf %134 : vector<16x32xf32> to vector<16x32xbf16>
    %cst_56 = arith.constant dense<0.000000e+00> : vector<16x32xf32>
    %136 = tpu.matmul %135, %7, %cst_56 {dimension_numbers = #tpu.dot_dimension_numbers<[1], [0], [0], [1], [0, 0, 1, 1], [], []>} : vector<16x32xbf16>, vector<32x32xbf16>, vector<16x32xf32> -> vector<16x32xf32>
    %137 = arith.addf %133, %136 : vector<16x32xf32>
    %138 = math.tanh %137 : vector<16x32xf32>
    %cst_57 = arith.constant 1.000000e+00 : f32
    %139 = vector.broadcast %cst_57 : f32 to vector<16x32xf32>
    %140 = arith.subf %139, %132 : vector<16x32xf32>
    %141 = arith.mulf %140, %18 : vector<16x32xf32>
    %142 = arith.mulf %132, %138 : vector<16x32xf32>
    %143 = arith.addf %141, %142 : vector<16x32xf32>
    %cst_58 = arith.constant dense<0.000000e+00> : vector<16xf32>
    %144 = vector.multi_reduction <add>, %20, %cst_58 [1] : vector<16x32xf32> to vector<16xf32>
    %145 = vector.shape_cast %144 : vector<16xf32> to vector<16x1xf32>
    %cst_59 = arith.constant 3.200000e+01 : f32
    %146 = vector.broadcast %cst_59 : f32 to vector<16x1xf32>
    %147 = arith.divf %145, %146 : vector<16x1xf32>
    %148 = vector.broadcast %147 : vector<16x1xf32> to vector<16x32xf32>
    %149 = arith.subf %20, %148 : vector<16x32xf32>
    %150 = arith.mulf %149, %149 : vector<16x32xf32>
    %cst_60 = arith.constant dense<0.000000e+00> : vector<16xf32>
    %151 = vector.multi_reduction <add>, %150, %cst_60 [1] : vector<16x32xf32> to vector<16xf32>
    %152 = vector.shape_cast %151 : vector<16xf32> to vector<16x1xf32>
    %cst_61 = arith.constant 3.200000e+01 : f32
    %153 = vector.broadcast %cst_61 : f32 to vector<16x1xf32>
    %154 = arith.divf %152, %153 : vector<16x1xf32>
    %155 = vector.broadcast %147 : vector<16x1xf32> to vector<16x32xf32>
    %156 = arith.subf %20, %155 : vector<16x32xf32>
    %cst_62 = arith.constant 9.99999974E-6 : f32
    %157 = vector.broadcast %cst_62 : f32 to vector<16x1xf32>
    %158 = arith.addf %154, %157 : vector<16x1xf32>
    %159 = math.rsqrt %158 : vector<16x1xf32>
    %160 = vector.broadcast %159 : vector<16x1xf32> to vector<16x32xf32>
    %161 = arith.mulf %156, %160 : vector<16x32xf32>
    %162 = vector.shape_cast %22 : vector<32xf32> to vector<1x32xf32>
    %163 = vector.broadcast %162 : vector<1x32xf32> to vector<16x32xf32>
    %164 = arith.mulf %161, %163 : vector<16x32xf32>
    %165 = vector.shape_cast %24 : vector<32xf32> to vector<1x32xf32>
    %166 = vector.broadcast %165 : vector<1x32xf32> to vector<16x32xf32>
    %167 = arith.addf %164, %166 : vector<16x32xf32>
    %168 = arith.truncf %143 : vector<16x32xf32> to vector<16x32xbf16>
    %cst_63 = arith.constant dense<0.000000e+00> : vector<16x32xf32>
    %169 = tpu.matmul %168, %2, %cst_63 {dimension_numbers = #tpu.dot_dimension_numbers<[1], [0], [0], [1], [0, 0, 1, 1], [], []>} : vector<16x32xbf16>, vector<32x32xbf16>, vector<16x32xf32> -> vector<16x32xf32>
    %170 = vector.extract_strided_slice %16 {offsets = [1, 0], sizes = [1, 32], strides = [1, 1]} : vector<8x32xf32> to vector<1x32xf32>
    %171 = vector.shape_cast %170 : vector<1x32xf32> to vector<32xf32>
    %172 = vector.shape_cast %171 : vector<32xf32> to vector<1x32xf32>
    %173 = vector.broadcast %172 : vector<1x32xf32> to vector<16x32xf32>
    %174 = arith.addf %169, %173 : vector<16x32xf32>
    %175 = arith.truncf %167 : vector<16x32xf32> to vector<16x32xbf16>
    %cst_64 = arith.constant dense<0.000000e+00> : vector<16x64xf32>
    %176 = tpu.matmul %175, %3, %cst_64 {dimension_numbers = #tpu.dot_dimension_numbers<[1], [0], [0], [1], [0, 0, 1, 1], [], []>} : vector<16x32xbf16>, vector<32x64xbf16>, vector<16x64xf32> -> vector<16x64xf32>
    %177 = vector.shape_cast %14 : vector<1x64xf32> to vector<64xf32>
    %178 = vector.shape_cast %177 : vector<64xf32> to vector<1x64xf32>
    %179 = vector.broadcast %178 : vector<1x64xf32> to vector<16x64xf32>
    %180 = arith.addf %176, %179 : vector<16x64xf32>
    %181 = vector.extract_strided_slice %180 {offsets = [0, 0], sizes = [16, 32], strides = [1, 1]} : vector<16x64xf32> to vector<16x32xf32>
    %182 = vector.extract_strided_slice %180 {offsets = [0, 32], sizes = [16, 32], strides = [1, 1]} : vector<16x64xf32> to vector<16x32xf32>
    %183 = vector.shape_cast %174 : vector<16x32xf32> to vector<2x8x32xf32>
    %184 = tpu.transpose %183, [0, 2, 1] : vector<2x8x32xf32> -> vector<2x32x8xf32>
    %185 = vector.shape_cast %184 : vector<2x32x8xf32> to vector<8x8x8xf32>
    %186 = tpu.transpose %185, [0, 2, 1] : vector<8x8x8xf32> -> vector<8x8x8xf32>
    %187 = arith.truncf %186 : vector<8x8x8xf32> to vector<8x8x8xbf16>
    %188 = vector.shape_cast %181 : vector<16x32xf32> to vector<2x8x32xf32>
    %189 = tpu.transpose %188, [0, 2, 1] : vector<2x8x32xf32> -> vector<2x32x8xf32>
    %190 = vector.shape_cast %189 : vector<2x32x8xf32> to vector<8x8x8xf32>
    %191 = tpu.transpose %190, [0, 2, 1] : vector<8x8x8xf32> -> vector<8x8x8xf32>
    %192 = arith.truncf %191 : vector<8x8x8xf32> to vector<8x8x8xbf16>
    %193 = vector.shape_cast %182 : vector<16x32xf32> to vector<2x8x32xf32>
    %194 = tpu.transpose %193, [0, 2, 1] : vector<2x8x32xf32> -> vector<2x32x8xf32>
    %195 = vector.shape_cast %194 : vector<2x32x8xf32> to vector<8x8x8xf32>
    %196 = tpu.transpose %195, [0, 2, 1] : vector<8x8x8xf32> -> vector<8x8x8xf32>
    %197 = arith.truncf %196 : vector<8x8x8xf32> to vector<8x8x8xbf16>
    "tpu.trace_start"() <{level = 10 : i32, message = "bqd,bkd->bqk"}> : () -> ()
    %cst_65 = arith.constant dense<0.000000e+00> : vector<8x8x8xf32>
    %198 = tpu.matmul %187, %192, %cst_65 {dimension_numbers = #tpu.dot_dimension_numbers<[2], [2], [1], [1], [0, 0, 0, 1, 1, 1], [0], [0]>} : vector<8x8x8xbf16>, vector<8x8x8xbf16>, vector<8x8x8xf32> -> vector<8x8x8xf32>
    "tpu.trace_stop"() : () -> ()
    %cst_66 = arith.constant 0.353553385 : f32
    %199 = vector.broadcast %cst_66 : f32 to vector<8x8x8xf32>
    %200 = arith.mulf %198, %199 : vector<8x8x8xf32>
    %cst_67 = arith.constant dense<0xFF800000> : vector<8x8xf32>
    %201 = vector.multi_reduction <maximumf>, %200, %cst_67 [2] : vector<8x8x8xf32> to vector<8x8xf32>
    %202 = vector.shape_cast %201 : vector<8x8xf32> to vector<8x8x1xf32>
    %203 = vector.broadcast %202 : vector<8x8x1xf32> to vector<8x8x8xf32>
    %204 = arith.subf %200, %203 : vector<8x8x8xf32>
    %205 = math.exp %204 : vector<8x8x8xf32>
    %cst_68 = arith.constant dense<0.000000e+00> : vector<8x8xf32>
    %206 = vector.multi_reduction <add>, %205, %cst_68 [2] : vector<8x8x8xf32> to vector<8x8xf32>
    %207 = vector.shape_cast %206 : vector<8x8xf32> to vector<8x8x1xf32>
    %208 = tpu.reciprocal %207 {approx = true} : vector<8x8x1xf32> -> vector<8x8x1xf32>
    %209 = vector.broadcast %208 : vector<8x8x1xf32> to vector<8x8x8xf32>
    %210 = arith.mulf %205, %209 : vector<8x8x8xf32>
    %211 = arith.truncf %210 : vector<8x8x8xf32> to vector<8x8x8xbf16>
    "tpu.trace_start"() <{level = 10 : i32, message = "bqk,bkd->bqd"}> : () -> ()
    %cst_69 = arith.constant dense<0.000000e+00> : vector<8x8x8xf32>
    %212 = tpu.matmul %211, %197, %cst_69 {dimension_numbers = #tpu.dot_dimension_numbers<[2], [1], [1], [2], [0, 0, 0, 1, 1, 2], [0], [0]>} : vector<8x8x8xbf16>, vector<8x8x8xbf16>, vector<8x8x8xf32> -> vector<8x8x8xf32>
    "tpu.trace_stop"() : () -> ()
    %213 = tpu.transpose %212, [0, 2, 1] : vector<8x8x8xf32> -> vector<8x8x8xf32>
    %214 = vector.shape_cast %213 : vector<8x8x8xf32> to vector<2x32x8xf32>
    %215 = tpu.transpose %214, [0, 2, 1] : vector<2x32x8xf32> -> vector<2x8x32xf32>
    %216 = vector.shape_cast %215 : vector<2x8x32xf32> to vector<16x32xf32>
    %217 = arith.truncf %216 : vector<16x32xf32> to vector<16x32xbf16>
    %cst_70 = arith.constant dense<0.000000e+00> : vector<16x32xf32>
    %218 = tpu.matmul %217, %4, %cst_70 {dimension_numbers = #tpu.dot_dimension_numbers<[1], [0], [0], [1], [0, 0, 1, 1], [], []>} : vector<16x32xbf16>, vector<32x32xbf16>, vector<16x32xf32> -> vector<16x32xf32>
    %219 = vector.extract_strided_slice %16 {offsets = [2, 0], sizes = [1, 32], strides = [1, 1]} : vector<8x32xf32> to vector<1x32xf32>
    %220 = vector.shape_cast %219 : vector<1x32xf32> to vector<32xf32>
    %221 = vector.shape_cast %220 : vector<32xf32> to vector<1x32xf32>
    %222 = vector.broadcast %221 : vector<1x32xf32> to vector<16x32xf32>
    %223 = arith.addf %218, %222 : vector<16x32xf32>
    %cst_71 = arith.constant 0.000000e+00 : f32
    %224 = vector.broadcast %cst_71 : f32 to vector<16x32xf32>
    %225 = arith.maximumf %223, %224 : vector<16x32xf32>
    %226 = vector.extract_strided_slice %16 {offsets = [4, 0], sizes = [1, 32], strides = [1, 1]} : vector<8x32xf32> to vector<1x32xf32>
    %227 = vector.shape_cast %226 : vector<1x32xf32> to vector<32xf32>
    %228 = arith.truncf %225 : vector<16x32xf32> to vector<16x32xbf16>
    %cst_72 = arith.constant dense<0.000000e+00> : vector<16x96xf32>
    %229 = tpu.matmul %228, %8, %cst_72 {dimension_numbers = #tpu.dot_dimension_numbers<[1], [0], [0], [1], [0, 0, 1, 1], [], []>} : vector<16x32xbf16>, vector<32x96xbf16>, vector<16x96xf32> -> vector<16x96xf32>
    %230 = arith.truncf %143 : vector<16x32xf32> to vector<16x32xbf16>
    %cst_73 = arith.constant dense<0.000000e+00> : vector<16x64xf32>
    %231 = tpu.matmul %230, %9, %cst_73 {dimension_numbers = #tpu.dot_dimension_numbers<[1], [0], [0], [1], [0, 0, 1, 1], [], []>} : vector<16x32xbf16>, vector<32x64xbf16>, vector<16x64xf32> -> vector<16x64xf32>
    %232 = vector.extract_strided_slice %229 {offsets = [0, 0], sizes = [16, 32], strides = [1, 1]} : vector<16x96xf32> to vector<16x32xf32>
    %233 = vector.extract_strided_slice %231 {offsets = [0, 0], sizes = [16, 32], strides = [1, 1]} : vector<16x64xf32> to vector<16x32xf32>
    %234 = arith.addf %232, %233 : vector<16x32xf32>
    %235 = arith.negf %234 : vector<16x32xf32>
    %236 = math.exp %235 : vector<16x32xf32>
    %cst_74 = arith.constant 1.000000e+00 : f32
    %237 = vector.broadcast %cst_74 : f32 to vector<16x32xf32>
    %238 = arith.addf %237, %236 : vector<16x32xf32>
    %239 = arith.divf %237, %238 : vector<16x32xf32>
    %240 = vector.extract_strided_slice %229 {offsets = [0, 32], sizes = [16, 32], strides = [1, 1]} : vector<16x96xf32> to vector<16x32xf32>
    %241 = vector.extract_strided_slice %231 {offsets = [0, 32], sizes = [16, 32], strides = [1, 1]} : vector<16x64xf32> to vector<16x32xf32>
    %242 = arith.addf %240, %241 : vector<16x32xf32>
    %243 = vector.shape_cast %227 : vector<32xf32> to vector<1x32xf32>
    %244 = vector.broadcast %243 : vector<1x32xf32> to vector<16x32xf32>
    %245 = arith.subf %242, %244 : vector<16x32xf32>
    %246 = arith.negf %245 : vector<16x32xf32>
    %247 = math.exp %246 : vector<16x32xf32>
    %cst_75 = arith.constant 1.000000e+00 : f32
    %248 = vector.broadcast %cst_75 : f32 to vector<16x32xf32>
    %249 = arith.addf %248, %247 : vector<16x32xf32>
    %250 = arith.divf %248, %249 : vector<16x32xf32>
    %251 = vector.extract_strided_slice %229 {offsets = [0, 64], sizes = [16, 32], strides = [1, 1]} : vector<16x96xf32> to vector<16x32xf32>
    %252 = arith.mulf %239, %143 : vector<16x32xf32>
    %253 = arith.truncf %252 : vector<16x32xf32> to vector<16x32xbf16>
    %cst_76 = arith.constant dense<0.000000e+00> : vector<16x32xf32>
    %254 = tpu.matmul %253, %10, %cst_76 {dimension_numbers = #tpu.dot_dimension_numbers<[1], [0], [0], [1], [0, 0, 1, 1], [], []>} : vector<16x32xbf16>, vector<32x32xbf16>, vector<16x32xf32> -> vector<16x32xf32>
    %255 = arith.addf %251, %254 : vector<16x32xf32>
    %256 = math.tanh %255 : vector<16x32xf32>
    %cst_77 = arith.constant 1.000000e+00 : f32
    %257 = vector.broadcast %cst_77 : f32 to vector<16x32xf32>
    %258 = arith.subf %257, %250 : vector<16x32xf32>
    %259 = arith.mulf %258, %143 : vector<16x32xf32>
    %260 = arith.mulf %250, %256 : vector<16x32xf32>
    %261 = arith.addf %259, %260 : vector<16x32xf32>
    %cst_78 = arith.constant dense<0.000000e+00> : vector<16xf32>
    %262 = vector.multi_reduction <add>, %261, %cst_78 [1] : vector<16x32xf32> to vector<16xf32>
    %263 = vector.shape_cast %262 : vector<16xf32> to vector<16x1xf32>
    %cst_79 = arith.constant 3.200000e+01 : f32
    %264 = vector.broadcast %cst_79 : f32 to vector<16x1xf32>
    %265 = arith.divf %263, %264 : vector<16x1xf32>
    %266 = vector.broadcast %265 : vector<16x1xf32> to vector<16x32xf32>
    %267 = arith.subf %261, %266 : vector<16x32xf32>
    %268 = arith.mulf %267, %267 : vector<16x32xf32>
    %cst_80 = arith.constant dense<0.000000e+00> : vector<16xf32>
    %269 = vector.multi_reduction <add>, %268, %cst_80 [1] : vector<16x32xf32> to vector<16xf32>
    %270 = vector.shape_cast %269 : vector<16xf32> to vector<16x1xf32>
    %cst_81 = arith.constant 3.200000e+01 : f32
    %271 = vector.broadcast %cst_81 : f32 to vector<16x1xf32>
    %272 = arith.divf %270, %271 : vector<16x1xf32>
    %273 = vector.broadcast %265 : vector<16x1xf32> to vector<16x32xf32>
    %274 = arith.subf %261, %273 : vector<16x32xf32>
    %cst_82 = arith.constant 9.99999974E-6 : f32
    %275 = vector.broadcast %cst_82 : f32 to vector<16x1xf32>
    %276 = arith.addf %272, %275 : vector<16x1xf32>
    %277 = math.rsqrt %276 : vector<16x1xf32>
    %278 = vector.broadcast %277 : vector<16x1xf32> to vector<16x32xf32>
    %279 = arith.mulf %274, %278 : vector<16x32xf32>
    %280 = vector.shape_cast %22 : vector<32xf32> to vector<1x32xf32>
    %281 = vector.broadcast %280 : vector<1x32xf32> to vector<16x32xf32>
    %282 = arith.mulf %279, %281 : vector<16x32xf32>
    %283 = vector.shape_cast %24 : vector<32xf32> to vector<1x32xf32>
    %284 = vector.broadcast %283 : vector<1x32xf32> to vector<16x32xf32>
    %285 = arith.addf %282, %284 : vector<16x32xf32>
    %286 = arith.truncf %285 : vector<16x32xf32> to vector<16x32xbf16>
    %cst_83 = arith.constant dense<0.000000e+00> : vector<16x64xf32>
    %287 = tpu.matmul %286, %11, %cst_83 {dimension_numbers = #tpu.dot_dimension_numbers<[1], [0], [0], [1], [0, 0, 1, 1], [], []>} : vector<16x32xbf16>, vector<32x64xbf16>, vector<16x64xf32> -> vector<16x64xf32>
    %288 = vector.shape_cast %15 : vector<1x64xf32> to vector<64xf32>
    %289 = vector.shape_cast %288 : vector<64xf32> to vector<1x64xf32>
    %290 = vector.broadcast %289 : vector<1x64xf32> to vector<16x64xf32>
    %291 = arith.addf %287, %290 : vector<16x64xf32>
    %cst_84 = arith.constant 0.000000e+00 : f32
    %292 = vector.broadcast %cst_84 : f32 to vector<16x64xf32>
    %293 = arith.maximumf %291, %292 : vector<16x64xf32>
    %294 = arith.truncf %293 : vector<16x64xf32> to vector<16x64xbf16>
    %cst_85 = arith.constant dense<0.000000e+00> : vector<16x32xf32>
    %295 = tpu.matmul %294, %12, %cst_85 {dimension_numbers = #tpu.dot_dimension_numbers<[1], [0], [0], [1], [0, 0, 1, 1], [], []>} : vector<16x64xbf16>, vector<64x32xbf16>, vector<16x32xf32> -> vector<16x32xf32>
    %296 = vector.extract_strided_slice %16 {offsets = [7, 0], sizes = [1, 32], strides = [1, 1]} : vector<8x32xf32> to vector<1x32xf32>
    %297 = vector.shape_cast %296 : vector<1x32xf32> to vector<32xf32>
    %298 = vector.shape_cast %297 : vector<32xf32> to vector<1x32xf32>
    %299 = vector.broadcast %298 : vector<1x32xf32> to vector<16x32xf32>
    %300 = arith.addf %295, %299 : vector<16x32xf32>
    %cst_86 = arith.constant 0.000000e+00 : f32
    %301 = vector.broadcast %cst_86 : f32 to vector<16x32xf32>
    %302 = arith.maximumf %300, %301 : vector<16x32xf32>
    %303 = vector.extract_strided_slice %16 {offsets = [4, 0], sizes = [1, 32], strides = [1, 1]} : vector<8x32xf32> to vector<1x32xf32>
    %304 = vector.shape_cast %303 : vector<1x32xf32> to vector<32xf32>
    %305 = arith.truncf %302 : vector<16x32xf32> to vector<16x32xbf16>
    %cst_87 = arith.constant dense<0.000000e+00> : vector<16x96xf32>
    %306 = tpu.matmul %305, %8, %cst_87 {dimension_numbers = #tpu.dot_dimension_numbers<[1], [0], [0], [1], [0, 0, 1, 1], [], []>} : vector<16x32xbf16>, vector<32x96xbf16>, vector<16x96xf32> -> vector<16x96xf32>
    %307 = arith.truncf %261 : vector<16x32xf32> to vector<16x32xbf16>
    %cst_88 = arith.constant dense<0.000000e+00> : vector<16x64xf32>
    %308 = tpu.matmul %307, %9, %cst_88 {dimension_numbers = #tpu.dot_dimension_numbers<[1], [0], [0], [1], [0, 0, 1, 1], [], []>} : vector<16x32xbf16>, vector<32x64xbf16>, vector<16x64xf32> -> vector<16x64xf32>
    %309 = vector.extract_strided_slice %306 {offsets = [0, 0], sizes = [16, 32], strides = [1, 1]} : vector<16x96xf32> to vector<16x32xf32>
    %310 = vector.extract_strided_slice %308 {offsets = [0, 0], sizes = [16, 32], strides = [1, 1]} : vector<16x64xf32> to vector<16x32xf32>
    %311 = arith.addf %309, %310 : vector<16x32xf32>
    %312 = arith.negf %311 : vector<16x32xf32>
    %313 = math.exp %312 : vector<16x32xf32>
    %cst_89 = arith.constant 1.000000e+00 : f32
    %314 = vector.broadcast %cst_89 : f32 to vector<16x32xf32>
    %315 = arith.addf %314, %313 : vector<16x32xf32>
    %316 = arith.divf %314, %315 : vector<16x32xf32>
    %317 = vector.extract_strided_slice %306 {offsets = [0, 32], sizes = [16, 32], strides = [1, 1]} : vector<16x96xf32> to vector<16x32xf32>
    %318 = vector.extract_strided_slice %308 {offsets = [0, 32], sizes = [16, 32], strides = [1, 1]} : vector<16x64xf32> to vector<16x32xf32>
    %319 = arith.addf %317, %318 : vector<16x32xf32>
    %320 = vector.shape_cast %304 : vector<32xf32> to vector<1x32xf32>
    %321 = vector.broadcast %320 : vector<1x32xf32> to vector<16x32xf32>
    %322 = arith.subf %319, %321 : vector<16x32xf32>
    %323 = arith.negf %322 : vector<16x32xf32>
    %324 = math.exp %323 : vector<16x32xf32>
    %cst_90 = arith.constant 1.000000e+00 : f32
    %325 = vector.broadcast %cst_90 : f32 to vector<16x32xf32>
    %326 = arith.addf %325, %324 : vector<16x32xf32>
    %327 = arith.divf %325, %326 : vector<16x32xf32>
    %328 = vector.extract_strided_slice %306 {offsets = [0, 64], sizes = [16, 32], strides = [1, 1]} : vector<16x96xf32> to vector<16x32xf32>
    %329 = arith.mulf %316, %261 : vector<16x32xf32>
    %330 = arith.truncf %329 : vector<16x32xf32> to vector<16x32xbf16>
    %cst_91 = arith.constant dense<0.000000e+00> : vector<16x32xf32>
    %331 = tpu.matmul %330, %10, %cst_91 {dimension_numbers = #tpu.dot_dimension_numbers<[1], [0], [0], [1], [0, 0, 1, 1], [], []>} : vector<16x32xbf16>, vector<32x32xbf16>, vector<16x32xf32> -> vector<16x32xf32>
    %332 = arith.addf %328, %331 : vector<16x32xf32>
    %333 = math.tanh %332 : vector<16x32xf32>
    %cst_92 = arith.constant 1.000000e+00 : f32
    %334 = vector.broadcast %cst_92 : f32 to vector<16x32xf32>
    %335 = arith.subf %334, %327 : vector<16x32xf32>
    %336 = arith.mulf %335, %261 : vector<16x32xf32>
    %337 = arith.mulf %327, %333 : vector<16x32xf32>
    %338 = arith.addf %336, %337 : vector<16x32xf32>
    %339 = vector.shape_cast %338 : vector<16x32xf32> to vector<2x8x32xf32>
    %c0_93 = arith.constant 0 : index
    %c0_94 = arith.constant 0 : index
    %c0_95 = arith.constant 0 : index
    %340 = vector.load %arg20[%c0_93, %c0_94, %c0_95] : memref<2x8x32xf32, #tpu.memory_space<vmem>>, vector<2x8x32xf32>
    tpu.vector_store %arg20[%c0_93, %c0_94, %c0_95], %339 {strides = array<i32>} : memref<2x8x32xf32, #tpu.memory_space<vmem>>, vector<2x8x32xf32>,
    return
  }
  func.func @transform_0(%arg0: i32) -> (i32, i32, i32) {
    %c0_i32 = arith.constant 0 : i32
    %c0_i32_0 = arith.constant 0 : i32
    %c0_i32_1 = arith.constant 0 : i32
    return %arg0, %c0_i32, %c0_i32_0 : i32, i32, i32
  }
  func.func @transform_1(%arg0: i32) -> (i32, i32, i32) {
    %c0_i32 = arith.constant 0 : i32
    %c0_i32_0 = arith.constant 0 : i32
    %c0_i32_1 = arith.constant 0 : i32
    return %arg0, %c0_i32, %c0_i32_0 : i32, i32, i32
  }
  func.func @transform_2(%arg0: i32) -> (i32, i32) {
    %c0_i32 = arith.constant 0 : i32
    %c0_i32_0 = arith.constant 0 : i32
    %c0_i32_1 = arith.constant 0 : i32
    return %c0_i32, %c0_i32_0 : i32, i32
  }
  func.func @transform_3(%arg0: i32) -> (i32, i32) {
    %c0_i32 = arith.constant 0 : i32
    %c0_i32_0 = arith.constant 0 : i32
    %c0_i32_1 = arith.constant 0 : i32
    return %c0_i32, %c0_i32_0 : i32, i32
  }
  func.func @transform_4(%arg0: i32) -> (i32, i32) {
    %c0_i32 = arith.constant 0 : i32
    %c0_i32_0 = arith.constant 0 : i32
    %c0_i32_1 = arith.constant 0 : i32
    return %c0_i32, %c0_i32_0 : i32, i32
  }
  func.func @transform_5(%arg0: i32) -> (i32, i32) {
    %c0_i32 = arith.constant 0 : i32
    %c0_i32_0 = arith.constant 0 : i32
    %c0_i32_1 = arith.constant 0 : i32
    return %c0_i32, %c0_i32_0 : i32, i32
  }
  func.func @transform_6(%arg0: i32) -> (i32, i32) {
    %c0_i32 = arith.constant 0 : i32
    %c0_i32_0 = arith.constant 0 : i32
    %c0_i32_1 = arith.constant 0 : i32
    return %c0_i32, %c0_i32_0 : i32, i32
  }
  func.func @transform_7(%arg0: i32) -> (i32, i32) {
    %c0_i32 = arith.constant 0 : i32
    %c0_i32_0 = arith.constant 0 : i32
    %c0_i32_1 = arith.constant 0 : i32
    return %c0_i32, %c0_i32_0 : i32, i32
  }
  func.func @transform_8(%arg0: i32) -> (i32, i32) {
    %c0_i32 = arith.constant 0 : i32
    %c0_i32_0 = arith.constant 0 : i32
    %c0_i32_1 = arith.constant 0 : i32
    return %c0_i32, %c0_i32_0 : i32, i32
  }
  func.func @transform_9(%arg0: i32) -> (i32, i32) {
    %c0_i32 = arith.constant 0 : i32
    %c0_i32_0 = arith.constant 0 : i32
    %c0_i32_1 = arith.constant 0 : i32
    return %c0_i32, %c0_i32_0 : i32, i32
  }
  func.func @transform_10(%arg0: i32) -> (i32, i32) {
    %c0_i32 = arith.constant 0 : i32
    %c0_i32_0 = arith.constant 0 : i32
    %c0_i32_1 = arith.constant 0 : i32
    return %c0_i32, %c0_i32_0 : i32, i32
  }
  func.func @transform_11(%arg0: i32) -> (i32, i32) {
    %c0_i32 = arith.constant 0 : i32
    %c0_i32_0 = arith.constant 0 : i32
    %c0_i32_1 = arith.constant 0 : i32
    return %c0_i32, %c0_i32_0 : i32, i32
  }
  func.func @transform_12(%arg0: i32) -> (i32, i32) {
    %c0_i32 = arith.constant 0 : i32
    %c0_i32_0 = arith.constant 0 : i32
    %c0_i32_1 = arith.constant 0 : i32
    return %c0_i32, %c0_i32_0 : i32, i32
  }
  func.func @transform_13(%arg0: i32) -> (i32, i32) {
    %c0_i32 = arith.constant 0 : i32
    %c0_i32_0 = arith.constant 0 : i32
    %c0_i32_1 = arith.constant 0 : i32
    return %c0_i32, %c0_i32_0 : i32, i32
  }
  func.func @transform_14(%arg0: i32) -> (i32, i32) {
    %c0_i32 = arith.constant 0 : i32
    %c0_i32_0 = arith.constant 0 : i32
    %c0_i32_1 = arith.constant 0 : i32
    return %c0_i32, %c0_i32_0 : i32, i32
  }
  func.func @transform_15(%arg0: i32) -> (i32, i32) {
    %c0_i32 = arith.constant 0 : i32
    %c0_i32_0 = arith.constant 0 : i32
    %c0_i32_1 = arith.constant 0 : i32
    return %c0_i32, %c0_i32_0 : i32, i32
  }
  func.func @transform_16(%arg0: i32) -> (i32, i32) {
    %c0_i32 = arith.constant 0 : i32
    %c0_i32_0 = arith.constant 0 : i32
    %c0_i32_1 = arith.constant 0 : i32
    return %c0_i32, %c0_i32_0 : i32, i32
  }
  func.func @transform_17(%arg0: i32) -> (i32, i32) {
    %c0_i32 = arith.constant 0 : i32
    %c0_i32_0 = arith.constant 0 : i32
    %c0_i32_1 = arith.constant 0 : i32
    return %c0_i32, %c0_i32_0 : i32, i32
  }
  func.func @transform_18(%arg0: i32) -> (i32, i32) {
    %c0_i32 = arith.constant 0 : i32
    %c0_i32_0 = arith.constant 0 : i32
    %c0_i32_1 = arith.constant 0 : i32
    return %c0_i32, %c0_i32_0 : i32, i32
  }
  func.func @transform_19(%arg0: i32) -> (i32, i32, i32) {
    %c0_i32 = arith.constant 0 : i32
    %c0_i32_0 = arith.constant 0 : i32
    %c0_i32_1 = arith.constant 0 : i32
    return %arg0, %c0_i32, %c0_i32_0 : i32, i32, i32
  }
}

</mosaic_0001>

<bundles_post_ra>
// kernel: tpu_custom_call.1
= control target key start
LH: loop header
LB: loop body
LE: loop exit
PB: predicated region body
PF: predicated region fallthrough
CT: control target
= control target key end

     0   :  { %s6510_s0 = inlined_call_operand.vmem [shape: f32[2,8,32], index: 0, kind: input, shape index: {}]   ;;  %s6511_s1 = inlined_call_operand.vmem [shape: f32[2,8,32], index: 1, kind: input, shape index: {}]   ;;  %s6512_s2 = inlined_call_operand.vmem [shape: bf16[32,96], index: 2, kind: input, shape index: {}]   ;;  %s6513_s3 = inlined_call_operand.hbm [shape: bf16[32,32], index: 3, kind: input, shape index: {}]   ;;  %s6514_s4 = inlined_call_operand.hbm [shape: bf16[32,32], index: 4, kind: input, shape index: {}]   ;;  %s6515_s5 = inlined_call_operand.hbm [shape: bf16[32,64], index: 5, kind: input, shape index: {}]   ;;  %s6516_s6 = inlined_call_operand.hbm [shape: bf16[32,32], index: 6, kind: input, shape index: {}]   ;;  %s6517_s7 = inlined_call_operand.hbm [shape: bf16[32,96], index: 7, kind: input, shape index: {}]   ;;  %s6518_s8 = inlined_call_operand.hbm [shape: bf16[32,64], index: 8, kind: input, shape index: {}]   ;;  %s6519_s9 = inlined_call_operand.hbm [shape: bf16[32,32], index: 9, kind: input, shape index: {}]   ;;  %s6520_s10 = inlined_call_operand.hbm [shape: bf16[32,96], index: 10, kind: input, shape index: {}]   ;;  %s6521_s11 = inlined_call_operand.hbm [shape: bf16[32,64], index: 11, kind: input, shape index: {}]   ;;  %s6522_s12 = inlined_call_operand.hbm [shape: bf16[32,32], index: 12, kind: input, shape index: {}]   ;;  %s6523_s13 = inlined_call_operand.hbm [shape: bf16[32,64], index: 13, kind: input, shape index: {}]   ;;  %s6524_s14 = inlined_call_operand.vmem [shape: bf16[64,32], index: 14, kind: input, shape index: {}]   ;;  %s6525_s15 = inlined_call_operand.vmem [shape: f32[1,96], index: 15, kind: input, shape index: {}]   ;;  %s6526_s16 = inlined_call_operand.vmem [shape: f32[1,64], index: 16, kind: input, shape index: {}]   ;;  %s6527_s17 = inlined_call_operand.vmem [shape: f32[1,64], index: 17, kind: input, shape index: {}]   ;;  %s6528_s18 = inlined_call_operand.vmem [shape: f32[8,32], index: 18, kind: input, shape index: {}]   ;;  %s6529_s19 = inlined_call_operand.hbm [shape: f32[2,8,32], index: 19, kind: output, shape index: {}]  }
   0x1   :  { %6533 = sst [smem:[#allocation28_spill]] %s6510_s0 }
   0x2   :  { %6534 = sst [smem:[#allocation29_spill]] %s6511_s1 }
   0x3   :  { %6535 = sst [smem:[#allocation30_spill]] %s6512_s2 }
   0x4   :  { %6536 = sst [smem:[#allocation31_spill]] %s6513_s3 }
   0x5   :  { %24 = vsyncpa [#allocation3], 0 }
   0x6   :  { %25 = vsyncpa [#allocation6], 0 }
   0x7   :  { %26 = vsyncpa [#allocation9], 0 }
   0x8   :  { %27 = vsyncpa [#allocation12], 0 }
   0x9   :  { %28 = vsyncpa [#allocation15], 0 }
   0xa   :  { %29 = vsyncpa [#allocation18], 0 }
   0xb   :  { %30 = vsyncpa [#allocation4], 0  ;;  %s54_s20 = sshll.u32 %s6514_s4, 4  ;;  %s5856_s21 = smov [#allocation5]   ;;  %s55_s20 = int_to_ptr.hbm [resolvable:$true] %s54_s20 }
   0xc   :  { %s56_s1 = sshll.u32 %s5856_s21, 4  ;;  %s80_s23 = sshll.u32 %s6516_s6, 4  ;;  %s57_s1 = int_to_ptr.vmem [resolvable:$true] %s56_s1  ;;  %s81_s23 = int_to_ptr.hbm [resolvable:$true] %s80_s23 }
   0xd   :  { %s5857_s24 = smov 64   ;;  %s5858_s25 = smov 4  }
   0xe   :  { %62 = dma.hbm_to_vmem [thread:$0]  %s55_s20, 256, %s57_s1, [#allocation6], %s5857_s24, %s5857_s24, %s5858_s25  }
   0xf   :  { %s5859_s3 = smov [#allocation8]   ;;  %s106_s4 = sshll.u32 %s6518_s8, 4  ;;  %s107_s4 = int_to_ptr.hbm [resolvable:$true] %s106_s4 }
  0x10   :  { %s82_s26 = sshll.u32 %s5859_s3, 4  ;;  %s132_s0 = sshll.u32 %s6520_s10, 4  ;;  %s83_s26 = int_to_ptr.vmem [resolvable:$true] %s82_s26  ;;  %s133_s0 = int_to_ptr.hbm [resolvable:$true] %s132_s0 }
  0x11   :  { %88 = dma.hbm_to_vmem [thread:$0]  %s81_s23, 256, %s83_s26, [#allocation9], %s5857_s24, %s5857_s24, %s5858_s25  }
  0x12   :  { %s5860_s30 = smov [#allocation11]   ;;  %s5861_s20 = smov [#allocation14]  }
  0x13   :  { %s108_s21 = sshll.u32 %s5860_s30, 4  ;;  %s134_s8 = sshll.u32 %s5861_s20, 4  ;;  %s109_s21 = int_to_ptr.vmem [resolvable:$true] %s108_s21  ;;  %s135_s8 = int_to_ptr.vmem [resolvable:$true] %s134_s8 }
  0x14   :  { %114 = dma.hbm_to_vmem [thread:$0]  %s107_s4, 256, %s109_s21, [#allocation12], %s5857_s24, %s5857_s24, %s5858_s25  }
  0x15   :  { %s158_s2 = sshll.u32 %s6522_s12, 4  ;;  %s6537_s3 = sld [smem:[#allocation31_spill]]  ;;  %s159_s2 = int_to_ptr.hbm [resolvable:$true] %s158_s2 }
  0x16   :  { %140 = dma.hbm_to_vmem [thread:$0]  %s133_s0, 256, %s135_s8, [#allocation15], %s5857_s24, %s5857_s24, %s5858_s25  }
  0x17   :  { %s5862_s27 = smov [#allocation17]   ;;  %s5863_s4 = smov [#allocation2]  }
  0x18   :  { %s160_s28 = sshll.u32 %s5862_s27, 4  ;;  %s43_s12 = sshll.u32 %s5863_s4, 4  ;;  %s161_s28 = int_to_ptr.vmem [resolvable:$true] %s160_s28  ;;  %s44_s12 = int_to_ptr.vmem [resolvable:$true] %s43_s12 }
  0x19   :  { %166 = dma.hbm_to_vmem [thread:$0]  %s159_s2, 256, %s161_s28, [#allocation18], %s5857_s24, %s5857_s24, %s5858_s25  }
  0x1a   :  { %s67_s30 = sshll.u32 %s6515_s5, 4  ;;  %s93_s20 = sshll.u32 %s6517_s7, 4  ;;  %s68_s30 = int_to_ptr.hbm [resolvable:$true] %s67_s30  ;;  %s94_s20 = int_to_ptr.hbm [resolvable:$true] %s93_s20 }
  0x1b   :  { %s41_s26 = sshll.u32 %s6537_s3, 4  ;;  %s5864_s8 = smov [#allocation7]   ;;  %s42_s26 = int_to_ptr.hbm [resolvable:$true] %s41_s26 }
  0x1c   :  { %49 = dma.hbm_to_vmem [thread:$0]  %s42_s26, 256, %s44_s12, [#allocation3], %s5857_s24, %s5857_s24, %s5858_s25  }
  0x1d   :  { %s69_s1 = sshll.u32 %s5864_s8, 4  ;;  %s5865_s22 = smov [#allocation10]   ;;  %s70_s1 = int_to_ptr.vmem [resolvable:$true] %s69_s1 }
  0x1e   :  { %75 = dma.hbm_to_vmem [thread:$0]  %s68_s30, 256, %s70_s1, [#allocation6], %s5857_s24, %s5857_s24, %s5858_s25  }
  0x1f   :  { %s95_s5 = sshll.u32 %s5865_s22, 4  ;;  %s119_s23 = sshll.u32 %s6519_s9, 4  ;;  %s96_s5 = int_to_ptr.vmem [resolvable:$true] %s95_s5  ;;  %s120_s23 = int_to_ptr.hbm [resolvable:$true] %s119_s23 }
  0x20   :  { %101 = dma.hbm_to_vmem [thread:$0]  %s94_s20, 256, %s96_s5, [#allocation9], %s5857_s24, %s5857_s24, %s5858_s25  }
  0x21   :  { %s145_s26 = sshll.u32 %s6521_s11, 4  ;;  %s5866_s27 = smov [#allocation13]   ;;  %s146_s26 = int_to_ptr.hbm [resolvable:$true] %s145_s26 }
  0x22   :  { %s121_s28 = sshll.u32 %s5866_s27, 4  ;;  %s5867_s4 = smov [#allocation16]   ;;  %s122_s28 = int_to_ptr.vmem [resolvable:$true] %s121_s28 }
  0x23   :  { %127 = dma.hbm_to_vmem [thread:$0]  %s120_s23, 256, %s122_s28, [#allocation12], %s5857_s24, %s5857_s24, %s5858_s25  }
  0x24   :  { %s147_s9 = sshll.u32 %s5867_s4, 4  ;;  %s171_s29 = sshll.u32 %s6523_s13, 4  ;;  %s148_s9 = int_to_ptr.vmem [resolvable:$true] %s147_s9  ;;  %s172_s29 = int_to_ptr.hbm [resolvable:$true] %s171_s29 }
  0x25   :  { %153 = dma.hbm_to_vmem [thread:$0]  %s146_s26, 256, %s148_s9, [#allocation15], %s5857_s24, %s5857_s24, %s5858_s25  }
  0x26   :  { %s5868_s11 = smov [#allocation19]  }
  0x27   :  { %s173_s30 = sshll.u32 %s5868_s11, 4  ;;  %s174_s30 = int_to_ptr.vmem [resolvable:$true] %s173_s30 }
  0x28   :  { %179 = dma.hbm_to_vmem [thread:$0]  %s172_s29, 256, %s174_s30, [#allocation18], %s5857_s24, %s5857_s24, %s5858_s25  }
  0x29   :  { %5842 = dma.done.wait [#allocation3], 256  }
  0x2a   :  { %5843 = vsyncadd [#allocation3], 4294967040 }
  0x2b   :  { %5844 = dma.done.wait [#allocation6], 512  }
  0x2c   :  { %5845 = vsyncadd [#allocation6], 4294966784 }
  0x2d   :  { %5846 = dma.done.wait [#allocation9], 512  }
  0x2e   :  { %5847 = vsyncadd [#allocation9], 4294966784 }
  0x2f   :  { %5848 = dma.done.wait [#allocation12], 512  }
  0x30   :  { %5849 = vsyncadd [#allocation12], 4294966784 }
  0x31   :  { %5850 = dma.done.wait [#allocation15], 512  }
  0x32   :  { %5851 = vsyncadd [#allocation15], 4294966784 }
  0x33   :  { %5852 = dma.done.wait [#allocation18], 512  }
  0x34   :  { %5853 = vsyncadd [#allocation18], 4294966784  ;;  %vm299_vm0 = vcmask 261120   ;;  %s6538_s21 = sld [smem:[#allocation28_spill]]  ;;  %v5869_v4 = vmov 32.0   ;;  %v6066_v40 = vld [vmem:[%s6528_s18] sm:$0xff] }
  0x35   :  { %5412 = vrcp.f32 %v5869_v4  ;;  %s6539_s22 = sld [smem:[#allocation30_spill]]  ;;  %v6069_v43 = vperm.slane %v6066_v40, 5  ;;  %v6073_v48 = vperm.slane %v6066_v40, 6  ;;  %v5409_v54 = vld [vmem:[%s6525_s15] ss:$0 sm:$0xff]  ;;  %s5870_s26 = smov 96  }
  0x36   :  { %vm1388_vm8 = vcmask 64512   ;;  %vm1663_vm10 = vcmask 1043456   ;;  %s6542_s6 = sld [smem:[#allocation29_spill]]  ;;  %s5871_s29 = smov 32  }
  0x37   :  { %s4795_s27 = sshll.u32 %s6529_s19, 4  ;;  %s5873_s28 = smov 128   ;;  %s4796_s27 = int_to_ptr.hbm [resolvable:$true] %s4795_s27 }
  0x38   :  { %s5874_s4 = smov 8  }
  0x3a   :  { %v295_v0 = vld [vmem:[%s6538_s21] sm:$0xff]  ;;  %v296_v2 = vld [vmem:[%s6538_s21 + $0x8] sm:$0xff] }
  0x3b   :  { %v300_v1 = vsel %vm299_vm0, %v295_v0, 0.0  ;;  %v303_v3 = vsel %vm299_vm0, %v296_v2, 0.0  ;;  %v5413_v5 = vpop.eup %5412  ;;  %v4986_v21 = vld [vmem:[%s6539_s22 + $0x8] sm:$0xff]  ;;  %v4985_v23 = vld [vmem:[%s6539_s22] sm:$0xff] }
  0x3c   :  { %301 = vadd.xlane.f32.xlu0 %v300_v1  ;;  %v307_v6 = vmul.f32 32.0, %v5413_v5  ;;  %vm311_vm1 = vweird.f32 %v5413_v5  ;;  %382 = vmatpush.bf16.msra.mxu0 %v4986_v21 }
  0x3e   :  { %v308_v7 = vsub.f32 1.0, %v307_v6 }
  0x40   :  { %v309_v8 = vmul.f32 %v5413_v5, %v308_v7  ;;  %383 = vmatpush.bf16.msra.mxu0 %v4985_v23 }
  0x42   :  { %v310_v9 = vadd.f32 %v5413_v5, %v309_v8 }
  0x44   :  { %304 = vadd.xlane.f32.xlu0 %v303_v3  ;;  %v6049_v10 = vsel %vm311_vm1, %v5413_v5, %v310_v9 }
  0xaf   :  { %v302_v11 = vpop.xlane.xlu0 %301 }
  0xb0   :  { %v313_v12 = vmul.f32 %v6049_v10, %v302_v11 }
  0xb2   :  { %v315_v13 = vsub.f32 %v295_v0, %v313_v12 }
  0xb4   :  { %v317_v14 = vmul.f32 %v315_v13, %v315_v13 }
  0xb6   :  { %v319_v15 = vsel %vm299_vm0, %v317_v14, 0.0 }
  0xb7   :  { %320 = vadd.xlane.f32.xlu1 %v319_v15  ;;  %v305_v16 = vpop.xlane.xlu0 %304 }
  0xb8   :  { %v314_v17 = vmul.f32 %v6049_v10, %v305_v16 }
  0xba   :  { %v316_v18 = vsub.f32 %v296_v2, %v314_v17 }
  0xbc   :  { %v318_v19 = vmul.f32 %v316_v18, %v316_v18 }
  0xbe   :  { %v322_v20 = vsel %vm299_vm0, %v318_v19, 0.0 }
  0xbf   :  { %323 = vadd.xlane.f32.xlu1 %v322_v20 }
 0x12a   :  { %v321_v22 = vpop.xlane.xlu1 %320 }
 0x12b   :  { %v325_v24 = vmul.f32 %v321_v22, %v6049_v10 }
 0x12d   :  { %v327_v25 = vadd.f32 1e-05, %v325_v24 }
 0x12f   :  { %5414 = vrsqrt.f32 %v327_v25  ;;  %vm335_vm3 = vweird.f32 %v327_v25 }
 0x132   :  { %v324_v26 = vpop.xlane.xlu1 %323 }
 0x133   :  { %v326_v27 = vmul.f32 %v324_v26, %v6049_v10 }
 0x135   :  { %v5415_v28 = vpop.eup %5414  ;;  %v328_v29 = vadd.f32 1e-05, %v326_v27 }
 0x136   :  { %v330_v30 = vmul.f32 %v5415_v28, %v327_v25  ;;  %vm336_vm2 = vweird.f32 %v5415_v28 }
 0x137   :  { %5416 = vrsqrt.f32 %v328_v29  ;;  %vm337_vm4 = vmor %vm335_vm3, %vm336_vm2  ;;  %vm345_vm6 = vweird.f32 %v328_v29 }
 0x138   :  { %v331_v31 = vmul.f32 %v5415_v28, %v330_v30 }
 0x13a   :  { %v332_v32 = vmul.f32 0.5, %v331_v31 }
 0x13c   :  { %v333_v33 = vsub.f32 1.5, %v332_v32 }
 0x13d   :  { %v5417_v34 = vpop.eup %5416 }
 0x13e   :  { %v334_v35 = vmul.f32 %v5415_v28, %v333_v33  ;;  %v340_v36 = vmul.f32 %v5417_v34, %v328_v29  ;;  %vm346_vm5 = vweird.f32 %v5417_v34 }
 0x13f   :  { %vm347_vm7 = vmor %vm345_vm6, %vm346_vm5 }
 0x140   :  { %v341_v37 = vmul.f32 %v5417_v34, %v340_v36  ;;  %v338_v38 = vsel %vm337_vm4, %v5415_v28, %v334_v35 }
 0x141   :  { %v349_v42 = vmul.f32 %v338_v38, %v315_v13 }
 0x142   :  { %v342_v39 = vmul.f32 0.5, %v341_v37 }
 0x143   :  { %v352_v47 = vmul.f32 %v6069_v43, %v349_v42 }
 0x144   :  { %v343_v41 = vsub.f32 1.5, %v342_v39 }
 0x145   :  { %v355_v50 = vadd.f32 %v6073_v48, %v352_v47 }
 0x146   :  { %v344_v44 = vmul.f32 %v5417_v34, %v343_v41 }
 0x148   :  { %v348_v45 = vsel %vm347_vm7, %v5417_v34, %v344_v44 }
 0x149   :  { %v350_v46 = vmul.f32 %v348_v45, %v316_v18  ;;  %v1549_v45 = vlaneseq }
 0x14b   :  { %v353_v49 = vmul.f32 %v6069_v43, %v350_v46 }
 0x14d   :  { %v356_v51 = vadd.f32 %v6073_v48, %v353_v49 }
 0x14f   :  { %v357_v52 = vpack.c.bf16 %v356_v51, %v355_v50  ;;  %v1550_v51 = vshrl.u32 %v1549_v45, 7 }
 0x151   :  { %4821 = vmatmul.msk.bf16.vlgmr.msra.gmra.mxu0 %vm299_vm0, %v357_v52  ;;  %v1552_v52 = vand.u32 127, %v1549_v45 }
 0x153   :  { %vm6092_vm9 = vcmp.ge.s32.totalorder %v1550_v51, %v1552_v52 }
 0x1ce   :  { %v385_v53 = vpop.f32.mrf.mxu0 }
 0x1cf   :  { %v386_v56 = vadd.f32 %v5409_v54, %v385_v53 }
 0x1d6   :  { %v387_v55 = vpop.f32.mrf.mxu0 }
 0x1d7   :  { %v388_v57 = vadd.f32 %v5409_v54, %v387_v55 }
 0x1d9   :  { %v6082_v58 = vpack.i.bf16 %v388_v57, %v386_v56 }
 0x1db   :  { %5034 = vrot.lane.b32.xlu2 %v6082_v58, %s5870_s26 }
 0x235   :  { %v5035_v59 = vpop.permute.xlu2 %5034 }
 0x236   :  { %v5037_v60 = vunpack.i.h.bf16 %v5035_v59  ;;  %v5036_v61 = vunpack.i.l.bf16 %v5035_v59 }
 0x238   :  { %v5060_v62 = vpack.i.bf16 %v388_v57, %v5037_v60  ;;  %v5038_v63 = vpack.i.bf16 %v386_v56, %v5036_v61 }
 0x23a   :  { %5061 = vxpose.xlu0.b32.start.end [1/1] (short) (narrow) %v5060_v62, 32  ;;  %5039 = vxpose.xlu2.b32.start.end [1/1] (short) (narrow) %v5038_v63, 32 }
 0x2d3   :  { %v5040_v0 = vpop.trf.xlu2 }
 0x2d4   :  { %v5041_v3 = vunpack.i.l.bf16 %v5040_v0  ;;  %v5044_v17 = vunpack.i.h.bf16 %v5040_v0 }
 0x2db   :  { %v5045_v1 = vpop.trf.xlu2 }
 0x2dc   :  { %v5049_v2 = vunpack.i.h.bf16 %v5045_v1  ;;  %v5046_v8 = vunpack.i.l.bf16 %v5045_v1 }
 0x2de   :  { %v5062_v4 = vpop.trf.xlu0  ;;  %v5089_v5 = vpack.i.bf16 %v5041_v3, %v5049_v2 }
 0x2df   :  { %v5066_v21 = vunpack.i.h.bf16 %v5062_v4  ;;  %v5063_v24 = vunpack.i.l.bf16 %v5062_v4 }
 0x2e0   :  { %5090 = vxpose.xlu2.b32.start.end [1/1] (short) (narrow) %v5089_v5, 8 }
 0x2e3   :  { %v5050_v6 = vpop.trf.xlu2 }
 0x2e4   :  { %v5051_v7 = vunpack.i.l.bf16 %v5050_v6  ;;  %v5054_v13 = vunpack.i.h.bf16 %v5050_v6 }
 0x2e6   :  { %v5067_v9 = vpop.trf.xlu0  ;;  %v5082_v11 = vpack.i.bf16 %v5051_v7, %v5046_v8 }
 0x2e7   :  { %v5068_v12 = vunpack.i.l.bf16 %v5067_v9  ;;  %v5071_v28 = vunpack.i.h.bf16 %v5067_v9 }
 0x2e8   :  { %5083 = vxpose.xlu1.b32.start.end [1/1] (short) (narrow) %v5082_v11, 8 }
 0x2e9   :  { %v5096_v14 = vpack.i.bf16 %v5068_v12, %v5054_v13 }
 0x2eb   :  { %v5055_v15 = vpop.trf.xlu2  ;;  %5097 = vxpose.xlu0.b32.start.end [1/1] (short) (narrow) %v5096_v14, 8 }
 0x2ec   :  { %v5056_v16 = vunpack.i.l.bf16 %v5055_v15  ;;  %v5059_v23 = vunpack.i.h.bf16 %v5055_v15 }
 0x2ee   :  { %v5072_v18 = vpop.trf.xlu0  ;;  %v5103_v19 = vpack.i.bf16 %v5056_v16, %v5044_v17  ;;  %v5110_v26 = vpack.i.bf16 %v5059_v23, %v5063_v24 }
 0x2ef   :  { %v5076_v20 = vunpack.i.h.bf16 %v5072_v18  ;;  %v5073_v25 = vunpack.i.l.bf16 %v5072_v18 }
 0x2f0   :  { %5104 = vxpose.xlu1.b32.start.end [1/1] (short) (narrow) %v5103_v19, 8 }
 0x2f1   :  { %v5117_v22 = vpack.i.bf16 %v5066_v21, %v5076_v20  ;;  %v5124_v29 = vpack.i.bf16 %v5071_v28, %v5073_v25 }
 0x2f3   :  { %5118 = vxpose.xlu2.b32.start.end [1/1] (short) (narrow) %v5117_v22, 8 }
 0x2f6   :  { %v5077_v27 = vpop.trf.xlu0 }
 0x2f7   :  { %5132 = vxpose.xlu0.b32.start.end [1/1] (short) (narrow) %v5077_v27, 8 }
 0x2f8   :  { %5111 = vxpose.xlu1.b32.start.end [1/1] (short) (narrow) %v5110_v26, 8 }
 0x2fb   :  { %5125 = vxpose.xlu2.b32.start.end [1/1] (short) (narrow) %v5124_v29, 8 }
 0x379   :  { %v5091_v5 = vpop.trf.xlu2 }
 0x37a   :  { %v5092_v6 = vunpack.i.l.bf16 %v5091_v5  ;;  %v5095_v7 = vunpack.i.h.bf16 %v5091_v5 }
 0x37c   :  { %v711_v8 = vpack.c.bf16 %v5092_v6, %v5092_v6  ;;  %v1046_v9 = vpack.c.bf16 %v5095_v7, %v5095_v7 }
 0x37e   :  { %v1393_v11 = vsel %vm1388_vm8, %v1046_v9, 0 }
 0x37f   :  { %1402 = vmatpush.bf16.xpose.msra.mxu1 %v1393_v11 }
 0x38c   :  { %v5084_v30 = vpop.trf.xlu1  ;;  %v5119_v12 = vpop.trf.xlu2 }
 0x38d   :  { %v5085_v31 = vunpack.i.l.bf16 %v5084_v30  ;;  %v5088_v32 = vunpack.i.h.bf16 %v5084_v30  ;;  %v5123_v20 = vunpack.i.h.bf16 %v5119_v12 }
 0x38f   :  { %v1047_v33 = vpack.c.bf16 %v5085_v31, %v5085_v31  ;;  %v1048_v34 = vpack.c.bf16 %v5088_v32, %v5088_v32  ;;  %v5098_v35 = vpop.trf.xlu0  ;;  %v714_v21 = vpack.c.bf16 %v5123_v20, %v5123_v20 }
 0x390   :  { %v5102_v36 = vunpack.i.h.bf16 %v5098_v35  ;;  %v5099_v39 = vunpack.i.l.bf16 %v5098_v35 }
 0x391   :  { %v1412_v37 = vsel %vm1388_vm8, %v1047_v33, 0  ;;  %v1431_v38 = vsel %vm1388_vm8, %v1048_v34, 0  ;;  %v5120_v33 = vunpack.i.l.bf16 %v5119_v12 }
 0x392   :  { %1421 = vmatpush.bf16.xpose.msra.mxu2 %v1412_v37  ;;  %1440 = vmatpush.bf16.xpose.msra.mxu3 %v1431_v38  ;;  %v1051_v41 = vpack.c.bf16 %v5102_v36, %v5102_v36  ;;  %v712_v44 = vpack.c.bf16 %v5099_v39, %v5099_v39 }
 0x393   :  { %v716_v37 = vpack.c.bf16 %v5120_v33, %v5120_v33 }
 0x394   :  { %v1488_v42 = vsel %vm1388_vm8, %v1051_v41, 0  ;;  %v5105_v46 = vpop.trf.xlu1  ;;  %v5126_v14 = vpop.trf.xlu2 }
 0x395   :  { %v5109_v49 = vunpack.i.h.bf16 %v5105_v46  ;;  %v5106_v13 = vunpack.i.l.bf16 %v5105_v46  ;;  %v5130_v15 = vunpack.i.h.bf16 %v5126_v14  ;;  %v5127_v31 = vunpack.i.l.bf16 %v5126_v14 }
 0x397   :  { %v1049_v53 = vpack.c.bf16 %v5109_v49, %v5109_v49  ;;  %v710_v16 = vpack.c.bf16 %v5106_v13, %v5106_v13  ;;  %v715_v17 = vpack.c.bf16 %v5130_v15, %v5130_v15  ;;  %v1052_v32 = vpack.c.bf16 %v5127_v31, %v5127_v31 }
 0x399   :  { %4824 = vmatmul.msk.bf16.vlgmr.msra.gmra.mxu3 %vm1388_vm8, %v712_v44  ;;  %v1450_v55 = vsel %vm1388_vm8, %v1049_v53, 0  ;;  %4823 = vmatmul.msk.bf16.vlgmr.msra.gmra.mxu2 %vm1388_vm8, %v711_v8  ;;  %v1507_v34 = vsel %vm1388_vm8, %v1052_v32, 0 }
 0x39a   :  { %1497 = vmatpush.bf16.xpose.msrb.mxu2 %v1488_v42  ;;  %1459 = vmatpush.bf16.xpose.msrb.mxu0 %v1450_v55 }
 0x39b   :  { %v5133_v47 = vpop.trf.xlu0  ;;  %4822 = vmatmul.msk.bf16.vlgmr.msra.gmra.mxu1 %vm1388_vm8, %v710_v16  ;;  %1516 = vmatpush.bf16.xpose.msrb.mxu3 %v1507_v34 }
 0x39c   :  { %v5134_v50 = vunpack.i.l.bf16 %v5133_v47  ;;  %v5112_v61 = vpop.trf.xlu1  ;;  %v5137_v3 = vunpack.i.h.bf16 %v5133_v47 }
 0x39d   :  { %v5116_v62 = vunpack.i.h.bf16 %v5112_v61 }
 0x39e   :  { %v1053_v54 = vpack.c.bf16 %v5134_v50, %v5134_v50  ;;  %v717_v4 = vpack.c.bf16 %v5137_v3, %v5137_v3 }
 0x39f   :  { %v713_v1 = vpack.c.bf16 %v5116_v62, %v5116_v62 }
 0x3a0   :  { %v1526_v56 = vsel %vm1388_vm8, %v1053_v54, 0 }
 0x3a1   :  { %4825 = vmatmul.msk.bf16.vlgmr.msrb.gmra.mxu0 %vm1388_vm8, %v713_v1 }
 0x3a2   :  { %1535 = vmatpush.bf16.xpose.msra.mxu0 %v1526_v56 }
 0x3a9   :  { %4827 = vmatmul.msk.bf16.vlgmr.msrb.gmra.mxu2 %vm1388_vm8, %v715_v17  ;;  %4828 = vmatmul.msk.bf16.vlgmr.msrb.gmra.mxu3 %vm1388_vm8, %v716_v37 }
 0x3b1   :  { %4829 = vmatmul.msk.bf16.vlgmr.msra.gmra.mxu0 %vm1388_vm8, %v717_v4 }
 0x418   :  { %v1404_v29 = vpop.f32.mrf.mxu1 }
 0x419   :  { %v1541_v14 = vmul.f32 0.35355338, %v1404_v29 }
 0x41b   :  { %v1556_v15 = vsel %vm6092_vm9, %v1541_v14, -1e+30 }
 0x41c   :  { %v1442_v57 = vpop.f32.mrf.mxu3  ;;  %v1423_v28 = vpop.f32.mrf.mxu2  ;;  %v1564_v16 = vsel %vm1388_vm8, %v1556_v15, -inf }
 0x41d   :  { %v1543_v60 = vmul.f32 0.35355338, %v1442_v57  ;;  %v1542_v41 = vmul.f32 0.35355338, %v1423_v28 }
 0x41e   :  { %v1461_v23 = vpop.f32.mrf.mxu0 }
 0x41f   :  { %v6098_v63 = vsel %vm6092_vm9, %v1543_v60, -1e+30  ;;  %v6118_v42 = vsel %vm6092_vm9, %v1542_v41, -1e+30  ;;  %v1544_v46 = vmul.f32 0.35355338, %v1461_v23 }
 0x420   :  { %v1570_v0 = vsel %vm1388_vm8, %v6098_v63, -inf  ;;  %v1406_v35 = vpop.f32.mrf.mxu1  ;;  %v1567_v45 = vsel %vm1388_vm8, %v6118_v42, -inf }
 0x421   :  { %1571 = vmax.xlane.f32.xlu0 %v1570_v0  ;;  %v1559_v47 = vsel %vm6092_vm9, %v1544_v46, -1e+30 }
 0x422   :  { %v1573_v49 = vsel %vm1388_vm8, %v1559_v47, -inf }
 0x424   :  { %v1444_v2 = vpop.f32.mrf.mxu3  ;;  %v1425_v30 = vpop.f32.mrf.mxu2 }
 0x426   :  { %v1463_v25 = vpop.f32.mrf.mxu0 }
 0x42c   :  { %v1499_v36 = vpop.f32.mrf.mxu2  ;;  %v1518_v6 = vpop.f32.mrf.mxu3 }
 0x42d   :  { %v1546_v50 = vmul.f32 0.35355338, %v1499_v36  ;;  %v1547_v17 = vmul.f32 0.35355338, %v1518_v6 }
 0x42e   :  { %v1537_v26 = vpop.f32.mrf.mxu0 }
 0x42f   :  { %v6127_v51 = vsel %vm6092_vm9, %v1546_v50, -1e+30  ;;  %v1548_v56 = vmul.f32 0.35355338, %v1537_v26 }
 0x430   :  { %v1579_v52 = vsel %vm1388_vm8, %v6127_v51, -inf }
 0x431   :  { %v6139_v57 = vsel %vm6092_vm9, %v1548_v56, -1e+30 }
 0x432   :  { %v1585_v60 = vsel %vm1388_vm8, %v6139_v57, -inf }
 0x434   :  { %v1501_v39 = vpop.f32.mrf.mxu2  ;;  %v1520_v9 = vpop.f32.mrf.mxu3 }
 0x435   :  { %5139 = vrot.lane.b32.xlu0 %v6082_v58, %s5857_s24  ;;  %v5113_v58 = vunpack.i.l.bf16 %v5112_v61 }
 0x436   :  { %v1539_v27 = vpop.f32.mrf.mxu0 }
 0x437   :  { %v1050_v18 = vpack.c.bf16 %v5113_v58, %v5113_v58 }
 0x439   :  { %v1469_v19 = vsel %vm1388_vm8, %v1050_v18, 0  ;;  %v1562_v18 = vsel %vm6092_vm9, %v1547_v17, -1e+30 }
 0x43a   :  { %1478 = vmatpush.bf16.xpose.msrb.mxu1 %v1469_v19  ;;  %v1582_v19 = vsel %vm1388_vm8, %v1562_v18, -inf }
 0x441   :  { %4826 = vmatmul.msk.bf16.vlgmr.msrb.gmra.mxu1 %vm1388_vm8, %v714_v21 }
 0x494   :  { %v6112_v22 = vpop.xlane.xlu0 %1571 }
 0x4a7   :  { %v5140_v24 = vpop.permute.xlu0 %5139 }
 0x4a8   :  { %5144 = vxpose.xlu1.b32.start.end [1/1] (short) (narrow) %v5140_v24, 32 }
 0x4be   :  { %v1480_v38 = vpop.f32.mrf.mxu1 }
 0x4bf   :  { %v1545_v53 = vmul.f32 0.35355338, %v1480_v38  ;;  %v1590_v38 = vsub.f32 %v6098_v63, %v6112_v22 }
 0x4c1   :  { %v6133_v54 = vsel %vm6092_vm9, %v1545_v53, -1e+30  ;;  %v1600_v39 = vmul.f32 1.442695, %v1590_v38 }
 0x4c2   :  { %v1576_v55 = vsel %vm1388_vm8, %v6133_v54, -inf }
 0x4c6   :  { %v1482_v44 = vpop.f32.mrf.mxu1 }
 0x520   :  { %1568 = vmax.xlane.f32.xlu1 %v1567_v45 }
 0x528   :  { %1574 = vmax.xlane.f32.xlu1 %v1573_v49 }
 0x530   :  { %1580 = vmax.xlane.f32.xlu1 %v1579_v52 }
 0x538   :  { %1577 = vmax.xlane.f32.xlu1 %v1576_v55 }
 0x540   :  { %1586 = vmax.xlane.f32.xlu1 %v1585_v60 }
 0x54c   :  { %v5145_v61 = vpop.trf.xlu1 }
 0x54d   :  { %v5146_v1 = vunpack.i.l.bf16 %v5145_v61  ;;  %v5149_v21 = vunpack.i.h.bf16 %v5145_v61 }
 0x554   :  { %v6143_v62 = vpop.trf.xlu1 }
 0x555   :  { %v5151_v0 = vunpack.i.l.bf16 %v6143_v62 }
 0x557   :  { %v5165_v2 = vpack.i.bf16 %v5146_v1, %v5151_v0 }
 0x559   :  { %5166 = vxpose.xlu2.b32.start.end [1/1] (short) (narrow) %v5165_v2, 8 }
 0x55c   :  { %v5155_v3 = vpop.trf.xlu1 }
 0x55d   :  { %v5156_v58 = vunpack.i.l.bf16 %v5155_v3  ;;  %v5159_v20 = vunpack.i.h.bf16 %v5155_v3 }
 0x55f   :  { %v5179_v23 = vpack.i.bf16 %v5159_v20, %v5149_v21 }
 0x564   :  { %v6146_v4 = vpop.trf.xlu1 }
 0x593   :  { %v1569_v5 = vpop.xlane.xlu1 %1568 }
 0x594   :  { %v1589_v35 = vsub.f32 %v6118_v42, %v1569_v5 }
 0x596   :  { %v1598_v36 = vmul.f32 1.442695, %v1589_v35 }
 0x59b   :  { %v1575_v7 = vpop.xlane.xlu1 %1574 }
 0x59c   :  { %v1591_v8 = vsub.f32 %v1559_v47, %v1575_v7 }
 0x59e   :  { %v1602_v11 = vmul.f32 1.442695, %v1591_v8  ;;  %v5164_v8 = vunpack.i.h.bf16 %v6146_v4 }
 0x5a0   :  { %5418 = vpow2.f32 %v1602_v11 }
 0x5a3   :  { %v1581_v37 = vpop.xlane.xlu1 %1580 }
 0x5a4   :  { %v1593_v50 = vsub.f32 %v6127_v51, %v1581_v37  ;;  %v5154_v51 = vunpack.i.h.bf16 %v6143_v62 }
 0x5a6   :  { %v6148_v12 = vpop.eup %5418  ;;  %v1606_v52 = vmul.f32 1.442695, %v1593_v50 }
 0x5a7   :  { %v1621_v13 = vsel %vm1388_vm8, %v6148_v12, 0.0 }
 0x5a8   :  { %1622 = vadd.xlane.f32.xlu0 %v1621_v13 }
 0x5ab   :  { %v1578_v44 = vpop.xlane.xlu1 %1577 }
 0x5ac   :  { %v1592_v45 = vsub.f32 %v6133_v54, %v1578_v44  ;;  %v5161_v54 = vunpack.i.l.bf16 %v6146_v4 }
 0x5ae   :  { %v1604_v47 = vmul.f32 1.442695, %v1592_v45  ;;  %v5172_v1 = vpack.i.bf16 %v5154_v51, %v5161_v54 }
 0x5b3   :  { %v1587_v60 = vpop.xlane.xlu1 %1586 }
 0x5b4   :  { %v1595_v0 = vsub.f32 %v6139_v57, %v1587_v60 }
 0x5b6   :  { %v1610_v3 = vmul.f32 1.442695, %v1595_v0 }
 0x5ca   :  { %1565 = vmax.xlane.f32.xlu2 %v1564_v16 }
 0x5d1   :  { %1188 = vxpose.xlu0.b32.start.end [1/1] (short) (narrow) %v5156_v58, 8 }
 0x5d2   :  { %1583 = vmax.xlane.f32.xlu2 %v1582_v19 }
 0x5f2   :  { %v5167_v24 = vpop.trf.xlu2 }
 0x5f3   :  { %v5171_v25 = vunpack.i.h.bf16 %v5167_v24  ;;  %v5168_v26 = vunpack.i.l.bf16 %v5167_v24 }
 0x5f5   :  { %v1380_v27 = vpack.c.bf16 %v5171_v25, %v5171_v25  ;;  %v1381_v28 = vpack.c.bf16 %v5168_v26, %v5168_v26 }
 0x5f7   :  { %v1665_v29 = vsel %vm1663_vm10, %v1380_v27, 0  ;;  %v1684_v30 = vsel %vm1663_vm10, %v1381_v28, 0 }
 0x5f8   :  { %1674 = vmatpush.bf16.msra.mxu1 %v1665_v29  ;;  %1693 = vmatpush.bf16.msra.mxu2 %v1684_v30 }
 0x5fb   :  { %5180 = vxpose.xlu2.b32.start.end [1/1] (short) (narrow) %v5179_v23, 8 }
 0x61b   :  { %v1623_v13 = vpop.xlane.xlu0 %1622 }
 0x63d   :  { %v1566_v59 = vpop.xlane.xlu2 %1565 }
 0x63e   :  { %v1588_v31 = vsub.f32 %v1556_v15, %v1566_v59 }
 0x640   :  { %v1596_v32 = vmul.f32 1.442695, %v1588_v31 }
 0x642   :  { %5420 = vpow2.f32 %v1596_v32 }
 0x643   :  { %5422 = vpow2.f32 %v1598_v36 }
 0x644   :  { %5424 = vpow2.f32 %v1600_v39 }
 0x645   :  { %5426 = vpow2.f32 %v1604_v47  ;;  %v1584_v63 = vpop.xlane.xlu2 %1583 }
 0x646   :  { %5428 = vpow2.f32 %v1606_v52  ;;  %v1594_v53 = vsub.f32 %v1562_v18, %v1584_v63 }
 0x648   :  { %v5421_v33 = vpop.eup %5420  ;;  %v1608_v56 = vmul.f32 1.442695, %v1594_v53 }
 0x649   :  { %v1612_v34 = vsel %vm1388_vm8, %v5421_v33, 0.0  ;;  %v5423_v41 = vpop.eup %5422 }
 0x64a   :  { %1613 = vadd.xlane.f32.xlu1 %v1612_v34  ;;  %v1615_v46 = vsel %vm1388_vm8, %v5423_v41, 0.0  ;;  %v5425_v49 = vpop.eup %5424  ;;  %5430 = vpow2.f32 %v1608_v56 }
 0x64b   :  { %v1618_v42 = vsel %vm1388_vm8, %v5425_v49, 0.0  ;;  %v5427_v22 = vpop.eup %5426  ;;  %5432 = vpow2.f32 %v1610_v3 }
 0x64c   :  { %v1624_v55 = vsel %vm1388_vm8, %v5427_v22, 0.0  ;;  %v6170_v61 = vpop.eup %5428 }
 0x64d   :  { %v1627_v2 = vsel %vm1388_vm8, %v6170_v61, 0.0 }
 0x650   :  { %v5431_v5 = vpop.eup %5430 }
 0x651   :  { %v1630_v6 = vsel %vm1388_vm8, %v5431_v5, 0.0  ;;  %v6177_v7 = vpop.eup %5432 }
 0x652   :  { %v1633_v62 = vsel %vm1388_vm8, %v6177_v7, 0.0 }
 0x66c   :  { %1616 = vadd.xlane.f32.xlu2 %v1615_v46 }
 0x674   :  { %1619 = vadd.xlane.f32.xlu2 %v1618_v42 }
 0x675   :  { %v1204_v16 = vpop.trf.xlu0 }
 0x676   :  { %v1382_v17 = vpack.c.bf16 %v1204_v16, %v1204_v16 }
 0x678   :  { %v1703_v58 = vsel %vm1663_vm10, %v1382_v17, 0 }
 0x679   :  { %1712 = vmatpush.bf16.msra.mxu3 %v1703_v58 }
 0x67c   :  { %1625 = vadd.xlane.f32.xlu2 %v1624_v55 }
 0x684   :  { %5173 = vxpose.xlu1.b32.start.end [1/1] (short) (narrow) %v5172_v1, 8  ;;  %1628 = vadd.xlane.f32.xlu2 %v1627_v2 }
 0x68c   :  { %1631 = vadd.xlane.f32.xlu2 %v1630_v6 }
 0x694   :  { %1634 = vadd.xlane.f32.xlu2 %v1633_v62  ;;  %v5181_v57 = vpop.trf.xlu2 }
 0x695   :  { %v5182_v18 = vunpack.i.l.bf16 %v5181_v57  ;;  %v5185_v21 = vunpack.i.h.bf16 %v5181_v57 }
 0x697   :  { %v1384_v19 = vpack.c.bf16 %v5182_v18, %v5182_v18  ;;  %v1386_v23 = vpack.c.bf16 %v5185_v21, %v5185_v21 }
 0x699   :  { %v1741_v20 = vsel %vm1663_vm10, %v1384_v19, 0  ;;  %v1779_v27 = vsel %vm1663_vm10, %v1386_v23, 0 }
 0x69a   :  { %1750 = vmatpush.bf16.msrb.mxu1 %v1741_v20  ;;  %1788 = vmatpush.bf16.msrb.mxu3 %v1779_v27 }
 0x6bd   :  { %1348 = vxpose.xlu2.b32.start.end [1/1] (short) (narrow) %v5164_v8, 8  ;;  %v1614_v9 = vpop.xlane.xlu1 %1613 }
 0x6be   :  { %5434 = vrcp.f32 %v1614_v9 }
 0x6c4   :  { %v5435_v11 = vpop.eup %5434 }
 0x6c5   :  { %v1644_v14 = vmul.f32 %v5435_v11, %v5421_v33 }
 0x6c7   :  { %v1652_v15 = vpack.c.bf16 %v1644_v14, %v1644_v14 }
 0x6c9   :  { %4830 = vmatmul.msk.bf16.vlgmr.msra.gmra.mxu1 %vm1388_vm8, %v1652_v15 }
 0x6df   :  { %v1617_v4 = vpop.xlane.xlu2 %1616 }
 0x6e0   :  { %5436 = vrcp.f32 %v1617_v4 }
 0x6e6   :  { %v5437_v24 = vpop.eup %5436 }
 0x6e7   :  { %v1645_v25 = vmul.f32 %v5437_v24, %v5423_v41  ;;  %v1620_v26 = vpop.xlane.xlu2 %1619  ;;  %v4988_v24 = vld [vmem:[#allocation2 + $0x8] sm:$0xff] }
 0x6e8   :  { %5438 = vrcp.f32 %v1620_v26  ;;  %2156 = vmatpush.bf16.msra.mxu1 %v4988_v24  ;;  %v4987_v26 = vld [vmem:[#allocation2] sm:$0xff] }
 0x6e9   :  { %v1653_v28 = vpack.c.bf16 %v1645_v25, %v1645_v25 }
 0x6eb   :  { %4831 = vmatmul.msk.bf16.vlgmr.msra.gmra.mxu2 %vm1388_vm8, %v1653_v28 }
 0x6ec   :  { %2157 = vmatpush.bf16.msra.mxu1 %v4987_v26  ;;  %v6241_v26 = vld [vmem:[%s6528_s18] sm:$0xff] }
 0x6ee   :  { %v5439_v29 = vpop.eup %5438 }
 0x6ef   :  { %v1646_v30 = vmul.f32 %v5439_v29, %v5425_v49  ;;  %v1626_v59 = vpop.xlane.xlu2 %1625 }
 0x6f0   :  { %5440 = vrcp.f32 %v1626_v59  ;;  %v4998_v59 = vld [vmem:[#allocation11 + $0x8] sm:$0xff] }
 0x6f1   :  { %v1654_v31 = vpack.c.bf16 %v1646_v30, %v1646_v30 }
 0x6f3   :  { %4832 = vmatmul.msk.bf16.vlgmr.msra.gmra.mxu3 %vm1388_vm8, %v1654_v31  ;;  %v4997_v31 = vld [vmem:[#allocation11] sm:$0xff] }
 0x6f4   :  { %2218 = vmatpush.bf16.msra.mxu3 %v4998_v59 }
 0x6f6   :  { %v5441_v32 = vpop.eup %5440 }
 0x6f7   :  { %v1648_v33 = vmul.f32 %v5441_v32, %v5427_v22  ;;  %v1629_v34 = vpop.xlane.xlu2 %1628  ;;  %v6203_v32 = vld [vmem:[%s6538_s21] sm:$0xff] }
 0x6f8   :  { %2219 = vmatpush.bf16.msra.mxu3 %v4997_v31 }
 0x6f9   :  { %v1656_v35 = vpack.c.bf16 %v1648_v33, %v1648_v33  ;;  %v6208_v33 = vld [vmem:[%s6538_s21 + $0x8] sm:$0xff] }
 0x6fb   :  { %4834 = vmatmul.msk.bf16.vlgmr.msrb.gmra.mxu1 %vm1388_vm8, %v1656_v35  ;;  %v4996_v35 = vld [vmem:[#allocation10 + $0x8] sm:$0xff] }
 0x6ff   :  { %v1632_v36 = vpop.xlane.xlu2 %1631 }
 0x700   :  { %5442 = vrcp.f32 %v1632_v36  ;;  %v4995_v36 = vld [vmem:[#allocation10] sm:$0xff] }
 0x701   :  { %5444 = vrcp.f32 %v1623_v13 }
 0x702   :  { %5446 = vrcp.f32 %v1629_v34  ;;  %v2196_v34 = vpack.c.bf16 %v6208_v33, %v6203_v32 }
 0x706   :  { %v5443_v37 = vpop.eup %5442 }
 0x707   :  { %v1650_v38 = vmul.f32 %v5443_v37, %v5431_v5  ;;  %v5445_v41 = vpop.eup %5444  ;;  %v1635_v56 = vpop.xlane.xlu2 %1634 }
 0x708   :  { %v5447_v44 = vpop.eup %5446  ;;  %v1647_v49 = vmul.f32 %v5445_v41, %v6148_v12  ;;  %5448 = vrcp.f32 %v1635_v56 }
 0x709   :  { %v1658_v39 = vpack.c.bf16 %v1650_v38, %v1650_v38  ;;  %v1649_v50 = vmul.f32 %v5447_v44, %v6170_v61  ;;  %v2134_v38 = vperm.slane %v6066_v40, 0 }
 0x70a   :  { %v1655_v53 = vpack.c.bf16 %v1647_v49, %v1647_v49 }
 0x70b   :  { %4836 = vmatmul.msk.bf16.vlgmr.msrb.gmra.mxu3 %vm1388_vm8, %v1658_v39  ;;  %v1657_v55 = vpack.c.bf16 %v1649_v50, %v1649_v50 }
 0x70e   :  { %v5449_v60 = vpop.eup %5448 }
 0x70f   :  { %v1651_v51 = vmul.f32 %v5449_v60, %v6177_v7 }
 0x711   :  { %v1659_v2 = vpack.c.bf16 %v1651_v51, %v1651_v51 }
 0x71b   :  { %4864 = vmatmul.msk.bf16.vlgmr.msra.gmra.mxu3 %vm299_vm0, %v2196_v34 }
 0x728   :  { %v5174_v45 = vpop.trf.xlu1 }
 0x729   :  { %v5178_v46 = vunpack.i.h.bf16 %v5174_v45  ;;  %v5175_v47 = vunpack.i.l.bf16 %v5174_v45 }
 0x72b   :  { %v1383_v42 = vpack.c.bf16 %v5175_v47, %v5175_v47  ;;  %v1385_v52 = vpack.c.bf16 %v5178_v46, %v5178_v46 }
 0x72d   :  { %v1722_v63 = vsel %vm1663_vm10, %v1383_v42, 0  ;;  %v1760_v22 = vsel %vm1663_vm10, %v1385_v52, 0  ;;  %v5000_v52 = vld [vmem:[#allocation13 + $0x8] sm:$0xff] }
 0x72e   :  { %1731 = vmatpush.bf16.msrb.mxu0 %v1722_v63  ;;  %1769 = vmatpush.bf16.msrb.mxu2 %v1760_v22  ;;  %v4999_v22 = vld [vmem:[#allocation13] sm:$0xff] }
 0x731   :  { %4833 = vmatmul.msk.bf16.vlgmr.msrb.gmra.mxu0 %vm1388_vm8, %v1655_v53  ;;  %4835 = vmatmul.msk.bf16.vlgmr.msrb.gmra.mxu2 %vm1388_vm8, %v1657_v55 }
 0x732   :  { %2188 = vmatpush.bf16.msra.mxu2 %v4996_v35 }
 0x736   :  { %2189 = vmatpush.bf16.msra.mxu2 %v4995_v36 }
 0x746   :  { %v1676_v54 = vpop.f32.mrf.mxu1 }
 0x74e   :  { %v1678_v12 = vpop.f32.mrf.mxu1 }
 0x756   :  { %v1364_v61 = vpop.trf.xlu2 }
 0x757   :  { %v1387_v0 = vpack.c.bf16 %v1364_v61, %v1364_v61 }
 0x759   :  { %v1798_v1 = vsel %vm1663_vm10, %v1387_v0, 0 }
 0x75a   :  { %1807 = vmatpush.bf16.msra.mxu0 %v1798_v1 }
 0x75d   :  { %4837 = vmatmul.msk.bf16.vlgmr.msra.gmra.mxu0 %vm1388_vm8, %v1659_v2 }
 0x75e   :  { %2335 = vmatpush.bf16.msrb.mxu0 %v5000_v52 }
 0x762   :  { %2336 = vmatpush.bf16.msrb.mxu0 %v4999_v22 }
 0x76e   :  { %v1695_v3 = vpop.f32.mrf.mxu2 }
 0x776   :  { %v1697_v5 = vpop.f32.mrf.mxu2  ;;  %v1714_v6 = vpop.f32.mrf.mxu3 }
 0x778   :  { %v1752_v62 = vpop.f32.mrf.mxu1 }
 0x779   :  { %v5186_v57 = vpack.i.bf16 %v1752_v62, %v1676_v54 }
 0x77b   :  { %5187 = vxpose.xlu0.b32.start.end [1/1] (short) (narrow) %v5186_v57, 8 }
 0x77e   :  { %v1716_v8 = vpop.f32.mrf.mxu3 }
 0x780   :  { %v1754_v9 = vpop.f32.mrf.mxu1 }
 0x78e   :  { %v1790_v11 = vpop.f32.mrf.mxu3 }
 0x78f   :  { %v5200_v13 = vpack.i.bf16 %v1790_v11, %v1714_v6 }
 0x791   :  { %5201 = vxpose.xlu2.b32.start.end [1/1] (short) (narrow) %v5200_v13, 8 }
 0x796   :  { %v1792_v14 = vpop.f32.mrf.mxu3 }
 0x79e   :  { %v2221_v49 = vpop.f32.mrf.mxu3 }
 0x7a6   :  { %v2223_v40 = vpop.f32.mrf.mxu3 }
 0x7ae   :  { %v1733_v7 = vpop.f32.mrf.mxu0 }
 0x7b4   :  { %v1771_v15 = vpop.f32.mrf.mxu2 }
 0x7b5   :  { %v5193_v16 = vpack.i.bf16 %v1771_v15, %v1695_v3 }
 0x7b6   :  { %v1735_v17 = vpop.f32.mrf.mxu0 }
 0x7b7   :  { %5194 = vxpose.xlu1.b32.start.end [1/1] (short) (narrow) %v5193_v16, 8 }
 0x7bc   :  { %v1773_v58 = vpop.f32.mrf.mxu2 }
 0x7da   :  { %v1809_v18 = vpop.f32.mrf.mxu0 }
 0x7db   :  { %v5207_v19 = vpack.i.bf16 %v1809_v18, %v1733_v7 }
 0x7dd   :  { %5208 = vxpose.xlu0.b32.start.end [1/1] (short) (narrow) %v5207_v19, 8 }
 0x7e2   :  { %v1811_v20 = vpop.f32.mrf.mxu0 }
 0x81f   :  { %v5188_v4 = vpop.trf.xlu0 }
 0x820   :  { %5215 = vxpose.xlu1.b32.start [1/4] (short) (narrow) %v5188_v4, 8 }
 0x82a   :  { %v5202_v21 = vpop.trf.xlu2 }
 0x85b   :  { %v5195_v23 = vpop.trf.xlu1 }
 0x85c   :  { %5217 = vxpose.xlu1.b32.cont [2/4] (short) (narrow) %v5195_v23, 8 }
 0x864   :  { %5219 = vxpose.xlu1.b32.cont [3/4] (short) (narrow) %v5202_v21, 8  ;;  %v297_v21 = vld [vmem:[%s6542_s6] sm:$0xff] }
 0x865   :  { %v2379_v23 = vsel %vm299_vm0, %v297_v21, 0.0 }
 0x881   :  { %v5209_v25 = vpop.trf.xlu0 }
 0x882   :  { %5221 = vxpose.xlu1.b32.end [4/4] (short) (narrow) %v5209_v25, 8 }
 0x8e2   :  { %2380 = vadd.xlane.f32.xlu1 %v2379_v23 }
 0x8fb   :  { %2361 = vrot.lane.b32.xlu1 %v6208_v33, %s5871_s29 }
 0x90e   :  { %v5222_v27 = vpop.trf.xlu1 }
 0x90f   :  { %v5226_v28 = vunpack.i.h.bf16 %v5222_v27  ;;  %v5223_v29 = vunpack.i.l.bf16 %v5222_v27  ;;  %v2266_v27 = vperm.slane %v6241_v26, 3 }
 0x911   :  { %v2133_v30 = vpack.c.bf16 %v5226_v28, %v5223_v29  ;;  %v298_v28 = vld [vmem:[%s6542_s6 + $0x8] sm:$0xff] }
 0x912   :  { %v2382_v29 = vsel %vm299_vm0, %v298_v28, 0.0 }
 0x913   :  { %4846 = vmatmul.msk.bf16.vlgmr.msra.gmra.mxu1 %vm299_vm0, %v2133_v30 }
 0x990   :  { %v2159_v37 = vpop.f32.mrf.mxu1 }
 0x991   :  { %v2160_v39 = vadd.f32 %v2159_v37, %v2134_v38  ;;  %v2381_v37 = vpop.xlane.xlu1 %2380 }
 0x993   :  { %v2164_v45 = vmax.f32 %v2160_v39, 0.0 }
 0x998   :  { %v2161_v41 = vpop.f32.mrf.mxu1 }
 0x999   :  { %v2162_v44 = vadd.f32 %v2161_v41, %v2134_v38  ;;  %v2385_v38 = vmul.f32 %v2381_v37, %v6049_v10 }
 0x99b   :  { %v2165_v46 = vmax.f32 %v2162_v44, 0.0  ;;  %v6261_v44 = vsub.f32 %v297_v21, %v2385_v38 }
 0x99d   :  { %v2166_v47 = vpack.c.bf16 %v2165_v46, %v2164_v45  ;;  %v2389_v46 = vmul.f32 %v6261_v44, %v6261_v44 }
 0x99f   :  { %4855 = vmatmul.msk.bf16.vlgmr.msra.gmra.mxu2 %vm299_vm0, %v2166_v47  ;;  %v2391_v47 = vsel %vm299_vm0, %v2389_v46, 0.0 }
 0xa22   :  { %v6215_v50 = vpop.f32.mrf.mxu2 }
 0xa23   :  { %v6218_v42 = vadd.f32 %v2221_v49, %v6215_v50 }
 0xa25   :  { %v4865_v63 = vmul.f32 -1.442695, %v6218_v42 }
 0xa27   :  { %5450 = vpow2.f32 %v4865_v63 }
 0xa2a   :  { %v6221_v53 = vpop.f32.mrf.mxu2 }
 0xa2b   :  { %v6224_v55 = vadd.f32 %v2223_v40, %v6221_v53 }
 0xa2d   :  { %v5451_v54 = vpop.eup %5450  ;;  %v4866_v56 = vmul.f32 -1.442695, %v6224_v55 }
 0xa2e   :  { %v2234_v12 = vadd.f32 1.0, %v5451_v54 }
 0xa2f   :  { %5452 = vpow2.f32 %v4866_v56 }
 0xa30   :  { %5454 = vrcp.f32 %v2234_v12  ;;  %v2247_v62 = vand.u32 2147483648, %v2234_v12  ;;  %vm2241_vm12 = vweird.f32 %v2234_v12  ;;  %v2245_v8 = vand.u32 2147483647, %v2234_v12 }
 0xa32   :  { %v2248_v7 = vor.u32 1.1754944e-38, %v2247_v62  ;;  %vm2246_vm1 = vcmp.eq.f32.partialorder %v2245_v8, 8.507059e+37 }
 0xa35   :  { %v5453_v60 = vpop.eup %5452 }
 0xa36   :  { %v5455_v61 = vpop.eup %5454  ;;  %v2235_v51 = vadd.f32 1.0, %v5453_v60 }
 0xa37   :  { %v2237_v0 = vmul.f32 %v5455_v61, %v2234_v12  ;;  %vm2242_vm11 = vweird.f32 %v5455_v61 }
 0xa38   :  { %5456 = vrcp.f32 %v2235_v51  ;;  %v2262_v9 = vand.u32 2147483648, %v2235_v51  ;;  %vm2243_vm13 = vmor %vm2241_vm12, %vm2242_vm11  ;;  %v2260_v14 = vand.u32 2147483647, %v2235_v51  ;;  %vm2256_vm15 = vweird.f32 %v2235_v51 }
 0xa39   :  { %v2238_v1 = vsub.f32 1.0, %v2237_v0 }
 0xa3a   :  { %v2263_v16 = vor.u32 1.1754944e-38, %v2262_v9  ;;  %vm2261_vm3 = vcmp.eq.f32.partialorder %v2260_v14, 8.507059e+37 }
 0xa3b   :  { %v2239_v2 = vmul.f32 %v5455_v61, %v2238_v1 }
 0xa3d   :  { %v2240_v6 = vadd.f32 %v5455_v61, %v2239_v2 }
 0xa3e   :  { %v5457_v3 = vpop.eup %5456 }
 0xa3f   :  { %v2252_v5 = vmul.f32 %v5457_v3, %v2235_v51  ;;  %v2244_v13 = vsel %vm2243_vm13, %v5455_v61, %v2240_v6  ;;  %vm2257_vm14 = vweird.f32 %v5457_v3 }
 0xa40   :  { %v2249_v17 = vsel %vm2246_vm1, %v2248_v7, %v2244_v13  ;;  %vm2258_vm2 = vmor %vm2256_vm15, %vm2257_vm14 }
 0xa41   :  { %v2253_v57 = vsub.f32 1.0, %v2252_v5  ;;  %v2311_v19 = vmul.f32 %v6203_v32, %v2249_v17 }
 0xa43   :  { %v2254_v11 = vmul.f32 %v5457_v3, %v2253_v57 }
 0xa45   :  { %v2255_v15 = vadd.f32 %v5457_v3, %v2254_v11 }
 0xa47   :  { %v2259_v58 = vsel %vm2258_vm2, %v5457_v3, %v2255_v15 }
 0xa48   :  { %v2264_v18 = vsel %vm2261_vm3, %v2263_v16, %v2259_v58 }
 0xa49   :  { %v2312_v20 = vmul.f32 %v6208_v33, %v2264_v18  ;;  %v2362_v18 = vpop.permute.xlu1 %2361 }
 0xa4b   :  { %v2313_v4 = vpack.c.bf16 %v2312_v20, %v2311_v19 }
 0xa4d   :  { %4877 = vmatmul.msk.bf16.vlgmr.msrb.gmra.mxu0 %vm299_vm0, %v2313_v4 }
 0xaca   :  { %v2338_v24 = vpop.f32.mrf.mxu0 }
 0xacb   :  { %2345 = vrot.lane.b32.xlu2 %v2338_v24, %s5857_s24 }
 0xad2   :  { %v2340_v25 = vpop.f32.mrf.mxu0 }
 0xad3   :  { %2347 = vrot.lane.b32.xlu0 %v2340_v25, %s5857_s24 }
 0xadb   :  { %2268 = vrot.lane.b32.xlu0 %v2266_v27, %s5871_s29 }
 0xae3   :  { %2359 = vrot.lane.b32.xlu0 %v6203_v32, %s5871_s29 }
 0xaf4   :  { %2383 = vadd.xlane.f32.xlu2 %v2382_v29 }
 0xb25   :  { %v2346_v30 = vpop.permute.xlu2 %2345 }
 0xb26   :  { %v2351_v59 = vadd.f32 %v2346_v30, %v6215_v50  ;;  %v4992_v30 = vld [vmem:[#allocation7 + $0x8] sm:$0xff] }
 0xb27   :  { %2486 = vmatpush.bf16.msrb.mxu2 %v4992_v30 }
 0xb28   :  { %5458 = vtanh.f32 %v2351_v59 }
 0xb2e   :  { %v5459_v31 = vpop.eup %5458 }
 0xb2f   :  { %2369 = vrot.lane.b32.xlu0 %v5459_v31, %s5870_s26  ;;  %v4991_v31 = vld [vmem:[#allocation7] sm:$0xff] }
 0xb30   :  { %2487 = vmatpush.bf16.msrb.mxu2 %v4991_v31 }
 0xb45   :  { %v2348_v33 = vpop.permute.xlu0 %2347 }
 0xb46   :  { %v2352_v34 = vadd.f32 %v2348_v33, %v6221_v53  ;;  %v4990_v33 = vld [vmem:[#allocation5 + $0x8] sm:$0xff] }
 0xb47   :  { %2453 = vmatpush.bf16.msrb.mxu1 %v4990_v33 }
 0xb48   :  { %5460 = vtanh.f32 %v2352_v34 }
 0xb4d   :  { %v2269_v49 = vpop.permute.xlu0 %2268 }
 0xb4e   :  { %v5461_v35 = vpop.eup %5460  ;;  %v2271_v50 = vsub.f32 %v6218_v42, %v2269_v49  ;;  %v2272_v52 = vsub.f32 %v6224_v55, %v2269_v49 }
 0xb4f   :  { %2371 = vrot.lane.b32.xlu0 %v5461_v35, %s5870_s26 }
 0xb50   :  { %v4867_v63 = vmul.f32 -1.442695, %v2271_v50  ;;  %v4868_v22 = vmul.f32 -1.442695, %v2272_v52 }
 0xb52   :  { %5462 = vpow2.f32 %v4867_v63 }
 0xb53   :  { %5464 = vpow2.f32 %v4868_v22 }
 0xb55   :  { %v2360_v3 = vpop.permute.xlu0 %2359 }
 0xb58   :  { %v5463_v40 = vpop.eup %5462 }
 0xb59   :  { %v5465_v53 = vpop.eup %5464  ;;  %v2279_v54 = vadd.f32 1.0, %v5463_v40 }
 0xb5a   :  { %v2280_v56 = vadd.f32 1.0, %v5465_v53 }
 0xb5b   :  { %5466 = vrcp.f32 %v2279_v54  ;;  %vm2286_vm6 = vweird.f32 %v2279_v54  ;;  %v2292_v62 = vand.u32 2147483648, %v2279_v54  ;;  %v2290_v8 = vand.u32 2147483647, %v2279_v54 }
 0xb5c   :  { %5468 = vrcp.f32 %v2280_v56  ;;  %v2307_v6 = vand.u32 2147483648, %v2280_v56  ;;  %vm2301_vm7 = vweird.f32 %v2280_v56  ;;  %v2305_v57 = vand.u32 2147483647, %v2280_v56 }
 0xb5d   :  { %v2293_v14 = vor.u32 1.1754944e-38, %v2292_v62  ;;  %vm2291_vm13 = vcmp.eq.f32.partialorder %v2290_v8, 8.507059e+37 }
 0xb5e   :  { %v2308_v13 = vor.u32 1.1754944e-38, %v2307_v6  ;;  %vm2306_vm12 = vcmp.eq.f32.partialorder %v2305_v57, 8.507059e+37  ;;  %v2428_v6 = vperm.slane %v6241_v26, 1 }
 0xb61   :  { %v5467_v12 = vpop.eup %5466 }
 0xb62   :  { %v5469_v60 = vpop.eup %5468  ;;  %v2282_v51 = vmul.f32 %v5467_v12, %v2279_v54  ;;  %vm2287_vm4 = vweird.f32 %v5467_v12 }
 0xb63   :  { %v2297_v61 = vmul.f32 %v5469_v60, %v2280_v56  ;;  %vm2302_vm5 = vweird.f32 %v5469_v60  ;;  %vm2288_vm9 = vmor %vm2286_vm6, %vm2287_vm4 }
 0xb64   :  { %v2283_v1 = vsub.f32 1.0, %v2282_v51  ;;  %vm2303_vm11 = vmor %vm2301_vm7, %vm2302_vm5 }
 0xb65   :  { %v2298_v0 = vsub.f32 1.0, %v2297_v61 }
 0xb66   :  { %v2284_v42 = vmul.f32 %v5467_v12, %v2283_v1 }
 0xb67   :  { %v2384_v32 = vpop.xlane.xlu2 %2383  ;;  %v2299_v2 = vmul.f32 %v5469_v60, %v2298_v0 }
 0xb68   :  { %v2386_v36 = vmul.f32 %v2384_v32, %v6049_v10  ;;  %v2285_v5 = vadd.f32 %v5467_v12, %v2284_v42  ;;  %v5410_v42 = vld [vmem:[%s6526_s16] ss:$0 sm:$0xff] }
 0xb69   :  { %v2300_v55 = vadd.f32 %v5469_v60, %v2299_v2 }
 0xb6a   :  { %v6257_v39 = vsub.f32 %v298_v28, %v2386_v36  ;;  %v2289_v11 = vsel %vm2288_vm9, %v5467_v12, %v2285_v5  ;;  %v4989_v36 = vld [vmem:[#allocation5] sm:$0xff] }
 0xb6b   :  { %v2304_v9 = vsel %vm2303_vm11, %v5469_v60, %v2300_v55  ;;  %v2294_v16 = vsel %vm2291_vm13, %v2293_v14, %v2289_v11  ;;  %2454 = vmatpush.bf16.msrb.mxu1 %v4989_v36 }
 0xb6c   :  { %v2390_v41 = vmul.f32 %v6257_v39, %v6257_v39  ;;  %v2309_v15 = vsel %vm2306_vm12, %v2308_v13, %v2304_v9  ;;  %v2355_v58 = vsub.f32 1.0, %v2294_v16 }
 0xb6d   :  { %v2356_v17 = vsub.f32 1.0, %v2309_v15 }
 0xb6e   :  { %v2394_v45 = vsel %vm299_vm0, %v2390_v41, 0.0  ;;  %v2365_v21 = vmul.f32 %v2360_v3, %v2355_v58 }
 0xb6f   :  { %2395 = vadd.xlane.f32.xlu2 %v2394_v45  ;;  %v2366_v4 = vmul.f32 %v2362_v18, %v2356_v17 }
 0xb79   :  { %2392 = vadd.xlane.f32.xlu0 %v2391_v47 }
 0xba1   :  { %v2370_v7 = vpop.permute.xlu0 %2369 }
 0xba2   :  { %v2375_v19 = vmul.f32 %v2370_v7, %v2294_v16 }
 0xba4   :  { %v6269_v24 = vadd.f32 %v2375_v19, %v2365_v21 }
 0xbc1   :  { %v2372_v20 = vpop.permute.xlu0 %2371 }
 0xbc2   :  { %v2376_v23 = vmul.f32 %v2372_v20, %v2309_v15 }
 0xbc4   :  { %v6271_v25 = vadd.f32 %v2376_v23, %v2366_v4 }
 0xbc6   :  { %v2427_v27 = vpack.c.bf16 %v6271_v25, %v6269_v24 }
 0xbc8   :  { %2430 = vrot.lane.b32.xlu1 %v2427_v27, %s5870_s26 }
 0xbe2   :  { %v2396_v28 = vpop.xlane.xlu2 %2395 }
 0xbe3   :  { %v2398_v29 = vmul.f32 %v2396_v28, %v6049_v10 }
 0xbe5   :  { %v2400_v59 = vadd.f32 1e-05, %v2398_v29 }
 0xbe7   :  { %5470 = vrsqrt.f32 %v2400_v59  ;;  %vm2417_vm14 = vweird.f32 %v2400_v59 }
 0xbec   :  { %v2393_v34 = vpop.xlane.xlu0 %2392 }
 0xbed   :  { %v5471_v35 = vpop.eup %5470  ;;  %v2397_v32 = vmul.f32 %v2393_v34, %v6049_v10 }
 0xbee   :  { %v2412_v37 = vmul.f32 %v5471_v35, %v2400_v59  ;;  %vm2418_vm15 = vweird.f32 %v5471_v35 }
 0xbef   :  { %v2399_v38 = vadd.f32 1e-05, %v2397_v32  ;;  %vm2419_vm1 = vmor %vm2417_vm14, %vm2418_vm15 }
 0xbf0   :  { %v2413_v41 = vmul.f32 %v5471_v35, %v2412_v37 }
 0xbf1   :  { %5472 = vrsqrt.f32 %v2399_v38  ;;  %vm2407_vm2 = vweird.f32 %v2399_v38 }
 0xbf2   :  { %v2414_v45 = vmul.f32 0.5, %v2413_v41 }
 0xbf4   :  { %v2415_v46 = vsub.f32 1.5, %v2414_v45 }
 0xbf6   :  { %v2416_v49 = vmul.f32 %v5471_v35, %v2415_v46 }
 0xbf7   :  { %v5473_v47 = vpop.eup %5472 }
 0xbf8   :  { %v2402_v50 = vmul.f32 %v5473_v47, %v2399_v38  ;;  %v2420_v63 = vsel %vm2419_vm1, %v5471_v35, %v2416_v49  ;;  %vm2408_vm3 = vweird.f32 %v5473_v47 }
 0xbf9   :  { %v2422_v53 = vmul.f32 %v2420_v63, %v6257_v39  ;;  %vm2409_vm4 = vmor %vm2407_vm2, %vm2408_vm3 }
 0xbfa   :  { %v2403_v52 = vmul.f32 %v5473_v47, %v2402_v50 }
 0xbfb   :  { %v2424_v12 = vmul.f32 %v2422_v53, %v6069_v43 }
 0xbfc   :  { %v2404_v22 = vmul.f32 0.5, %v2403_v52 }
 0xbfd   :  { %v2426_v51 = vadd.f32 %v2424_v12, %v6073_v48 }
 0xbfe   :  { %v2405_v40 = vsub.f32 1.5, %v2404_v22 }
 0xc00   :  { %v2406_v54 = vmul.f32 %v5473_v47, %v2405_v40 }
 0xc02   :  { %v2410_v56 = vsel %vm2409_vm4, %v5473_v47, %v2406_v54 }
 0xc03   :  { %v2421_v60 = vmul.f32 %v2410_v56, %v6261_v44 }
 0xc05   :  { %v2423_v61 = vmul.f32 %v2421_v60, %v6069_v43 }
 0xc07   :  { %v2425_v0 = vadd.f32 %v2423_v61, %v6073_v48 }
 0xc09   :  { %v2461_v1 = vpack.c.bf16 %v2426_v51, %v2425_v0 }
 0xc0b   :  { %4895 = vmatmul.msk.bf16.vlgmr.msrb.gmra.mxu2 %vm299_vm0, %v2461_v1 }
 0xc3a   :  { %v6285_v2 = vpop.permute.xlu1 %2430 }
 0xc3b   :  { %4886 = vmatmul.msk.bf16.vlgmr.msrb.gmra.mxu1 %vm299_vm0, %v6285_v2 }
 0xc8e   :  { %v2489_v39 = vpop.f32.mrf.mxu2 }
 0xc8f   :  { %v6292_v3 = vadd.f32 %v5410_v42, %v2489_v39 }
 0xc96   :  { %v2491_v44 = vpop.f32.mrf.mxu2 }
 0xc97   :  { %v6294_v55 = vadd.f32 %v5410_v42, %v2491_v44 }
 0xc99   :  { %v5327_v5 = vpack.i.bf16 %v6294_v55, %v6292_v3 }
 0xcb8   :  { %v2456_v62 = vpop.f32.mrf.mxu1 }
 0xcb9   :  { %v2457_v57 = vadd.f32 %v2456_v62, %v2428_v6 }
 0xcbb   :  { %v5227_v8 = vpack.i.bf16 %v2457_v57, %v6292_v3 }
 0xcbd   :  { %5228 = vxpose.xlu2.b32.start.end [1/1] (short) (narrow) %v5227_v8, 32 }
 0xcc0   :  { %v2458_v9 = vpop.f32.mrf.mxu1 }
 0xcc1   :  { %v2459_v11 = vadd.f32 %v2458_v9, %v2428_v6 }
 0xcc3   :  { %v5256_v13 = vpack.i.bf16 %v2459_v11, %v6294_v55 }
 0xcc5   :  { %5257 = vxpose.xlu1.b32.start.end [1/1] (short) (narrow) %v5256_v13, 32 }
 0xd56   :  { %v5229_v14 = vpop.trf.xlu2 }
 0xd57   :  { %5279 = vxpose.xlu0.b32.start.end [1/1] (short) (narrow) %v5229_v14, 8 }
 0xd5e   :  { %v5234_v7 = vpop.trf.xlu2 }
 0xd5f   :  { %v5238_v17 = vunpack.i.h.bf16 %v5234_v7  ;;  %v5235_v20 = vunpack.i.l.bf16 %v5234_v7 }
 0xd66   :  { %v5239_v15 = vpop.trf.xlu2 }
 0xd67   :  { %v5240_v16 = vunpack.i.l.bf16 %v5239_v15  ;;  %v5243_v30 = vunpack.i.h.bf16 %v5239_v15 }
 0xd69   :  { %v5258_v58 = vpop.trf.xlu1  ;;  %v5285_v18 = vpack.i.bf16 %v5238_v17, %v5240_v16 }
 0xd6a   :  { %v5259_v19 = vunpack.i.l.bf16 %v5258_v58  ;;  %v5262_v37 = vunpack.i.h.bf16 %v5258_v58 }
 0xd6b   :  { %5286 = vxpose.xlu0.b32.start.end [1/1] (short) (narrow) %v5285_v18, 8 }
 0xd6e   :  { %v5244_v26 = vpop.trf.xlu2 }
 0xd6f   :  { %v5248_v4 = vunpack.i.h.bf16 %v5244_v26  ;;  %v5245_v21 = vunpack.i.l.bf16 %v5244_v26 }
 0xd71   :  { %v5263_v23 = vpop.trf.xlu1  ;;  %v5306_v27 = vpack.i.bf16 %v5248_v4, %v5259_v19  ;;  %v5249_v28 = vpack.i.bf16 %v5235_v20, %v5245_v21 }
 0xd72   :  { %v5264_v29 = vunpack.i.l.bf16 %v5263_v23  ;;  %v5267_v34 = vunpack.i.h.bf16 %v5263_v23 }
 0xd73   :  { %5307 = vxpose.xlu1.b32.start.end [1/1] (short) (narrow) %v5306_v27, 8  ;;  %5250 = vxpose.xlu2.b32.start.end [1/1] (short) (narrow) %v5249_v28, 8 }
 0xd74   :  { %v5299_v59 = vpack.i.bf16 %v5264_v29, %v5243_v30 }
 0xd76   :  { %5300 = vxpose.xlu0.b32.start.end [1/1] (short) (narrow) %v5299_v59, 8 }
 0xd79   :  { %v5268_v31 = vpop.trf.xlu1 }
 0xd7a   :  { %v5272_v33 = vunpack.i.h.bf16 %v5268_v31  ;;  %v5269_v45 = vunpack.i.l.bf16 %v5268_v31 }
 0xd7c   :  { %v5313_v35 = vpack.i.bf16 %v5272_v33, %v5267_v34 }
 0xd7e   :  { %5314 = vxpose.xlu0.b32.start.end [1/1] (short) (narrow) %v5313_v35, 8 }
 0xd81   :  { %v5273_v32 = vpop.trf.xlu1 }
 0xd82   :  { %v5274_v36 = vunpack.i.l.bf16 %v5273_v32  ;;  %v5277_v41 = vunpack.i.h.bf16 %v5273_v32 }
 0xd84   :  { %v5292_v38 = vpack.i.bf16 %v5274_v36, %v5262_v37  ;;  %v5320_v46 = vpack.i.bf16 %v5269_v45, %v5277_v41 }
 0xd86   :  { %5293 = vxpose.xlu2.b32.start.end [1/1] (short) (narrow) %v5292_v38, 8 }
 0xd8e   :  { %5321 = vxpose.xlu2.b32.start.end [1/1] (short) (narrow) %v5320_v46, 8 }
 0xdfb   :  { %v5280_v47 = vpop.trf.xlu0 }
 0xdfc   :  { %v5281_v49 = vunpack.i.l.bf16 %v5280_v47  ;;  %v5284_v52 = vunpack.i.h.bf16 %v5280_v47 }
 0xdfe   :  { %v3142_v50 = vpack.c.bf16 %v5281_v49, %v5281_v49  ;;  %v2814_v22 = vpack.c.bf16 %v5284_v52, %v5284_v52 }
 0xe00   :  { %v3490_v63 = vsel %vm1388_vm8, %v3142_v50, 0 }
 0xe01   :  { %3499 = vmatpush.bf16.xpose.msrb.mxu3 %v3490_v63 }
 0xe08   :  { %4896 = vmatmul.msk.bf16.vlgmr.msrb.gmra.mxu3 %vm1388_vm8, %v2814_v22 }
 0xe0c   :  { %v5251_v40 = vpop.trf.xlu2 }
 0xe0d   :  { %v5255_v53 = vunpack.i.h.bf16 %v5251_v40  ;;  %v5252_v54 = vunpack.i.l.bf16 %v5251_v40 }
 0xe0f   :  { %v3143_v56 = vpack.c.bf16 %v5255_v53, %v5255_v53  ;;  %v5287_v12 = vpop.trf.xlu0  ;;  %v3145_v60 = vpack.c.bf16 %v5252_v54, %v5252_v54 }
 0xe10   :  { %v5288_v61 = vunpack.i.l.bf16 %v5287_v12  ;;  %v5291_v0 = vunpack.i.h.bf16 %v5287_v12 }
 0xe11   :  { %v3509_v51 = vsel %vm1388_vm8, %v3143_v56, 0  ;;  %v3547_v1 = vsel %vm1388_vm8, %v3145_v60, 0 }
 0xe12   :  { %3518 = vmatpush.bf16.xpose.msra.mxu0 %v3509_v51  ;;  %3556 = vmatpush.bf16.xpose.msra.mxu2 %v3547_v1  ;;  %v3144_v39 = vpack.c.bf16 %v5288_v61, %v5288_v61  ;;  %v2815_v44 = vpack.c.bf16 %v5291_v0, %v5291_v0 }
 0xe14   :  { %v3528_v42 = vsel %vm1388_vm8, %v3144_v39, 0 }
 0xe15   :  { %3537 = vmatpush.bf16.xpose.msra.mxu1 %v3528_v42 }
 0xe17   :  { %v5308_v6 = vpop.trf.xlu1 }
 0xe18   :  { %v5312_v62 = vunpack.i.h.bf16 %v5308_v6  ;;  %v5309_v57 = vunpack.i.l.bf16 %v5308_v6 }
 0xe19   :  { %4897 = vmatmul.msk.bf16.vlgmr.msra.gmra.mxu0 %vm1388_vm8, %v2815_v44 }
 0xe1a   :  { %v2817_v8 = vpack.c.bf16 %v5312_v62, %v5312_v62  ;;  %v5301_v9 = vpop.trf.xlu0  ;;  %v3146_v11 = vpack.c.bf16 %v5309_v57, %v5309_v57 }
 0xe1b   :  { %v5305_v13 = vunpack.i.h.bf16 %v5301_v9  ;;  %v5302_v14 = vunpack.i.l.bf16 %v5301_v9 }
 0xe1c   :  { %4899 = vmatmul.msk.bf16.vlgmr.msra.gmra.mxu2 %vm1388_vm8, %v2817_v8  ;;  %v3566_v7 = vsel %vm1388_vm8, %v3146_v11, 0 }
 0xe1d   :  { %v2816_v15 = vpack.c.bf16 %v5302_v14, %v5302_v14  ;;  %3575 = vmatpush.bf16.xpose.msra.mxu3 %v3566_v7  ;;  %v3147_v16 = vpack.c.bf16 %v5305_v13, %v5305_v13 }
 0xe1f   :  { %v5294_v17 = vpop.trf.xlu2  ;;  %4898 = vmatmul.msk.bf16.vlgmr.msra.gmra.mxu1 %vm1388_vm8, %v2816_v15  ;;  %v3585_v58 = vsel %vm1388_vm8, %v3147_v16, 0 }
 0xe20   :  { %v5298_v18 = vunpack.i.h.bf16 %v5294_v17  ;;  %v5295_v26 = vunpack.i.l.bf16 %v5294_v17  ;;  %3594 = vmatpush.bf16.xpose.msrb.mxu0 %v3585_v58 }
 0xe22   :  { %v2818_v19 = vpack.c.bf16 %v5295_v26, %v5295_v26  ;;  %v3149_v20 = vpack.c.bf16 %v5298_v18, %v5298_v18  ;;  %v5315_v4 = vpop.trf.xlu0 }
 0xe23   :  { %v5316_v21 = vunpack.i.l.bf16 %v5315_v4  ;;  %v5319_v34 = vunpack.i.h.bf16 %v5315_v4 }
 0xe24   :  { %4900 = vmatmul.msk.bf16.vlgmr.msra.gmra.mxu3 %vm1388_vm8, %v2818_v19  ;;  %v3623_v23 = vsel %vm1388_vm8, %v3149_v20, 0 }
 0xe25   :  { %3632 = vmatpush.bf16.xpose.msrb.mxu2 %v3623_v23  ;;  %v2819_v27 = vpack.c.bf16 %v5316_v21, %v5316_v21  ;;  %v2820_v35 = vpack.c.bf16 %v5319_v34, %v5319_v34 }
 0xe27   :  { %v5322_v28 = vpop.trf.xlu2 }
 0xe28   :  { %v5326_v29 = vunpack.i.h.bf16 %v5322_v28  ;;  %v5323_v30 = vunpack.i.l.bf16 %v5322_v28 }
 0xe29   :  { %4901 = vmatmul.msk.bf16.vlgmr.msrb.gmra.mxu0 %vm1388_vm8, %v2819_v27 }
 0xe2a   :  { %v2821_v59 = vpack.c.bf16 %v5323_v30, %v5323_v30  ;;  %v3148_v31 = vpack.c.bf16 %v5326_v29, %v5326_v29 }
 0xe2c   :  { %4903 = vmatmul.msk.bf16.vlgmr.msrb.gmra.mxu2 %vm1388_vm8, %v2821_v59  ;;  %v3604_v33 = vsel %vm1388_vm8, %v3148_v31, 0 }
 0xe2d   :  { %3613 = vmatpush.bf16.xpose.msrb.mxu1 %v3604_v33 }
 0xe34   :  { %4902 = vmatmul.msk.bf16.vlgmr.msrb.gmra.mxu1 %vm1388_vm8, %v2820_v35 }
 0xe8b   :  { %v3501_v32 = vpop.f32.mrf.mxu3 }
 0xe8c   :  { %v3638_v36 = vmul.f32 0.35355338, %v3501_v32 }
 0xe8e   :  { %v3646_v37 = vsel %vm1388_vm8, %v3638_v36, -inf }
 0xe8f   :  { %3647 = vmax.xlane.f32.xlu1 %v3646_v37 }
 0xe93   :  { %v3503_v45 = vpop.f32.mrf.mxu3 }
 0xe96   :  { %v3520_v38 = vpop.f32.mrf.mxu0 }
 0xe97   :  { %v6318_v41 = vmul.f32 0.35355338, %v3520_v38 }
 0xe99   :  { %v3649_v46 = vsel %vm1388_vm8, %v6318_v41, -inf }
 0xe9a   :  { %3650 = vmax.xlane.f32.xlu2 %v3649_v46 }
 0xe9c   :  { %v3539_v47 = vpop.f32.mrf.mxu1 }
 0xe9d   :  { %v6322_v49 = vmul.f32 0.35355338, %v3539_v47 }
 0xe9e   :  { %v3522_v50 = vpop.f32.mrf.mxu0 }
 0xe9f   :  { %v3558_v52 = vpop.f32.mrf.mxu2  ;;  %v3652_v63 = vsel %vm1388_vm8, %v6322_v49, -inf }
 0xea0   :  { %v3641_v22 = vmul.f32 0.35355338, %v3558_v52  ;;  %3653 = vmax.xlane.f32.xlu1 %v3652_v63 }
 0xea2   :  { %v3655_v40 = vsel %vm1388_vm8, %v3641_v22, -inf }
 0xea3   :  { %3656 = vmax.xlane.f32.xlu0 %v3655_v40 }
 0xea4   :  { %v3541_v53 = vpop.f32.mrf.mxu1 }
 0xea6   :  { %v3596_v54 = vpop.f32.mrf.mxu0 }
 0xea7   :  { %v3560_v56 = vpop.f32.mrf.mxu2  ;;  %v3577_v12 = vpop.f32.mrf.mxu3  ;;  %v3643_v51 = vmul.f32 0.35355338, %v3596_v54 }
 0xea8   :  { %v6327_v60 = vmul.f32 0.35355338, %v3577_v12 }
 0xea9   :  { %v3661_v44 = vsel %vm1388_vm8, %v3643_v51, -inf }
 0xeaa   :  { %v3658_v61 = vsel %vm1388_vm8, %v6327_v60, -inf }
 0xeab   :  { %3659 = vmax.xlane.f32.xlu1 %v3658_v61 }
 0xeae   :  { %v3598_v0 = vpop.f32.mrf.mxu0 }
 0xeaf   :  { %v3579_v1 = vpop.f32.mrf.mxu3  ;;  %v3634_v39 = vpop.f32.mrf.mxu2 }
 0xeb0   :  { %v6331_v42 = vmul.f32 0.35355338, %v3634_v39 }
 0xeb1   :  { %v3615_v6 = vpop.f32.mrf.mxu1 }
 0xeb2   :  { %v3667_v62 = vsel %vm1388_vm8, %v6331_v42, -inf  ;;  %v3644_v50 = vmul.f32 0.35355338, %v3615_v6 }
 0xeb3   :  { %3668 = vmax.xlane.f32.xlu2 %v3667_v62  ;;  %3662 = vmax.xlane.f32.xlu1 %v3661_v44 }
 0xeb4   :  { %v3664_v63 = vsel %vm1388_vm8, %v3644_v50, -inf }
 0xeb7   :  { %v3636_v57 = vpop.f32.mrf.mxu2 }
 0xeb9   :  { %v3617_v8 = vpop.f32.mrf.mxu1 }
 0xecc   :  { %5328 = vrot.lane.b32.xlu1 %v5327_v5, %s5870_s26 }
 0xf02   :  { %v3648_v9 = vpop.xlane.xlu1 %3647 }
 0xf03   :  { %v3670_v18 = vsub.f32 %v3638_v36, %v3648_v9 }
 0xf05   :  { %v3678_v26 = vmul.f32 1.442695, %v3670_v18 }
 0xf0d   :  { %v3651_v4 = vpop.xlane.xlu2 %3650 }
 0xf0e   :  { %v3671_v46 = vsub.f32 %v6318_v41, %v3651_v4 }
 0xf10   :  { %v3680_v47 = vmul.f32 1.442695, %v3671_v46 }
 0xf13   :  { %v3654_v11 = vpop.xlane.xlu1 %3653 }
 0xf14   :  { %v3672_v52 = vsub.f32 %v6322_v49, %v3654_v11 }
 0xf16   :  { %v3657_v19 = vpop.xlane.xlu0 %3656 }
 0xf17   :  { %v3673_v3 = vsub.f32 %v3641_v22, %v3657_v19  ;;  %v3682_v22 = vmul.f32 1.442695, %v3672_v52 }
 0xf19   :  { %v3684_v55 = vmul.f32 1.442695, %v3673_v3 }
 0xf1e   :  { %v3660_v13 = vpop.xlane.xlu1 %3659 }
 0xf1f   :  { %v3674_v53 = vsub.f32 %v6327_v60, %v3660_v13 }
 0xf21   :  { %v3686_v56 = vmul.f32 1.442695, %v3674_v53 }
 0xf26   :  { %v3663_v14 = vpop.xlane.xlu1 %3662  ;;  %v6349_v27 = vpop.xlane.xlu2 %3668 }
 0xf27   :  { %v3675_v7 = vsub.f32 %v3643_v51, %v3663_v14 }
 0xf29   :  { %v3688_v15 = vmul.f32 1.442695, %v3675_v7 }
 0xf2b   :  { %5474 = vpow2.f32 %v3688_v15 }
 0xf2c   :  { %5476 = vpow2.f32 %v3678_v26 }
 0xf2d   :  { %5478 = vpow2.f32 %v3684_v55 }
 0xf2e   :  { %5480 = vpow2.f32 %v3680_v47 }
 0xf2f   :  { %5482 = vpow2.f32 %v3682_v22 }
 0xf30   :  { %5484 = vpow2.f32 %v3686_v56 }
 0xf31   :  { %v6340_v16 = vpop.eup %5474 }
 0xf32   :  { %v3709_v17 = vsel %vm1388_vm8, %v6340_v16, 0.0  ;;  %v5477_v5 = vpop.eup %5476 }
 0xf33   :  { %3710 = vadd.xlane.f32.xlu1 %v3709_v17  ;;  %v3694_v20 = vsel %vm1388_vm8, %v5477_v5, 0.0  ;;  %v6345_v21 = vpop.eup %5478 }
 0xf34   :  { %v3703_v23 = vsel %vm1388_vm8, %v6345_v21, 0.0  ;;  %v6359_v40 = vpop.eup %5480 }
 0xf35   :  { %v3697_v54 = vsel %vm1388_vm8, %v6359_v40, 0.0  ;;  %v6364_v41 = vpop.eup %5482 }
 0xf36   :  { %v3700_v49 = vsel %vm1388_vm8, %v6364_v41, 0.0  ;;  %v6368_v12 = vpop.eup %5484 }
 0xf37   :  { %v3706_v61 = vsel %vm1388_vm8, %v6368_v12, 0.0 }
 0xf3e   :  { %v5329_v58 = vpop.permute.xlu1 %5328 }
 0xf3f   :  { %5333 = vxpose.xlu2.b32.start.end [1/1] (short) (narrow) %v5329_v58, 32 }
 0xfa6   :  { %v3711_v62 = vpop.xlane.xlu1 %3710 }
 0xfc8   :  { %3695 = vadd.xlane.f32.xlu2 %v3694_v20 }
 0xfd0   :  { %3704 = vadd.xlane.f32.xlu2 %v3703_v23 }
 0xfd8   :  { %v5334_v28 = vpop.trf.xlu2 }
 0xfd9   :  { %v5335_v29 = vunpack.i.l.bf16 %v5334_v28  ;;  %v5338_v59 = vunpack.i.h.bf16 %v5334_v28 }
 0xfdb   :  { %3222 = vxpose.xlu0.b32.start.end [1/1] (short) (narrow) %v5335_v29, 8 }
 0xfe0   :  { %v5339_v30 = vpop.trf.xlu2 }
 0xfe1   :  { %v5340_v35 = vunpack.i.l.bf16 %v5339_v30  ;;  %v5343_v38 = vunpack.i.h.bf16 %v5339_v30 }
 0xfe3   :  { %3350 = vxpose.xlu0.b32.start.end [1/1] (short) (narrow) %v5338_v59, 8  ;;  %v3677_v59 = vsub.f32 %v6331_v42, %v6349_v27 }
 0xfe8   :  { %v6351_v31 = vpop.trf.xlu2 }
 0xfe9   :  { %v5345_v33 = vunpack.i.l.bf16 %v6351_v31 }
 0xfeb   :  { %3286 = vxpose.xlu1.b32.start.end [1/1] (short) (narrow) %v5345_v33, 8 }
 0xff0   :  { %v5349_v34 = vpop.trf.xlu2 }
 0xff1   :  { %v5350_v32 = vunpack.i.l.bf16 %v5349_v34  ;;  %v5353_v37 = vunpack.i.h.bf16 %v5349_v34  ;;  %v3692_v34 = vmul.f32 1.442695, %v3677_v59 }
 0xff3   :  { %v5354_v36 = vpack.i.bf16 %v5350_v32, %v5340_v35  ;;  %v5361_v45 = vpack.i.bf16 %v5353_v37, %v5343_v38 }
 0xff9   :  { %5355 = vxpose.xlu2.b32.start.end [1/1] (short) (narrow) %v5354_v36, 8 }
0x1001   :  { %5362 = vxpose.xlu2.b32.start.end [1/1] (short) (narrow) %v5361_v45, 8 }
0x103b   :  { %v3696_v51 = vpop.xlane.xlu2 %3695 }
0x103c   :  { %5486 = vrcp.f32 %v3696_v51 }
0x1042   :  { %v5487_v60 = vpop.eup %5486 }
0x1043   :  { %v3726_v1 = vmul.f32 %v5487_v60, %v5477_v5  ;;  %v3705_v57 = vpop.xlane.xlu2 %3704 }
0x1044   :  { %5488 = vrcp.f32 %v3705_v57 }
0x1045   :  { %4392 = vrot.lane.b32.xlu1 %v6271_v25, %s5870_s26  ;;  %v3734_v6 = vpack.c.bf16 %v3726_v1, %v3726_v1 }
0x104a   :  { %v5489_v11 = vpop.eup %5488 }
0x104b   :  { %v3729_v15 = vmul.f32 %v5489_v11, %v6345_v21 }
0x104d   :  { %v3737_v19 = vpack.c.bf16 %v3729_v15, %v3729_v15 }
0x1054   :  { %3665 = vmax.xlane.f32.xlu0 %v3664_v63 }
0x105c   :  { %3698 = vadd.xlane.f32.xlu0 %v3697_v54 }
0x1064   :  { %3701 = vadd.xlane.f32.xlu0 %v3700_v49 }
0x106c   :  { %3707 = vadd.xlane.f32.xlu0 %v3706_v61  ;;  %v5348_v61 = vunpack.i.h.bf16 %v6351_v31 }
0x107f   :  { %v3238_v0 = vpop.trf.xlu0 }
0x1080   :  { %v3478_v39 = vpack.c.bf16 %v3238_v0, %v3238_v0 }
0x1082   :  { %v3746_v44 = vsel %vm1663_vm10, %v3478_v39, 0 }
0x1083   :  { %3755 = vmatpush.bf16.msrb.mxu3 %v3746_v44 }
0x1086   :  { %4904 = vmatmul.msk.bf16.vlgmr.msrb.gmra.mxu3 %vm1388_vm8, %v3734_v6 }
0x1087   :  { %v3366_v18 = vpop.trf.xlu0 }
0x1088   :  { %v3482_v26 = vpack.c.bf16 %v3366_v18, %v3366_v18 }
0x108a   :  { %v3822_v3 = vsel %vm1663_vm10, %v3482_v26, 0 }
0x108b   :  { %3831 = vmatpush.bf16.msra.mxu3 %v3822_v3 }
0x108f   :  { %v3302_v8 = vpop.trf.xlu1 }
0x1090   :  { %v3480_v9 = vpack.c.bf16 %v3302_v8, %v3302_v8 }
0x1092   :  { %v5356_v13 = vpop.trf.xlu2  ;;  %v3784_v14 = vsel %vm1663_vm10, %v3480_v9, 0 }
0x1093   :  { %v5360_v7 = vunpack.i.h.bf16 %v5356_v13  ;;  %3793 = vmatpush.bf16.msra.mxu1 %v3784_v14  ;;  %v5357_v55 = vunpack.i.l.bf16 %v5356_v13 }
0x1095   :  { %v3481_v17 = vpack.c.bf16 %v5360_v7, %v5360_v7  ;;  %v3479_v5 = vpack.c.bf16 %v5357_v55, %v5357_v55  ;;  %v5004_v55 = vld [vmem:[#allocation16 + $0x8] sm:$0xff] }
0x1097   :  { %v3803_v58 = vsel %vm1663_vm10, %v3481_v17, 0  ;;  %v3765_v20 = vsel %vm1663_vm10, %v3479_v5, 0 }
0x1098   :  { %3812 = vmatpush.bf16.msra.mxu2 %v3803_v58  ;;  %3774 = vmatpush.bf16.msra.mxu0 %v3765_v20 }
0x109a   :  { %v5363_v4 = vpop.trf.xlu2 }
0x109b   :  { %4907 = vmatmul.msk.bf16.vlgmr.msra.gmra.mxu2 %vm1388_vm8, %v3737_v19  ;;  %v5364_v23 = vunpack.i.l.bf16 %v5363_v4  ;;  %v5367_v1 = vunpack.i.h.bf16 %v5363_v4  ;;  %v5003_v4 = vld [vmem:[#allocation16] sm:$0xff] }
0x109d   :  { %v3483_v21 = vpack.c.bf16 %v5364_v23, %v5364_v23  ;;  %v3485_v39 = vpack.c.bf16 %v5367_v1, %v5367_v1 }
0x109f   :  { %v3841_v30 = vsel %vm1663_vm10, %v3483_v21, 0 }
0x10a0   :  { %3850 = vmatpush.bf16.msrb.mxu0 %v3841_v30 }
0x10c7   :  { %v3666_v28 = vpop.xlane.xlu0 %3665 }
0x10c8   :  { %v3676_v29 = vsub.f32 %v3644_v50, %v3666_v28 }
0x10ca   :  { %v3690_v33 = vmul.f32 1.442695, %v3676_v29 }
0x10cc   :  { %5490 = vpow2.f32 %v3690_v33 }
0x10cf   :  { %v3699_v35 = vpop.xlane.xlu0 %3698 }
0x10d0   :  { %5492 = vrcp.f32 %v3699_v35 }
0x10d1   :  { %5494 = vpow2.f32 %v3692_v34 }
0x10d2   :  { %v5491_v32 = vpop.eup %5490 }
0x10d3   :  { %v3712_v36 = vsel %vm1388_vm8, %v5491_v32, 0.0 }
0x10d4   :  { %3713 = vadd.xlane.f32.xlu0 %v3712_v36 }
0x10d6   :  { %v5493_v37 = vpop.eup %5492 }
0x10d7   :  { %v3727_v38 = vmul.f32 %v5493_v37, %v6359_v40  ;;  %v3702_v45 = vpop.xlane.xlu0 %3701  ;;  %v5495_v46 = vpop.eup %5494 }
0x10d8   :  { %5496 = vrcp.f32 %v3702_v45  ;;  %v3715_v42 = vsel %vm1388_vm8, %v5495_v46, 0.0 }
0x10d9   :  { %v3735_v47 = vpack.c.bf16 %v3727_v38, %v3727_v38  ;;  %5498 = vrcp.f32 %v3711_v62 }
0x10db   :  { %4905 = vmatmul.msk.bf16.vlgmr.msra.gmra.mxu0 %vm1388_vm8, %v3735_v47  ;;  %v5002_v47 = vld [vmem:[#allocation14 + $0x8] sm:$0xff] }
0x10dc   :  { %3716 = vadd.xlane.f32.xlu0 %v3715_v42  ;;  %4269 = vmatpush.bf16.msra.mxu0 %v5002_v47  ;;  %v5001_v42 = vld [vmem:[#allocation14] sm:$0xff] }
0x10de   :  { %v5497_v27 = vpop.eup %5496 }
0x10df   :  { %v3728_v50 = vmul.f32 %v5497_v27, %v6364_v41  ;;  %v3708_v52 = vpop.xlane.xlu0 %3707  ;;  %v5499_v22 = vpop.eup %5498 }
0x10e0   :  { %5500 = vrcp.f32 %v3708_v52  ;;  %v3731_v40 = vmul.f32 %v5499_v22, %v6340_v16  ;;  %v3879_v16 = vsel %vm1663_vm10, %v3485_v39, 0  ;;  %4270 = vmatpush.bf16.msra.mxu0 %v5001_v42 }
0x10e1   :  { %v3736_v63 = vpack.c.bf16 %v3728_v50, %v3728_v50  ;;  %3888 = vmatpush.bf16.msrb.mxu2 %v3879_v16  ;;  %v6406_v50 = vld [vmem:[%s6528_s18] sm:$0xff] }
0x10e2   :  { %v3739_v56 = vpack.c.bf16 %v3731_v40, %v3731_v40  ;;  %v4215_v52 = vperm.slane %v6406_v50, 2 }
0x10e3   :  { %4906 = vmatmul.msk.bf16.vlgmr.msra.gmra.mxu1 %vm1388_vm8, %v3736_v63 }
0x10e6   :  { %v5501_v53 = vpop.eup %5500 }
0x10e7   :  { %v3730_v54 = vmul.f32 %v5501_v53, %v6368_v12 }
0x10e9   :  { %v3738_v49 = vpack.c.bf16 %v3730_v54, %v3730_v54 }
0x10eb   :  { %4908 = vmatmul.msk.bf16.vlgmr.msra.gmra.mxu3 %vm1388_vm8, %v3738_v49  ;;  %4909 = vmatmul.msk.bf16.vlgmr.msrb.gmra.mxu0 %vm1388_vm8, %v3739_v56 }
0x1105   :  { %3414 = vxpose.xlu0.b32.start.end [1/1] (short) (narrow) %v5348_v61, 8 }
0x1109   :  { %v3757_v41 = vpop.f32.mrf.mxu3 }
0x1111   :  { %v3759_v51 = vpop.f32.mrf.mxu3 }
0x1112   :  { %v6412_v51 = vld [vmem:[#allocation17 + $0x8] sm:$0xff] }
0x1113   :  { %4420 = vmatpush.bf16.msra.mxu2 %v6412_v51 }
0x111e   :  { %v3814_v60 = vpop.f32.mrf.mxu2 }
0x1126   :  { %v3816_v0 = vpop.f32.mrf.mxu2 }
0x1127   :  { %v6416_v0 = vld [vmem:[#allocation17] sm:$0xff] }
0x1128   :  { %4421 = vmatpush.bf16.msra.mxu2 %v6416_v0 }
0x1147   :  { %v3714_v44 = vpop.xlane.xlu0 %3713 }
0x114f   :  { %v3717_v12 = vpop.xlane.xlu0 %3716 }
0x1150   :  { %5502 = vrcp.f32 %v3717_v12 }
0x1151   :  { %5504 = vrcp.f32 %v3714_v44 }
0x1156   :  { %v5503_v6 = vpop.eup %5502 }
0x1157   :  { %v3733_v62 = vmul.f32 %v5503_v6, %v5495_v46  ;;  %v5505_v18 = vpop.eup %5504 }
0x1158   :  { %v3776_v57 = vpop.f32.mrf.mxu0  ;;  %v3732_v19 = vmul.f32 %v5505_v18, %v5491_v32  ;;  %v4994_v32 = vld [vmem:[#allocation8 + $0x8] sm:$0xff] }
0x1159   :  { %v3741_v8 = vpack.c.bf16 %v3733_v62, %v3733_v62  ;;  %4237 = vmatpush.bf16.msrb.mxu3 %v4994_v32  ;;  %v4343_v32 = vperm.slane %v6406_v50, 4 }
0x115a   :  { %v3740_v20 = vpack.c.bf16 %v3732_v19, %v3732_v19 }
0x115b   :  { %4911 = vmatmul.msk.bf16.vlgmr.msrb.gmra.mxu2 %vm1388_vm8, %v3741_v8 }
0x115c   :  { %4643 = vmatpush.bf16.msrb.mxu2 %v5004_v55 }
0x1160   :  { %v3778_v31 = vpop.f32.mrf.mxu0  ;;  %v3795_v9 = vpop.f32.mrf.mxu1  ;;  %4644 = vmatpush.bf16.msrb.mxu2 %v5003_v4 }
0x1168   :  { %v3797_v11 = vpop.f32.mrf.mxu1  ;;  %v3852_v13 = vpop.f32.mrf.mxu0 }
0x1169   :  { %v5368_v14 = vpack.i.bf16 %v3852_v13, %v3776_v57 }
0x116b   :  { %5369 = vxpose.xlu0.b32.start.end [1/1] (short) (narrow) %v5368_v14, 8 }
0x116e   :  { %v3833_v7 = vpop.f32.mrf.mxu3 }
0x116f   :  { %v5375_v15 = vpack.i.bf16 %v3833_v7, %v3757_v41 }
0x1170   :  { %v3854_v17 = vpop.f32.mrf.mxu0 }
0x1171   :  { %5376 = vxpose.xlu2.b32.start.end [1/1] (short) (narrow) %v5375_v15, 8 }
0x1176   :  { %v3835_v58 = vpop.f32.mrf.mxu3 }
0x11a9   :  { %v3430_v26 = vpop.trf.xlu0 }
0x11aa   :  { %v3484_v3 = vpack.c.bf16 %v3430_v26, %v3430_v26 }
0x11ac   :  { %v3860_v5 = vsel %vm1663_vm10, %v3484_v3, 0 }
0x11ad   :  { %3869 = vmatpush.bf16.msrb.mxu1 %v3860_v5 }
0x11b0   :  { %4910 = vmatmul.msk.bf16.vlgmr.msrb.gmra.mxu1 %vm1388_vm8, %v3740_v20 }
0x11b1   :  { %4295 = vmatpush.bf16.msra.mxu1 %v5004_v55 }
0x11b5   :  { %4296 = vmatpush.bf16.msra.mxu1 %v5003_v4 }
0x11b9   :  { %4622 = vmatpush.bf16.msrb.mxu1 %v5002_v47 }
0x11bd   :  { %4623 = vmatpush.bf16.msrb.mxu1 %v5001_v42 }
0x11c0   :  { %4938 = vmatmul.msk.bf16.vlgmr.msra.gmra.mxu1 %vm299_vm0, %v6285_v2  ;;  %v4993_v2 = vld [vmem:[#allocation8] sm:$0xff] }
0x11c1   :  { %4238 = vmatpush.bf16.msrb.mxu3 %v4993_v2 }
0x11de   :  { %v3890_v23 = vpop.f32.mrf.mxu2 }
0x11df   :  { %v5389_v21 = vpack.i.bf16 %v3890_v23, %v3814_v60 }
0x11e1   :  { %5390 = vxpose.xlu0.b32.start.end [1/1] (short) (narrow) %v5389_v21, 8  ;;  %v4393_v21 = vpop.permute.xlu1 %4392 }
0x11e6   :  { %v3892_v28 = vpop.f32.mrf.mxu2 }
0x120a   :  { %v5377_v34 = vpop.trf.xlu2 }
0x120f   :  { %v5370_v59 = vpop.trf.xlu0 }
0x122d   :  { %v3871_v29 = vpop.f32.mrf.mxu1 }
0x122e   :  { %v5382_v30 = vpack.i.bf16 %v3871_v29, %v3795_v9 }
0x1230   :  { %5383 = vxpose.xlu2.b32.start.end [1/1] (short) (narrow) %v5382_v30, 8 }
0x1235   :  { %v3873_v33 = vpop.f32.mrf.mxu1 }
0x1238   :  { %5397 = vxpose.xlu2.b32.start [1/4] (short) (narrow) %v5377_v34, 8 }
0x123d   :  { %v4298_v49 = vpop.f32.mrf.mxu1 }
0x1240   :  { %5399 = vxpose.xlu2.b32.cont [2/4] (short) (narrow) %v5370_v59, 8 }
0x1245   :  { %v4300_v1 = vpop.f32.mrf.mxu1 }
0x124f   :  { %4390 = vrot.lane.b32.xlu0 %v6269_v24, %s5870_s26 }
0x1285   :  { %v5391_v35 = vpop.trf.xlu0 }
0x12c1   :  { %v4391_v28 = vpop.permute.xlu0 %4390 }
0x12c9   :  { %v5384_v36 = vpop.trf.xlu2 }
0x12ca   :  { %5401 = vxpose.xlu2.b32.cont [3/4] (short) (narrow) %v5384_v36, 8 }
0x12d2   :  { %5403 = vxpose.xlu2.b32.end [4/4] (short) (narrow) %v5391_v35, 8 }
0x1353   :  { %v5404_v37 = vpop.trf.xlu2 }
0x1354   :  { %v5408_v38 = vunpack.i.h.bf16 %v5404_v37  ;;  %v5405_v45 = vunpack.i.l.bf16 %v5404_v37 }
0x1356   :  { %v4214_v46 = vpack.c.bf16 %v5408_v38, %v5405_v45 }
0x1358   :  { %4920 = vmatmul.msk.bf16.vlgmr.msrb.gmra.mxu3 %vm299_vm0, %v4214_v46 }
0x13db   :  { %v4240_v27 = vpop.f32.mrf.mxu3 }
0x13dc   :  { %v4241_v63 = vadd.f32 %v4240_v27, %v4215_v52 }
0x13de   :  { %v4245_v53 = vmax.f32 %v4241_v63, 0.0 }
0x13e3   :  { %v4242_v22 = vpop.f32.mrf.mxu3 }
0x13e4   :  { %v4243_v40 = vadd.f32 %v4242_v22, %v4215_v52 }
0x13e6   :  { %v4246_v54 = vmax.f32 %v4243_v40, 0.0 }
0x13e8   :  { %v4247_v56 = vpack.c.bf16 %v4246_v54, %v4245_v53 }
0x13ea   :  { %4929 = vmatmul.msk.bf16.vlgmr.msra.gmra.mxu0 %vm299_vm0, %v4247_v56 }
0x1467   :  { %v4272_v61 = vpop.f32.mrf.mxu0 }
0x1468   :  { %v6410_v41 = vadd.f32 %v4298_v49, %v4272_v61 }
0x146a   :  { %v4939_v60 = vmul.f32 -1.442695, %v6410_v41 }
0x146c   :  { %5506 = vpow2.f32 %v4939_v60 }
0x146f   :  { %v4274_v39 = vpop.f32.mrf.mxu0 }
0x1470   :  { %v6419_v16 = vadd.f32 %v4300_v1, %v4274_v39 }
0x1472   :  { %v5507_v44 = vpop.eup %5506  ;;  %v4940_v12 = vmul.f32 -1.442695, %v6419_v16 }
0x1473   :  { %v4311_v6 = vadd.f32 1.0, %v5507_v44 }
0x1474   :  { %5508 = vpow2.f32 %v4940_v12 }
0x1475   :  { %5510 = vrcp.f32 %v4311_v6  ;;  %v4324_v15 = vand.u32 2147483648, %v4311_v6  ;;  %vm4318_vm10 = vweird.f32 %v4311_v6  ;;  %v4322_v58 = vand.u32 2147483647, %v4311_v6 }
0x1477   :  { %v4325_v55 = vor.u32 1.1754944e-38, %v4324_v15  ;;  %vm4323_vm9 = vcmp.eq.f32.partialorder %v4322_v58, 8.507059e+37 }
0x147a   :  { %v5509_v62 = vpop.eup %5508 }
0x147b   :  { %v5511_v57 = vpop.eup %5510  ;;  %v4312_v8 = vadd.f32 1.0, %v5509_v62 }
0x147c   :  { %v4314_v31 = vmul.f32 %v5511_v57, %v4311_v6  ;;  %vm4319_vm8 = vweird.f32 %v5511_v57 }
0x147d   :  { %5512 = vrcp.f32 %v4312_v8  ;;  %v4339_v18 = vand.u32 2147483648, %v4312_v8  ;;  %vm4320_vm5 = vmor %vm4318_vm10, %vm4319_vm8  ;;  %v4337_v3 = vand.u32 2147483647, %v4312_v8  ;;  %vm4333_vm7 = vweird.f32 %v4312_v8 }
0x147e   :  { %v4315_v9 = vsub.f32 1.0, %v4314_v31 }
0x147f   :  { %v4340_v20 = vor.u32 1.1754944e-38, %v4339_v18  ;;  %vm4338_vm12 = vcmp.eq.f32.partialorder %v4337_v3, 8.507059e+37 }
0x1480   :  { %v4316_v11 = vmul.f32 %v5511_v57, %v4315_v9 }
0x1482   :  { %v4317_v7 = vadd.f32 %v5511_v57, %v4316_v11 }
0x1483   :  { %v5513_v13 = vpop.eup %5512 }
0x1484   :  { %v4329_v14 = vmul.f32 %v5513_v13, %v4312_v8  ;;  %v4321_v19 = vsel %vm4320_vm5, %v5511_v57, %v4317_v7  ;;  %vm4334_vm6 = vweird.f32 %v5513_v13 }
0x1485   :  { %v4326_v4 = vsel %vm4323_vm9, %v4325_v55, %v4321_v19  ;;  %vm4335_vm11 = vmor %vm4333_vm7, %vm4334_vm6 }
0x1486   :  { %v4330_v17 = vsub.f32 1.0, %v4329_v14  ;;  %v4396_v30 = vmul.f32 %v4391_v28, %v4326_v4 }
0x1488   :  { %v4331_v26 = vmul.f32 %v5513_v13, %v4330_v17 }
0x148a   :  { %v4332_v5 = vadd.f32 %v5513_v13, %v4331_v26 }
0x148c   :  { %v4336_v23 = vsel %vm4335_vm11, %v5513_v13, %v4332_v5 }
0x148d   :  { %v4341_v29 = vsel %vm4338_vm12, %v4340_v20, %v4336_v23  ;;  %vm4592_vm12 = vcmask 523264  }
0x148e   :  { %v4397_v59 = vmul.f32 %v4393_v21, %v4341_v29 }
0x1490   :  { %v4398_v33 = vpack.c.bf16 %v4397_v59, %v4396_v30 }
0x1492   :  { %4951 = vmatmul.msk.bf16.vlgmr.msra.gmra.mxu2 %vm299_vm0, %v4398_v33 }
0x1515   :  { %v4423_v34 = vpop.f32.mrf.mxu2 }
0x1516   :  { %4430 = vrot.lane.b32.xlu2 %v4423_v34, %s5857_s24 }
0x151d   :  { %v4425_v35 = vpop.f32.mrf.mxu2 }
0x151e   :  { %4432 = vrot.lane.b32.xlu1 %v4425_v35, %s5857_s24 }
0x1526   :  { %4345 = vrot.lane.b32.xlu1 %v4343_v32, %s5871_s29 }
0x1570   :  { %v4431_v36 = vpop.permute.xlu2 %4430 }
0x1571   :  { %v4436_v2 = vadd.f32 %v4431_v36, %v4272_v61 }
0x1573   :  { %5514 = vtanh.f32 %v4436_v2 }
0x1579   :  { %v5515_v37 = vpop.eup %5514 }
0x157a   :  { %4446 = vrot.lane.b32.xlu1 %v5515_v37, %s5870_s26 }
0x1590   :  { %v4433_v38 = vpop.permute.xlu1 %4432 }
0x1591   :  { %v4437_v45 = vadd.f32 %v4433_v38, %v4274_v39 }
0x1593   :  { %5516 = vtanh.f32 %v4437_v45 }
0x1598   :  { %v6429_v47 = vpop.permute.xlu1 %4345 }
0x1599   :  { %v5517_v46 = vpop.eup %5516  ;;  %v4348_v42 = vsub.f32 %v6410_v41, %v6429_v47  ;;  %v4349_v53 = vsub.f32 %v6419_v16, %v6429_v47 }
0x159a   :  { %4448 = vrot.lane.b32.xlu0 %v5517_v46, %s5870_s26 }
0x159b   :  { %v4941_v27 = vmul.f32 -1.442695, %v4348_v42  ;;  %v4942_v56 = vmul.f32 -1.442695, %v4349_v53 }
0x159d   :  { %5518 = vpow2.f32 %v4941_v27 }
0x15a3   :  { %v5519_v52 = vpop.eup %5518 }
0x15a4   :  { %v4356_v63 = vadd.f32 1.0, %v5519_v52 }
0x15a6   :  { %5520 = vrcp.f32 %v4356_v63  ;;  %v4369_v60 = vand.u32 2147483648, %v4356_v63  ;;  %vm4363_vm14 = vweird.f32 %v4356_v63  ;;  %v4367_v1 = vand.u32 2147483647, %v4356_v63 }
0x15a7   :  { %5522 = vpow2.f32 %v4942_v56 }
0x15a8   :  { %v4370_v44 = vor.u32 1.1754944e-38, %v4369_v60  ;;  %vm4368_vm1 = vcmp.eq.f32.partialorder %v4367_v1, 8.507059e+37 }
0x15ac   :  { %v5521_v22 = vpop.eup %5520 }
0x15ad   :  { %v4359_v40 = vmul.f32 %v5521_v22, %v4356_v63  ;;  %vm4364_vm13 = vweird.f32 %v5521_v22  ;;  %v5523_v41 = vpop.eup %5522 }
0x15ae   :  { %vm4365_vm15 = vmor %vm4363_vm14, %vm4364_vm13  ;;  %v4357_v12 = vadd.f32 1.0, %v5523_v41 }
0x15af   :  { %v4360_v54 = vsub.f32 1.0, %v4359_v40 }
0x15b0   :  { %5524 = vrcp.f32 %v4357_v12  ;;  %v4384_v15 = vand.u32 2147483648, %v4357_v12  ;;  %vm4378_vm3 = vweird.f32 %v4357_v12  ;;  %v4382_v17 = vand.u32 2147483647, %v4357_v12 }
0x15b1   :  { %v4361_v49 = vmul.f32 %v5521_v22, %v4360_v54  ;;  %v5007_v54 = vld [vmem:[#allocation19] sm:$0xff] }
0x15b2   :  { %v4385_v18 = vor.u32 1.1754944e-38, %v4384_v15  ;;  %vm4383_vm8 = vcmp.eq.f32.partialorder %v4382_v17, 8.507059e+37  ;;  %v5011_v15 = vld [vmem:[%s6524_s14 + $0x10] sm:$0xff]  ;;  %v5010_v17 = vld [vmem:[%s6524_s14 + $0x8] sm:$0xff] }
0x15b3   :  { %v4362_v61 = vadd.f32 %v5521_v22, %v4361_v49 }
0x15b5   :  { %v4366_v39 = vsel %vm4365_vm15, %v5521_v22, %v4362_v61  ;;  %v5008_v22 = vld [vmem:[#allocation19 + $0x8] sm:$0xff] }
0x15b6   :  { %v4371_v6 = vsel %vm4368_vm1, %v4370_v44, %v4366_v39  ;;  %v5525_v9 = vpop.eup %5524  ;;  %4556 = vmatpush.bf16.msra.mxu3 %v5008_v22 }
0x15b7   :  { %v4440_v62 = vsub.f32 1.0, %v4371_v6  ;;  %v4374_v11 = vmul.f32 %v5525_v9, %v4357_v12  ;;  %vm4379_vm2 = vweird.f32 %v5525_v9 }
0x15b8   :  { %vm4380_vm4 = vmor %vm4378_vm3, %vm4379_vm2 }
0x15b9   :  { %v4442_v16 = vmul.f32 %v4440_v62, %v6269_v24  ;;  %v4375_v13 = vsub.f32 1.0, %v4374_v11 }
0x15ba   :  { %4557 = vmatpush.bf16.msra.mxu3 %v5007_v54 }
0x15bb   :  { %v4376_v14 = vmul.f32 %v5525_v9, %v4375_v13 }
0x15bd   :  { %v4377_v7 = vadd.f32 %v5525_v9, %v4376_v14 }
0x15be   :  { %4743 = vmatpush.bf16.msrb.mxu3 %v6412_v51 }
0x15bf   :  { %v4381_v58 = vsel %vm4380_vm4, %v5525_v9, %v4377_v7  ;;  %v5012_v7 = vld [vmem:[%s6524_s14 + $0x18] sm:$0xff] }
0x15c0   :  { %v4386_v24 = vsel %vm4383_vm8, %v4385_v18, %v4381_v58  ;;  %4600 = vmatpush.bf16.msrb.mxu0 %v5012_v7  ;;  %v5009_v58 = vld [vmem:[%s6524_s14] sm:$0xff]  ;;  %s5872_s14 = smov [#allocation20]  }
0x15c1   :  { %v4441_v26 = vsub.f32 1.0, %v4386_v24 }
0x15c2   :  { %4744 = vmatpush.bf16.msrb.mxu3 %v6416_v0 }
0x15c3   :  { %v4443_v3 = vmul.f32 %v4441_v26, %v6271_v25 }
0x15c4   :  { %4601 = vmatpush.bf16.msrb.mxu0 %v5011_v15 }
0x15c8   :  { %4602 = vmatpush.bf16.msrb.mxu0 %v5010_v17 }
0x15cc   :  { %4603 = vmatpush.bf16.msrb.mxu0 %v5009_v58 }
0x15ec   :  { %v4447_v57 = vpop.permute.xlu1 %4446 }
0x15ed   :  { %v4452_v8 = vmul.f32 %v4447_v57, %v4371_v6 }
0x15ef   :  { %v6436_v31 = vadd.f32 %v4452_v8, %v4442_v16 }
0x15f1   :  { %4458 = vrot.lane.b32.xlu1 %v6436_v31, %s5870_s26 }
0x160c   :  { %v4449_v19 = vpop.permute.xlu0 %4448 }
0x160d   :  { %v4453_v55 = vmul.f32 %v4449_v19, %v4386_v24  ;;  %v5411_v24 = vld [vmem:[%s6527_s17] ss:$0 sm:$0xff]  ;;  %s4793_s17 = sshll.u32 %s5872_s14, 4  ;;  %s4794_s17 = int_to_ptr.vmem [resolvable:$true] %s4793_s17 }
0x160f   :  { %v6441_v5 = vadd.f32 %v4453_v55, %v4443_v3 }
0x1611   :  { %4460 = vrot.lane.b32.xlu0 %v6441_v5, %s5870_s26  ;;  %v4630_v25 = vpack.c.bf16 %v6441_v5, %v6436_v31 }
0x1663   :  { %v6445_v20 = vpop.permute.xlu1 %4458 }
0x1664   :  { %v4464_v4 = vsel %vm299_vm0, %v6445_v20, 0.0 }
0x1665   :  { %4465 = vadd.xlane.f32.xlu1 %v4464_v4 }
0x1683   :  { %v6449_v23 = vpop.permute.xlu0 %4460 }
0x1684   :  { %v4467_v21 = vsel %vm299_vm0, %v6449_v23, 0.0 }
0x1685   :  { %4468 = vadd.xlane.f32.xlu0 %v4467_v21 }
0x1699   :  { %4517 = vrot.lane.b32.xlu0 %v6069_v43, %s5871_s29 }
0x16a1   :  { %4632 = vrot.lane.b32.xlu0 %v4630_v25, %s5870_s26 }
0x16d8   :  { %v4466_v28 = vpop.xlane.xlu1 %4465 }
0x16d9   :  { %v4470_v29 = vmul.f32 %v4466_v28, %v6049_v10  ;;  %v4567_v28 = vperm.slane %v6406_v50, 7 }
0x16db   :  { %v4472_v30 = vsub.f32 %v6436_v31, %v4470_v29 }
0x16dd   :  { %v4474_v59 = vmul.f32 %v4472_v30, %v4472_v30 }
0x16df   :  { %4478 = vrot.lane.b32.xlu2 %v4474_v59, %s5870_s26 }
0x16f8   :  { %v4469_v33 = vpop.xlane.xlu0 %4468 }
0x16f9   :  { %v4471_v34 = vmul.f32 %v4469_v33, %v6049_v10 }
0x16fb   :  { %v4473_v35 = vsub.f32 %v6441_v5, %v4471_v34 }
0x16fd   :  { %v4475_v32 = vmul.f32 %v4473_v35, %v4473_v35 }
0x16ff   :  { %4480 = vrot.lane.b32.xlu2 %v4475_v32, %s5870_s26 }
0x170b   :  { %v4518_v43 = vpop.permute.xlu0 %4517 }
0x1713   :  { %v4633_v36 = vpop.permute.xlu0 %4632 }
0x1714   :  { %4979 = vmatmul.msk.bf16.vlgmr.msrb.gmra.mxu2 %vm299_vm0, %v4633_v36 }
0x1739   :  { %v4479_v2 = vpop.permute.xlu2 %4478 }
0x173a   :  { %v4484_v37 = vsel %vm299_vm0, %v4479_v2, 0.0 }
0x173b   :  { %4485 = vadd.xlane.f32.xlu2 %v4484_v37 }
0x1759   :  { %v4481_v38 = vpop.permute.xlu2 %4480 }
0x175a   :  { %v4487_v45 = vsel %vm299_vm0, %v4481_v38, 0.0 }
0x175b   :  { %4488 = vadd.xlane.f32.xlu1 %v4487_v45 }
0x1774   :  { %4523 = vrot.lane.b32.xlu1 %v6073_v48, %s5871_s29 }
0x1797   :  { %v4646_v32 = vpop.f32.mrf.mxu2 }
0x179f   :  { %v4648_v37 = vpop.f32.mrf.mxu2 }
0x17ae   :  { %v4486_v46 = vpop.xlane.xlu2 %4485 }
0x17af   :  { %v4490_v42 = vmul.f32 %v4486_v46, %v6049_v10 }
0x17b1   :  { %v4492_v27 = vadd.f32 1e-05, %v4490_v42 }
0x17b3   :  { %5526 = vrsqrt.f32 %v4492_v27  ;;  %vm4500_vm5 = vweird.f32 %v4492_v27 }
0x17b9   :  { %v5527_v52 = vpop.eup %5526 }
0x17ba   :  { %v4495_v63 = vmul.f32 %v5527_v52, %v4492_v27  ;;  %vm4501_vm10 = vweird.f32 %v5527_v52 }
0x17bb   :  { %vm4502_vm6 = vmor %vm4500_vm5, %vm4501_vm10 }
0x17bc   :  { %v4496_v56 = vmul.f32 %v5527_v52, %v4495_v63 }
0x17be   :  { %v4497_v61 = vmul.f32 0.5, %v4496_v56 }
0x17c0   :  { %v4498_v48 = vsub.f32 1.5, %v4497_v61 }
0x17c2   :  { %v4499_v41 = vmul.f32 %v5527_v52, %v4498_v48 }
0x17c4   :  { %v4503_v12 = vsel %vm4502_vm6, %v5527_v52, %v4499_v41 }
0x17c5   :  { %v4514_v62 = vmul.f32 %v4503_v12, %v4472_v30 }
0x17c7   :  { %v4520_v0 = vmul.f32 %v4518_v43, %v4514_v62 }
0x17ce   :  { %v4489_v40 = vpop.xlane.xlu1 %4488 }
0x17cf   :  { %v4491_v53 = vmul.f32 %v4489_v40, %v6049_v10 }
0x17d1   :  { %v4493_v49 = vadd.f32 1e-05, %v4491_v53 }
0x17d3   :  { %5528 = vrsqrt.f32 %v4493_v49  ;;  %vm4510_vm9 = vweird.f32 %v4493_v49 }
0x17d9   :  { %v5529_v60 = vpop.eup %5528 }
0x17da   :  { %v4505_v1 = vmul.f32 %v5529_v60, %v4493_v49  ;;  %vm4511_vm7 = vweird.f32 %v5529_v60 }
0x17db   :  { %vm4512_vm11 = vmor %vm4510_vm9, %vm4511_vm7 }
0x17dc   :  { %v4506_v39 = vmul.f32 %v5529_v60, %v4505_v1 }
0x17de   :  { %v4507_v44 = vmul.f32 0.5, %v4506_v39 }
0x17e0   :  { %v4508_v10 = vsub.f32 1.5, %v4507_v44 }
0x17e2   :  { %v4509_v6 = vmul.f32 %v5529_v60, %v4508_v10 }
0x17e4   :  { %v4513_v57 = vsel %vm4512_vm11, %v5529_v60, %v4509_v6 }
0x17e5   :  { %v4515_v51 = vmul.f32 %v4513_v57, %v4473_v35 }
0x17e6   :  { %v4524_v16 = vpop.permute.xlu1 %4523 }
0x17e7   :  { %v4521_v8 = vmul.f32 %v4518_v43, %v4515_v51  ;;  %v4526_v9 = vadd.f32 %v4524_v16, %v4520_v0 }
0x17e9   :  { %v4527_v11 = vadd.f32 %v4524_v16, %v4521_v8 }
0x17eb   :  { %v4528_v13 = vpack.c.bf16 %v4527_v11, %v4526_v9 }
0x17ed   :  { %4533 = vrot.lane.b32.xlu2 %v4528_v13, %s5870_s26 }
0x1847   :  { %v4534_v14 = vpop.permute.xlu2 %4533 }
0x1848   :  { %4960 = vmatmul.msk.bf16.vlgmr.msra.gmra.mxu3 %vm299_vm0, %v4534_v14 }
0x18cb   :  { %v4559_v18 = vpop.f32.mrf.mxu3 }
0x18cc   :  { %v4560_v26 = vadd.f32 %v5411_v24, %v4559_v18 }
0x18ce   :  { %v4564_v55 = vmax.f32 %v4560_v26, 0.0 }
0x18d3   :  { %v4561_v19 = vpop.f32.mrf.mxu3 }
0x18d4   :  { %v4562_v3 = vadd.f32 %v5411_v24, %v4561_v19 }
0x18d6   :  { %v4565_v4 = vmax.f32 %v4562_v3, 0.0 }
0x18d8   :  { %v4566_v21 = vpack.c.bf16 %v4565_v4, %v4564_v55 }
0x18da   :  { %4977 = vmatmul.msk.bf16.vlgmr.msrb.gmra.mxu0 %vm4592_vm12, %v4566_v21 }
0x1957   :  { %v4605_v25 = vpop.f32.mrf.mxu0 }
0x1958   :  { %v4606_v29 = vadd.f32 %v4605_v25, %v4567_v28 }
0x195a   :  { %v4610_v33 = vmax.f32 %v4606_v29, 0.0 }
0x195f   :  { %v4607_v30 = vpop.f32.mrf.mxu0 }
0x1960   :  { %v4608_v59 = vadd.f32 %v4607_v30, %v4567_v28 }
0x1962   :  { %v4611_v34 = vmax.f32 %v4608_v59, 0.0 }
0x1964   :  { %v4612_v35 = vpack.c.bf16 %v4611_v34, %v4610_v33 }
0x1966   :  { %4978 = vmatmul.msk.bf16.vlgmr.msrb.gmra.mxu1 %vm299_vm0, %v4612_v35 }
0x19e3   :  { %v4625_v43 = vpop.f32.mrf.mxu1 }
0x19e4   :  { %v4651_v36 = vadd.f32 %v4646_v32, %v4625_v43 }
0x19e6   :  { %v4980_v2 = vmul.f32 -1.442695, %v4651_v36 }
0x19e8   :  { %5530 = vpow2.f32 %v4980_v2 }
0x19eb   :  { %v4627_v38 = vpop.f32.mrf.mxu1 }
0x19ec   :  { %v4652_v45 = vadd.f32 %v4648_v37, %v4627_v38 }
0x19ee   :  { %v5531_v46 = vpop.eup %5530  ;;  %v4981_v42 = vmul.f32 -1.442695, %v4652_v45  ;;  %v4692_v18 = vsub.f32 %v4652_v45, %v6429_v47 }
0x19ef   :  { %v4659_v27 = vadd.f32 1.0, %v5531_v46 }
0x19f0   :  { %5532 = vpow2.f32 %v4981_v42  ;;  %v4983_v24 = vmul.f32 -1.442695, %v4692_v18 }
0x19f1   :  { %5534 = vrcp.f32 %v4659_v27  ;;  %v4672_v61 = vand.u32 2147483648, %v4659_v27  ;;  %vm4666_vm14 = vweird.f32 %v4659_v27  ;;  %v4670_v60 = vand.u32 2147483647, %v4659_v27 }
0x19f3   :  { %v4673_v10 = vor.u32 1.1754944e-38, %v4672_v61  ;;  %vm4671_vm3 = vcmp.eq.f32.partialorder %v4670_v60, 8.507059e+37 }
0x19f6   :  { %v5533_v50 = vpop.eup %5532 }
0x19f7   :  { %v5535_v52 = vpop.eup %5534  ;;  %v4660_v63 = vadd.f32 1.0, %v5533_v50 }
0x19f8   :  { %v4662_v22 = vmul.f32 %v5535_v52, %v4659_v27  ;;  %vm4667_vm13 = vweird.f32 %v5535_v52 }
0x19f9   :  { %5536 = vrcp.f32 %v4660_v63  ;;  %v4687_v1 = vand.u32 2147483648, %v4660_v63  ;;  %vm4668_vm15 = vmor %vm4666_vm14, %vm4667_vm13  ;;  %v4685_v39 = vand.u32 2147483647, %v4660_v63  ;;  %vm4681_vm2 = vweird.f32 %v4660_v63 }
0x19fa   :  { %v4663_v40 = vsub.f32 1.0, %v4662_v22 }
0x19fb   :  { %v4688_v6 = vor.u32 1.1754944e-38, %v4687_v1  ;;  %vm4686_vm8 = vcmp.eq.f32.partialorder %v4685_v39, 8.507059e+37 }
0x19fc   :  { %v4664_v53 = vmul.f32 %v5535_v52, %v4663_v40 }
0x19fe   :  { %v4665_v49 = vadd.f32 %v5535_v52, %v4664_v53 }
0x19ff   :  { %v5537_v54 = vpop.eup %5536 }
0x1a00   :  { %v4677_v56 = vmul.f32 %v5537_v54, %v4660_v63  ;;  %vm4682_vm1 = vweird.f32 %v5537_v54  ;;  %v4669_v44 = vsel %vm4668_vm15, %v5535_v52, %v4665_v49 }
0x1a01   :  { %vm4683_vm4 = vmor %vm4681_vm2, %vm4682_vm1  ;;  %v4674_v62 = vsel %vm4671_vm3, %v4673_v10, %v4669_v44 }
0x1a02   :  { %v4678_v48 = vsub.f32 1.0, %v4677_v56  ;;  %v4731_v16 = vmul.f32 %v4674_v62, %v6445_v20 }
0x1a04   :  { %v4679_v41 = vmul.f32 %v5537_v54, %v4678_v48 }
0x1a06   :  { %v4680_v12 = vadd.f32 %v5537_v54, %v4679_v41 }
0x1a08   :  { %v4684_v57 = vsel %vm4683_vm4, %v5537_v54, %v4680_v12 }
0x1a09   :  { %v4689_v51 = vsel %vm4686_vm8, %v4688_v6, %v4684_v57 }
0x1a0a   :  { %v4732_v8 = vmul.f32 %v4689_v51, %v6449_v23  ;;  %v4691_v23 = vsub.f32 %v4651_v36, %v6429_v47 }
0x1a0c   :  { %v4733_v0 = vpack.c.bf16 %v4732_v8, %v4731_v16  ;;  %v4982_v58 = vmul.f32 -1.442695, %v4691_v23 }
0x1a0e   :  { %4984 = vmatmul.msk.bf16.vlgmr.msrb.gmra.mxu3 %vm299_vm0, %v4733_v0 }
0x1a91   :  { %v4746_v9 = vpop.f32.mrf.mxu3 }
0x1a92   :  { %4753 = vrot.lane.b32.xlu0 %v4746_v9, %s5857_s24 }
0x1a99   :  { %v4748_v11 = vpop.f32.mrf.mxu3 }
0x1a9a   :  { %4755 = vrot.lane.b32.xlu1 %v4748_v11, %s5857_s24 }
0x1b04   :  { %v4754_v13 = vpop.permute.xlu0 %4753 }
0x1b05   :  { %v4759_v14 = vadd.f32 %v4754_v13, %v4625_v43 }
0x1b07   :  { %5538 = vtanh.f32 %v4759_v14 }
0x1b0c   :  { %v4756_v7 = vpop.permute.xlu1 %4755 }
0x1b0d   :  { %v5539_v15 = vpop.eup %5538  ;;  %v4760_v17 = vadd.f32 %v4756_v7, %v4627_v38 }
0x1b0e   :  { %4769 = vrot.lane.b32.xlu0 %v5539_v15, %s5870_s26 }
0x1b0f   :  { %5540 = vtanh.f32 %v4760_v17 }
0x1b10   :  { %5542 = vpow2.f32 %v4982_v58 }
0x1b11   :  { %5544 = vpow2.f32 %v4983_v24 }
0x1b15   :  { %v5541_v20 = vpop.eup %5540 }
0x1b16   :  { %4771 = vrot.lane.b32.xlu1 %v5541_v20, %s5870_s26  ;;  %v5543_v26 = vpop.eup %5542 }
0x1b17   :  { %v4699_v19 = vadd.f32 1.0, %v5543_v26  ;;  %v5545_v3 = vpop.eup %5544 }
0x1b18   :  { %v4700_v55 = vadd.f32 1.0, %v5545_v3 }
0x1b19   :  { %5546 = vrcp.f32 %v4699_v19  ;;  %v4712_v34 = vand.u32 2147483648, %v4699_v19  ;;  %vm4706_vm5 = vweird.f32 %v4699_v19  ;;  %v4710_v47 = vand.u32 2147483647, %v4699_v19 }
0x1b1a   :  { %5548 = vrcp.f32 %v4700_v55  ;;  %v4727_v37 = vand.u32 2147483648, %v4700_v55  ;;  %vm4721_vm11 = vweird.f32 %v4700_v55  ;;  %v4725_v45 = vand.u32 2147483647, %v4700_v55 }
0x1b1b   :  { %v4713_v43 = vor.u32 1.1754944e-38, %v4712_v34  ;;  %vm4711_vm7 = vcmp.eq.f32.partialorder %v4710_v47, 8.507059e+37 }
0x1b1c   :  { %v4728_v27 = vor.u32 1.1754944e-38, %v4727_v37  ;;  %vm4726_vm13 = vcmp.eq.f32.partialorder %v4725_v45, 8.507059e+37 }
0x1b1f   :  { %v5547_v4 = vpop.eup %5546 }
0x1b20   :  { %v4702_v21 = vmul.f32 %v5547_v4, %v4699_v19  ;;  %v5549_v28 = vpop.eup %5548  ;;  %vm4707_vm10 = vweird.f32 %v5547_v4 }
0x1b21   :  { %v4717_v30 = vmul.f32 %v5549_v28, %v4700_v55  ;;  %vm4708_vm6 = vmor %vm4706_vm5, %vm4707_vm10  ;;  %vm4722_vm9 = vweird.f32 %v5549_v28 }
0x1b22   :  { %v4703_v25 = vsub.f32 1.0, %v4702_v21  ;;  %vm4723_vm12 = vmor %vm4721_vm11, %vm4722_vm9 }
0x1b23   :  { %v4718_v33 = vsub.f32 1.0, %v4717_v30 }
0x1b24   :  { %v4704_v29 = vmul.f32 %v5547_v4, %v4703_v25 }
0x1b25   :  { %v4719_v32 = vmul.f32 %v5549_v28, %v4718_v33 }
0x1b26   :  { %v4705_v59 = vadd.f32 %v5547_v4, %v4704_v29 }
0x1b27   :  { %v4720_v2 = vadd.f32 %v5549_v28, %v4719_v32 }
0x1b28   :  { %v4709_v35 = vsel %vm4708_vm6, %v5547_v4, %v4705_v59 }
0x1b29   :  { %v4714_v36 = vsel %vm4711_vm7, %v4713_v43, %v4709_v35  ;;  %v4724_v46 = vsel %vm4723_vm12, %v5549_v28, %v4720_v2 }
0x1b2a   :  { %v4763_v38 = vsub.f32 1.0, %v4714_v36  ;;  %v4729_v63 = vsel %vm4726_vm13, %v4728_v27, %v4724_v46 }
0x1b2b   :  { %v4764_v40 = vsub.f32 1.0, %v4729_v63 }
0x1b2c   :  { %v4765_v50 = vmul.f32 %v4763_v38, %v6436_v31 }
0x1b2d   :  { %v4766_v54 = vmul.f32 %v4764_v40, %v6441_v5 }
0x1b80   :  { %v4770_v42 = vpop.permute.xlu0 %4769 }
0x1b81   :  { %v4775_v52 = vmul.f32 %v4770_v42, %v4714_v36 }
0x1b83   :  { %v4777_v22 = vadd.f32 %v4775_v52, %v4765_v50 }
0x1b85   :  { %4781 = vrot.lane.b32.xlu2 %v4777_v22, %s5870_s26 }
0x1b88   :  { %v4772_v53 = vpop.permute.xlu1 %4771 }
0x1b89   :  { %v4776_v56 = vmul.f32 %v4772_v53, %v4729_v63 }
0x1b8b   :  { %v4778_v49 = vadd.f32 %v4776_v56, %v4766_v54 }
0x1b8d   :  { %4783 = vrot.lane.b32.xlu0 %v4778_v49, %s5870_s26 }
0x1bdf   :  { %v4782_v61 = vpop.permute.xlu2 %4781 }
0x1be0   :  { %4787 = vst.msk [vmem:[#allocation20] sm:$0xff] %vm299_vm0, %v4782_v61 }
0x1bff   :  { %v4784_v31 = vpop.permute.xlu0 %4783 }
0x1c00   :  { %4788 = vst.msk [vmem:[#allocation20 + $0x8] sm:$0xff] %vm299_vm0, %v4784_v31 }
0x1c01   :  { %4801 = dma.vmem_to_hbm [thread:$0]  %s4794_s17, 256, %s4796_s27, [#allocation4], %s5873_s28, %s5873_s28, %s5874_s4  }
0x1c02   :  { %5854 = dma.done.wait [#allocation4], 256  }
0x1c03   :  { %5855 = vsyncadd [#allocation4], 4294967040 }
0x1c04   :  { %4806 = vsyncpa [#allocation3], 1 }
0x1c05   :  { %4807 = vsyncpa [#allocation6], 1 }
0x1c06   :  { %4808 = vsyncpa [#allocation9], 1 }
0x1c07   :  { %4809 = vsyncpa [#allocation12], 1 }
0x1c08   :  { %4810 = vsyncpa [#allocation15], 1 }
0x1c09   :  { %4811 = vsyncpa [#allocation18], 1 }
0x1c0a   :  { %4812 = vsyncpa [#allocation4], 1 }

</bundles_post_ra>
